<compile_context>
chip_gen: v5e
topology: v5e:2x2
jax: 0.10.0
libtpu: 0.0.40
codegen_flags: <defaults>
</compile_context>

<pallas_src>
import functools
import math

import jax
import jax.numpy as jnp
from jax import lax
from jax.experimental import pallas as pl
from jax.experimental.pallas import tpu as pltpu

# ----------------------------- config (small) -------------------------------
B = 2          # batch
C = 3          # image channels
IMG = 16       # image height/width
PATCH = 8      # patch size -> (16/8)^2 = 4 patches
D = 32         # transformer embed dim
HEADS = 4      # attention heads  (head_dim = 8)
LAYERS = 2     # transformer depth
MLP = 4 * D    # mlp hidden dim
OUT = 16       # output (CLIP projection) dim
NPATCH = (IMG // PATCH) ** 2
SEQ = NPATCH + 1   # +1 class token


# ----------------------------- kernel helpers --------------------------------
def _ln(x, g, b, eps=1e-5):
    """LayerNorm over the last dim, f32 math. g/b shaped [1, D]."""
    m = jnp.mean(x, axis=-1, keepdims=True)
    v = jnp.mean((x - m) ** 2, axis=-1, keepdims=True)
    return (x - m) * lax.rsqrt(v + eps) * g + b


# ----------------------------- fused encoder kernel --------------------------
def _encoder_kernel(patches_ref, conv_w_ref, tok_base_ref, ln_io_ref,
                    ln_blk_ref, w_qkv_ref, b_qkv_ref, w_o_ref, b_o_ref,
                    w1_ref, b1_ref, w2_ref, b2_ref, proj_ref,
                    out_ref, tok_sc, attn_sc,
                    *, num_heads, num_layers, batch, seq):
    Dm = conv_w_ref.shape[-1]
    npatch = seq - 1
    hd = Dm // num_heads

    # ---- patch embedding: one MXU matmul for the whole batch ----------------
    emb = jnp.dot(patches_ref[...].astype(jnp.bfloat16), conv_w_ref[...],
                  preferred_element_type=jnp.float32)            # [B*NP, D] f32

    # ---- build token sequence: row b*S = cls + pos[0], rest = patches + pos -
    tok_base = tok_base_ref[...]                                  # [S, D] f32
    for b in range(batch):
        r0 = b * seq
        tok_sc[r0:r0 + 1, :] = tok_base[0:1, :]
        tok_sc[r0 + 1:r0 + seq, :] = (emb[b * npatch:(b + 1) * npatch, :]
                                      + tok_base[1:, :])
    x = tok_sc[...]                                               # [B*S, D] f32

    # ---- ln_pre -------------------------------------------------------------
    ln_io = ln_io_ref[...]                                        # [4, D]
    x = _ln(x, ln_io[0:1, :], ln_io[1:2, :])

    # ---- residual attention blocks (static loop over layers) ----------------
    for l in range(num_layers):
        ln_l = ln_blk_ref[l]                                      # [4, D]

        # attention branch: x + out_proj(MHA(ln_1(x)))
        h = _ln(x, ln_l[0:1, :], ln_l[1:2, :]).astype(jnp.bfloat16)
        # fused qkv projection (scale already folded into the q columns)
        qkv = jnp.dot(h, w_qkv_ref[l],
                      preferred_element_type=jnp.float32) + b_qkv_ref[l]

        for b in range(batch):                    # static loops: B*H = 8 iters
            r0 = b * seq
            for hh in range(num_heads):
                c0 = hh * hd
                qh = qkv[r0:r0 + seq, c0:c0 + hd].astype(jnp.bfloat16)
                kh = qkv[r0:r0 + seq, Dm + c0:Dm + c0 + hd].astype(jnp.bfloat16)
                vh = qkv[r0:r0 + seq, 2 * Dm + c0:2 * Dm + c0 + hd].astype(
                    jnp.bfloat16)
                # scores[s, t] = q[s] . k[t]   (scale folded into q)
                sc = lax.dot_general(qh, kh, (((1,), (1,)), ((), ())),
                                     preferred_element_type=jnp.float32)
                sc = sc - jnp.max(sc, axis=-1, keepdims=True)
                p = jnp.exp(sc)
                p = p * pl.reciprocal(jnp.sum(p, axis=-1, keepdims=True),
                                      approx=True)
                # write this head's output straight into its D-slice
                attn_sc[r0:r0 + seq, c0:c0 + hd] = jnp.dot(
                    p.astype(jnp.bfloat16), vh,
                    preferred_element_type=jnp.float32)

        attn = jnp.dot(attn_sc[...].astype(jnp.bfloat16), w_o_ref[l],
                       preferred_element_type=jnp.float32) + b_o_ref[l]
        x = x + attn

        # mlp branch: x + W2(QuickGELU(W1(ln_2(x))))
        h2 = _ln(x, ln_l[2:3, :], ln_l[3:4, :]).astype(jnp.bfloat16)
        m = jnp.dot(h2, w1_ref[l],
                    preferred_element_type=jnp.float32) + b1_ref[l]
        # TODO(synk): open_clip uses exact nn.GELU unless quick_gelu is set;
        # QuickGELU kept here to match the original CLIP ViT variant.
        m = m * jax.nn.sigmoid(1.702 * m)                         # f32
        m = jnp.dot(m.astype(jnp.bfloat16), w2_ref[l],
                    preferred_element_type=jnp.float32) + b2_ref[l]
        x = x + m

    # ---- ln_post on the class token + final projection ----------------------
    for b in range(batch):
        xc = _ln(x[b * seq:b * seq + 1, :], ln_io[2:3, :], ln_io[3:4, :])
        out_ref[b:b + 1, :] = jnp.dot(xc.astype(jnp.bfloat16), proj_ref[...],
                                      preferred_element_type=jnp.float32)


# ----------------------------- parameters ------------------------------------
def init_params(key):
    def nrm(k, shape, std=0.02):
        return jax.random.normal(k, shape, jnp.float32) * std

    keys = iter(jax.random.split(key, 128))
    hd = D // HEADS
    scale = 1.0 / math.sqrt(float(hd))   # torch: q * sqrt(1/E), E = head_dim

    p = {}
    # conv patch embedding weight, stored pre-transposed: [C*P*P, D]
    p["conv_w"] = nrm(next(keys), (C * PATCH * PATCH, D)).astype(jnp.bfloat16)

    cls = nrm(next(keys), (D,))
    pos = nrm(next(keys), (SEQ, D))
    p["tok_base"] = pos.at[0, :].add(cls)          # row 0 = cls + pos[0]

    ln_pre_g = jnp.ones((D,), jnp.float32) + nrm(next(keys), (D,))
    ln_pre_b = nrm(next(keys), (D,))
    ln_post_g = jnp.ones((D,), jnp.float32) + nrm(next(keys), (D,))
    ln_post_b = nrm(next(keys), (D,))
    p["ln_io"] = jnp.stack([ln_pre_g, ln_pre_b, ln_post_g, ln_post_b])  # [4,D]

    ln_blk, w_qkv, b_qkv, w_o, b_o, w1, b1, w2, b2 = ([] for _ in range(9))
    for _ in range(LAYERS):
        ln1g = jnp.ones((D,), jnp.float32) + nrm(next(keys), (D,))
        ln1b = nrm(next(keys), (D,))
        wq = nrm(next(keys), (D, D)); bq = nrm(next(keys), (D,))
        wk = nrm(next(keys), (D, D)); bk = nrm(next(keys), (D,))
        wv = nrm(next(keys), (D, D)); bv = nrm(next(keys), (D,))
        wo = nrm(next(keys), (D, D)); bo = nrm(next(keys), (D,))
        ln2g = jnp.ones((D,), jnp.float32) + nrm(next(keys), (D,))
        ln2b = nrm(next(keys), (D,))
        fw1 = nrm(next(keys), (D, MLP)); fb1 = nrm(next(keys), (MLP,))
        fw2 = nrm(next(keys), (MLP, D)); fb2 = nrm(next(keys), (D,))

        ln_blk.append(jnp.stack([ln1g, ln1b, ln2g, ln2b]))            # [4, D]
        # fused qkv, with the attention scale folded into the q part
        w_qkv.append(jnp.concatenate([wq * scale, wk, wv], axis=1))   # [D, 3D]
        b_qkv.append(jnp.concatenate([bq * scale, bk, bv])[None, :])  # [1, 3D]
        w_o.append(wo); b_o.append(bo[None, :])
        w1.append(fw1); b1.append(fb1[None, :])
        w2.append(fw2); b2.append(fb2[None, :])

    p["ln_blk"] = jnp.stack(ln_blk)                                   # [L,4,D]
    p["w_qkv"] = jnp.stack(w_qkv).astype(jnp.bfloat16)                # [L,D,3D]
    p["b_qkv"] = jnp.stack(b_qkv)                                     # [L,1,3D]
    p["w_o"] = jnp.stack(w_o).astype(jnp.bfloat16)                    # [L,D,D]
    p["b_o"] = jnp.stack(b_o)                                         # [L,1,D]
    p["w1"] = jnp.stack(w1).astype(jnp.bfloat16)                      # [L,D,MLP]
    p["b1"] = jnp.stack(b1)                                           # [L,1,MLP]
    p["w2"] = jnp.stack(w2).astype(jnp.bfloat16)                      # [L,MLP,D]
    p["b2"] = jnp.stack(b2)                                           # [L,1,D]
    p["proj"] = nrm(next(keys), (D, OUT)).astype(jnp.bfloat16)        # [D,OUT]
    return p


# ----------------------------- forward ---------------------------------------
def image_encoder_forward(images, params):
    """images: [B, C, H, W] float32 -> [B, OUT] image features."""
    Bn, Ci, H, W = images.shape
    gh, gw = H // PATCH, W // PATCH
    seq = gh * gw + 1
    bs = Bn * seq

    # -- patchify (pure layout glue): channel-major patch vectors, matching
    #    PyTorch conv2d(weight[d, c, ph, pw]) stride=patch semantics.
    x = images.reshape(Bn, Ci, gh, PATCH, gw, PATCH)
    x = x.transpose(0, 2, 4, 1, 3, 5)                       # [B, gh, gw, C, P, P]
    patches = x.reshape(Bn * gh * gw, Ci * PATCH * PATCH)

    kernel = functools.partial(_encoder_kernel, num_heads=HEADS,
                               num_layers=LAYERS, batch=Bn, seq=seq)
    args = (patches, params["conv_w"], params["tok_base"], params["ln_io"],
            params["ln_blk"], params["w_qkv"], params["b_qkv"],
            params["w_o"], params["b_o"], params["w1"], params["b1"],
            params["w2"], params["b2"], params["proj"])
    in_specs = [pl.BlockSpec(memory_space=pltpu.MemorySpace.VMEM) for _ in args]

    return pl.pallas_call(
        kernel,
        out_shape=jax.ShapeDtypeStruct((Bn, OUT), jnp.float32),
        in_specs=in_specs,
        out_specs=pl.BlockSpec(memory_space=pltpu.MemorySpace.VMEM),
        scratch_shapes=[pltpu.VMEM((bs, D), jnp.float32),   # token builder
                        pltpu.VMEM((bs, D), jnp.float32)],  # per-head attn out
    )(*args)


if __name__ == "__main__":
    key = jax.random.PRNGKey(0)
    k_img, k_par = jax.random.split(key)
    images = jax.random.normal(k_img, (B, C, IMG, IMG), jnp.float32)
    params = init_params(k_par)

    fwd = jax.jit(image_encoder_forward)
    out = fwd(images, params)
    out = jax.block_until_ready(out)
    assert out.shape == (B, OUT), out.shape
    assert jnp.all(jnp.isfinite(out))
    print("KERNEL_OK")
</pallas_src>

<mosaic_0001>
module attributes {stable_mosaic.version = 11 : i64} {
  func.func @_encoder_kernel(%arg0: memref<8x192xf32, #tpu.memory_space<vmem>>, %arg1: memref<192x32xbf16, #tpu.memory_space<vmem>>, %arg2: memref<5x32xf32, #tpu.memory_space<vmem>>, %arg3: memref<4x32xf32, #tpu.memory_space<vmem>>, %arg4: memref<2x4x32xf32, #tpu.memory_space<vmem>>, %arg5: memref<2x32x96xbf16, #tpu.memory_space<vmem>>, %arg6: memref<2x1x96xf32, #tpu.memory_space<vmem>>, %arg7: memref<2x32x32xbf16, #tpu.memory_space<vmem>>, %arg8: memref<2x1x32xf32, #tpu.memory_space<vmem>>, %arg9: memref<2x32x128xbf16, #tpu.memory_space<vmem>>, %arg10: memref<2x1x128xf32, #tpu.memory_space<vmem>>, %arg11: memref<2x128x32xbf16, #tpu.memory_space<vmem>>, %arg12: memref<2x1x32xf32, #tpu.memory_space<vmem>>, %arg13: memref<32x16xbf16, #tpu.memory_space<vmem>>, %arg14: memref<2x16xf32, #tpu.memory_space<vmem>>, %arg15: memref<10x32xf32, #tpu.memory_space<vmem>>, %arg16: memref<10x32xf32, #tpu.memory_space<vmem>>) attributes {dimension_semantics = [], scalar_prefetch = 0 : i64, scratch_operands = 2 : i64, tpu.core_type = #tpu.core_type<tc>} {
    %c0 = arith.constant 0 : index
    %c0_0 = arith.constant 0 : index
    %0 = vector.load %arg0[%c0, %c0_0] : memref<8x192xf32, #tpu.memory_space<vmem>>, vector<8x192xf32>
    %1 = arith.truncf %0 : vector<8x192xf32> to vector<8x192xbf16>
    %c0_1 = arith.constant 0 : index
    %c0_2 = arith.constant 0 : index
    %2 = vector.load %arg1[%c0_1, %c0_2] : memref<192x32xbf16, #tpu.memory_space<vmem>>, vector<192x32xbf16>
    %cst = arith.constant dense<0.000000e+00> : vector<8x32xf32>
    %3 = tpu.matmul %1, %2, %cst {dimension_numbers = #tpu.dot_dimension_numbers<[1], [0], [0], [1], [0, 0, 1, 1], [], []>} : vector<8x192xbf16>, vector<192x32xbf16>, vector<8x32xf32> -> vector<8x32xf32>
    %c0_3 = arith.constant 0 : index
    %c0_4 = arith.constant 0 : index
    %4 = vector.load %arg2[%c0_3, %c0_4] : memref<5x32xf32, #tpu.memory_space<vmem>>, vector<5x32xf32>
    %5 = vector.extract_strided_slice %4 {offsets = [0, 0], sizes = [1, 32], strides = [1, 1]} : vector<5x32xf32> to vector<1x32xf32>
    %c0_5 = arith.constant 0 : index
    %c0_6 = arith.constant 0 : index
    %6 = vector.load %arg15[%c0_5, %c0_6] : memref<10x32xf32, #tpu.memory_space<vmem>>, vector<1x32xf32>
    tpu.vector_store %arg15[%c0_5, %c0_6], %5 {strides = array<i32>} : memref<10x32xf32, #tpu.memory_space<vmem>>, vector<1x32xf32>,
    %7 = vector.extract_strided_slice %3 {offsets = [0, 0], sizes = [4, 32], strides = [1, 1]} : vector<8x32xf32> to vector<4x32xf32>
    %8 = vector.extract_strided_slice %4 {offsets = [1, 0], sizes = [4, 32], strides = [1, 1]} : vector<5x32xf32> to vector<4x32xf32>
    %9 = arith.addf %7, %8 : vector<4x32xf32>
    %c1 = arith.constant 1 : index
    %c0_7 = arith.constant 0 : index
    %10 = vector.load %arg15[%c1, %c0_7] : memref<10x32xf32, #tpu.memory_space<vmem>>, vector<4x32xf32>
    tpu.vector_store %arg15[%c1, %c0_7], %9 {strides = array<i32>} : memref<10x32xf32, #tpu.memory_space<vmem>>, vector<4x32xf32>,
    %11 = vector.extract_strided_slice %4 {offsets = [0, 0], sizes = [1, 32], strides = [1, 1]} : vector<5x32xf32> to vector<1x32xf32>
    %c5 = arith.constant 5 : index
    %c0_8 = arith.constant 0 : index
    %12 = vector.load %arg15[%c5, %c0_8] : memref<10x32xf32, #tpu.memory_space<vmem>>, vector<1x32xf32>
    tpu.vector_store %arg15[%c5, %c0_8], %11 {strides = array<i32>} : memref<10x32xf32, #tpu.memory_space<vmem>>, vector<1x32xf32>,
    %13 = vector.extract_strided_slice %3 {offsets = [4, 0], sizes = [4, 32], strides = [1, 1]} : vector<8x32xf32> to vector<4x32xf32>
    %14 = vector.extract_strided_slice %4 {offsets = [1, 0], sizes = [4, 32], strides = [1, 1]} : vector<5x32xf32> to vector<4x32xf32>
    %15 = arith.addf %13, %14 : vector<4x32xf32>
    %c6 = arith.constant 6 : index
    %c0_9 = arith.constant 0 : index
    %16 = vector.load %arg15[%c6, %c0_9] : memref<10x32xf32, #tpu.memory_space<vmem>>, vector<4x32xf32>
    tpu.vector_store %arg15[%c6, %c0_9], %15 {strides = array<i32>} : memref<10x32xf32, #tpu.memory_space<vmem>>, vector<4x32xf32>,
    %c0_10 = arith.constant 0 : index
    %c0_11 = arith.constant 0 : index
    %17 = vector.load %arg15[%c0_10, %c0_11] : memref<10x32xf32, #tpu.memory_space<vmem>>, vector<10x32xf32>
    %c0_12 = arith.constant 0 : index
    %c0_13 = arith.constant 0 : index
    %18 = vector.load %arg3[%c0_12, %c0_13] : memref<4x32xf32, #tpu.memory_space<vmem>>, vector<4x32xf32>
    %19 = vector.extract_strided_slice %18 {offsets = [0, 0], sizes = [1, 32], strides = [1, 1]} : vector<4x32xf32> to vector<1x32xf32>
    %20 = vector.extract_strided_slice %18 {offsets = [1, 0], sizes = [1, 32], strides = [1, 1]} : vector<4x32xf32> to vector<1x32xf32>
    %cst_14 = arith.constant dense<0.000000e+00> : vector<10xf32>
    %21 = vector.multi_reduction <add>, %17, %cst_14 [1] : vector<10x32xf32> to vector<10xf32>
    %22 = vector.shape_cast %21 : vector<10xf32> to vector<10x1xf32>
    %cst_15 = arith.constant 3.200000e+01 : f32
    %23 = vector.broadcast %cst_15 : f32 to vector<10x1xf32>
    %24 = arith.divf %22, %23 : vector<10x1xf32>
    %25 = vector.broadcast %24 : vector<10x1xf32> to vector<10x32xf32>
    %26 = arith.subf %17, %25 : vector<10x32xf32>
    %27 = arith.mulf %26, %26 : vector<10x32xf32>
    %cst_16 = arith.constant dense<0.000000e+00> : vector<10xf32>
    %28 = vector.multi_reduction <add>, %27, %cst_16 [1] : vector<10x32xf32> to vector<10xf32>
    %29 = vector.shape_cast %28 : vector<10xf32> to vector<10x1xf32>
    %cst_17 = arith.constant 3.200000e+01 : f32
    %30 = vector.broadcast %cst_17 : f32 to vector<10x1xf32>
    %31 = arith.divf %29, %30 : vector<10x1xf32>
    %32 = vector.broadcast %24 : vector<10x1xf32> to vector<10x32xf32>
    %33 = arith.subf %17, %32 : vector<10x32xf32>
    %cst_18 = arith.constant 9.99999974E-6 : f32
    %34 = vector.broadcast %cst_18 : f32 to vector<10x1xf32>
    %35 = arith.addf %31, %34 : vector<10x1xf32>
    %36 = math.rsqrt %35 : vector<10x1xf32>
    %37 = vector.broadcast %36 : vector<10x1xf32> to vector<10x32xf32>
    %38 = arith.mulf %33, %37 : vector<10x32xf32>
    %39 = vector.broadcast %19 : vector<1x32xf32> to vector<10x32xf32>
    %40 = arith.mulf %38, %39 : vector<10x32xf32>
    %41 = vector.broadcast %20 : vector<1x32xf32> to vector<10x32xf32>
    %42 = arith.addf %40, %41 : vector<10x32xf32>
    %c0_19 = arith.constant 0 : index
    %c0_20 = arith.constant 0 : index
    %c0_21 = arith.constant 0 : index
    %43 = vector.load %arg4[%c0_19, %c0_20, %c0_21] : memref<2x4x32xf32, #tpu.memory_space<vmem>>, vector<1x4x32xf32>
    %44 = vector.shape_cast %43 : vector<1x4x32xf32> to vector<4x32xf32>
    %45 = vector.extract_strided_slice %44 {offsets = [0, 0], sizes = [1, 32], strides = [1, 1]} : vector<4x32xf32> to vector<1x32xf32>
    %46 = vector.extract_strided_slice %44 {offsets = [1, 0], sizes = [1, 32], strides = [1, 1]} : vector<4x32xf32> to vector<1x32xf32>
    %cst_22 = arith.constant dense<0.000000e+00> : vector<10xf32>
    %47 = vector.multi_reduction <add>, %42, %cst_22 [1] : vector<10x32xf32> to vector<10xf32>
    %48 = vector.shape_cast %47 : vector<10xf32> to vector<10x1xf32>
    %cst_23 = arith.constant 3.200000e+01 : f32
    %49 = vector.broadcast %cst_23 : f32 to vector<10x1xf32>
    %50 = arith.divf %48, %49 : vector<10x1xf32>
    %51 = vector.broadcast %50 : vector<10x1xf32> to vector<10x32xf32>
    %52 = arith.subf %42, %51 : vector<10x32xf32>
    %53 = arith.mulf %52, %52 : vector<10x32xf32>
    %cst_24 = arith.constant dense<0.000000e+00> : vector<10xf32>
    %54 = vector.multi_reduction <add>, %53, %cst_24 [1] : vector<10x32xf32> to vector<10xf32>
    %55 = vector.shape_cast %54 : vector<10xf32> to vector<10x1xf32>
    %cst_25 = arith.constant 3.200000e+01 : f32
    %56 = vector.broadcast %cst_25 : f32 to vector<10x1xf32>
    %57 = arith.divf %55, %56 : vector<10x1xf32>
    %58 = vector.broadcast %50 : vector<10x1xf32> to vector<10x32xf32>
    %59 = arith.subf %42, %58 : vector<10x32xf32>
    %cst_26 = arith.constant 9.99999974E-6 : f32
    %60 = vector.broadcast %cst_26 : f32 to vector<10x1xf32>
    %61 = arith.addf %57, %60 : vector<10x1xf32>
    %62 = math.rsqrt %61 : vector<10x1xf32>
    %63 = vector.broadcast %62 : vector<10x1xf32> to vector<10x32xf32>
    %64 = arith.mulf %59, %63 : vector<10x32xf32>
    %65 = vector.broadcast %45 : vector<1x32xf32> to vector<10x32xf32>
    %66 = arith.mulf %64, %65 : vector<10x32xf32>
    %67 = vector.broadcast %46 : vector<1x32xf32> to vector<10x32xf32>
    %68 = arith.addf %66, %67 : vector<10x32xf32>
    %69 = arith.truncf %68 : vector<10x32xf32> to vector<10x32xbf16>
    %c0_27 = arith.constant 0 : index
    %c0_28 = arith.constant 0 : index
    %c0_29 = arith.constant 0 : index
    %70 = vector.load %arg5[%c0_27, %c0_28, %c0_29] : memref<2x32x96xbf16, #tpu.memory_space<vmem>>, vector<1x32x96xbf16>
    %71 = vector.shape_cast %70 : vector<1x32x96xbf16> to vector<32x96xbf16>
    %cst_30 = arith.constant dense<0.000000e+00> : vector<10x96xf32>
    %72 = tpu.matmul %69, %71, %cst_30 {dimension_numbers = #tpu.dot_dimension_numbers<[1], [0], [0], [1], [0, 0, 1, 1], [], []>} : vector<10x32xbf16>, vector<32x96xbf16>, vector<10x96xf32> -> vector<10x96xf32>
    %c0_31 = arith.constant 0 : index
    %c0_32 = arith.constant 0 : index
    %c0_33 = arith.constant 0 : index
    %73 = vector.load %arg6[%c0_31, %c0_32, %c0_33] : memref<2x1x96xf32, #tpu.memory_space<vmem>>, vector<1x1x96xf32>
    %74 = vector.shape_cast %73 : vector<1x1x96xf32> to vector<1x96xf32>
    %75 = vector.broadcast %74 : vector<1x96xf32> to vector<10x96xf32>
    %76 = arith.addf %72, %75 : vector<10x96xf32>
    %77 = vector.extract_strided_slice %76 {offsets = [0, 0], sizes = [5, 8], strides = [1, 1]} : vector<10x96xf32> to vector<5x8xf32>
    %78 = arith.truncf %77 : vector<5x8xf32> to vector<5x8xbf16>
    %79 = vector.extract_strided_slice %76 {offsets = [0, 32], sizes = [5, 8], strides = [1, 1]} : vector<10x96xf32> to vector<5x8xf32>
    %80 = arith.truncf %79 : vector<5x8xf32> to vector<5x8xbf16>
    %81 = vector.extract_strided_slice %76 {offsets = [0, 64], sizes = [5, 8], strides = [1, 1]} : vector<10x96xf32> to vector<5x8xf32>
    %82 = arith.truncf %81 : vector<5x8xf32> to vector<5x8xbf16>
    %cst_34 = arith.constant dense<0.000000e+00> : vector<5x5xf32>
    %83 = tpu.matmul %78, %80, %cst_34 {dimension_numbers = #tpu.dot_dimension_numbers<[1], [1], [0], [0], [0, 0, 1, 0], [], []>} : vector<5x8xbf16>, vector<5x8xbf16>, vector<5x5xf32> -> vector<5x5xf32>
    %cst_35 = arith.constant dense<0xFF800000> : vector<5xf32>
    %84 = vector.multi_reduction <maximumf>, %83, %cst_35 [1] : vector<5x5xf32> to vector<5xf32>
    %85 = vector.shape_cast %84 : vector<5xf32> to vector<5x1xf32>
    %86 = vector.broadcast %85 : vector<5x1xf32> to vector<5x5xf32>
    %87 = arith.subf %83, %86 : vector<5x5xf32>
    %88 = math.exp %87 : vector<5x5xf32>
    %cst_36 = arith.constant dense<0.000000e+00> : vector<5xf32>
    %89 = vector.multi_reduction <add>, %88, %cst_36 [1] : vector<5x5xf32> to vector<5xf32>
    %90 = vector.shape_cast %89 : vector<5xf32> to vector<5x1xf32>
    %91 = tpu.reciprocal %90 {approx = true} : vector<5x1xf32> -> vector<5x1xf32>
    %92 = vector.broadcast %91 : vector<5x1xf32> to vector<5x5xf32>
    %93 = arith.mulf %88, %92 : vector<5x5xf32>
    %94 = arith.truncf %93 : vector<5x5xf32> to vector<5x5xbf16>
    %cst_37 = arith.constant dense<0.000000e+00> : vector<5x8xf32>
    %95 = tpu.matmul %94, %82, %cst_37 {dimension_numbers = #tpu.dot_dimension_numbers<[1], [0], [0], [1], [0, 0, 1, 1], [], []>} : vector<5x5xbf16>, vector<5x8xbf16>, vector<5x8xf32> -> vector<5x8xf32>
    %c0_38 = arith.constant 0 : index
    %c0_39 = arith.constant 0 : index
    %96 = vector.load %arg16[%c0_38, %c0_39] : memref<10x32xf32, #tpu.memory_space<vmem>>, vector<5x8xf32>
    tpu.vector_store %arg16[%c0_38, %c0_39], %95 {strides = array<i32>} : memref<10x32xf32, #tpu.memory_space<vmem>>, vector<5x8xf32>,
    %97 = vector.extract_strided_slice %76 {offsets = [0, 8], sizes = [5, 8], strides = [1, 1]} : vector<10x96xf32> to vector<5x8xf32>
    %98 = arith.truncf %97 : vector<5x8xf32> to vector<5x8xbf16>
    %99 = vector.extract_strided_slice %76 {offsets = [0, 40], sizes = [5, 8], strides = [1, 1]} : vector<10x96xf32> to vector<5x8xf32>
    %100 = arith.truncf %99 : vector<5x8xf32> to vector<5x8xbf16>
    %101 = vector.extract_strided_slice %76 {offsets = [0, 72], sizes = [5, 8], strides = [1, 1]} : vector<10x96xf32> to vector<5x8xf32>
    %102 = arith.truncf %101 : vector<5x8xf32> to vector<5x8xbf16>
    %cst_40 = arith.constant dense<0.000000e+00> : vector<5x5xf32>
    %103 = tpu.matmul %98, %100, %cst_40 {dimension_numbers = #tpu.dot_dimension_numbers<[1], [1], [0], [0], [0, 0, 1, 0], [], []>} : vector<5x8xbf16>, vector<5x8xbf16>, vector<5x5xf32> -> vector<5x5xf32>
    %cst_41 = arith.constant dense<0xFF800000> : vector<5xf32>
    %104 = vector.multi_reduction <maximumf>, %103, %cst_41 [1] : vector<5x5xf32> to vector<5xf32>
    %105 = vector.shape_cast %104 : vector<5xf32> to vector<5x1xf32>
    %106 = vector.broadcast %105 : vector<5x1xf32> to vector<5x5xf32>
    %107 = arith.subf %103, %106 : vector<5x5xf32>
    %108 = math.exp %107 : vector<5x5xf32>
    %cst_42 = arith.constant dense<0.000000e+00> : vector<5xf32>
    %109 = vector.multi_reduction <add>, %108, %cst_42 [1] : vector<5x5xf32> to vector<5xf32>
    %110 = vector.shape_cast %109 : vector<5xf32> to vector<5x1xf32>
    %111 = tpu.reciprocal %110 {approx = true} : vector<5x1xf32> -> vector<5x1xf32>
    %112 = vector.broadcast %111 : vector<5x1xf32> to vector<5x5xf32>
    %113 = arith.mulf %108, %112 : vector<5x5xf32>
    %114 = arith.truncf %113 : vector<5x5xf32> to vector<5x5xbf16>
    %cst_43 = arith.constant dense<0.000000e+00> : vector<5x8xf32>
    %115 = tpu.matmul %114, %102, %cst_43 {dimension_numbers = #tpu.dot_dimension_numbers<[1], [0], [0], [1], [0, 0, 1, 1], [], []>} : vector<5x5xbf16>, vector<5x8xbf16>, vector<5x8xf32> -> vector<5x8xf32>
    %c0_44 = arith.constant 0 : index
    %c8 = arith.constant 8 : index
    %116 = vector.load %arg16[%c0_44, %c8] : memref<10x32xf32, #tpu.memory_space<vmem>>, vector<5x8xf32>
    tpu.vector_store %arg16[%c0_44, %c8], %115 {strides = array<i32>} : memref<10x32xf32, #tpu.memory_space<vmem>>, vector<5x8xf32>,
    %117 = vector.extract_strided_slice %76 {offsets = [0, 16], sizes = [5, 8], strides = [1, 1]} : vector<10x96xf32> to vector<5x8xf32>
    %118 = arith.truncf %117 : vector<5x8xf32> to vector<5x8xbf16>
    %119 = vector.extract_strided_slice %76 {offsets = [0, 48], sizes = [5, 8], strides = [1, 1]} : vector<10x96xf32> to vector<5x8xf32>
    %120 = arith.truncf %119 : vector<5x8xf32> to vector<5x8xbf16>
    %121 = vector.extract_strided_slice %76 {offsets = [0, 80], sizes = [5, 8], strides = [1, 1]} : vector<10x96xf32> to vector<5x8xf32>
    %122 = arith.truncf %121 : vector<5x8xf32> to vector<5x8xbf16>
    %cst_45 = arith.constant dense<0.000000e+00> : vector<5x5xf32>
    %123 = tpu.matmul %118, %120, %cst_45 {dimension_numbers = #tpu.dot_dimension_numbers<[1], [1], [0], [0], [0, 0, 1, 0], [], []>} : vector<5x8xbf16>, vector<5x8xbf16>, vector<5x5xf32> -> vector<5x5xf32>
    %cst_46 = arith.constant dense<0xFF800000> : vector<5xf32>
    %124 = vector.multi_reduction <maximumf>, %123, %cst_46 [1] : vector<5x5xf32> to vector<5xf32>
    %125 = vector.shape_cast %124 : vector<5xf32> to vector<5x1xf32>
    %126 = vector.broadcast %125 : vector<5x1xf32> to vector<5x5xf32>
    %127 = arith.subf %123, %126 : vector<5x5xf32>
    %128 = math.exp %127 : vector<5x5xf32>
    %cst_47 = arith.constant dense<0.000000e+00> : vector<5xf32>
    %129 = vector.multi_reduction <add>, %128, %cst_47 [1] : vector<5x5xf32> to vector<5xf32>
    %130 = vector.shape_cast %129 : vector<5xf32> to vector<5x1xf32>
    %131 = tpu.reciprocal %130 {approx = true} : vector<5x1xf32> -> vector<5x1xf32>
    %132 = vector.broadcast %131 : vector<5x1xf32> to vector<5x5xf32>
    %133 = arith.mulf %128, %132 : vector<5x5xf32>
    %134 = arith.truncf %133 : vector<5x5xf32> to vector<5x5xbf16>
    %cst_48 = arith.constant dense<0.000000e+00> : vector<5x8xf32>
    %135 = tpu.matmul %134, %122, %cst_48 {dimension_numbers = #tpu.dot_dimension_numbers<[1], [0], [0], [1], [0, 0, 1, 1], [], []>} : vector<5x5xbf16>, vector<5x8xbf16>, vector<5x8xf32> -> vector<5x8xf32>
    %c0_49 = arith.constant 0 : index
    %c16 = arith.constant 16 : index
    %136 = vector.load %arg16[%c0_49, %c16] : memref<10x32xf32, #tpu.memory_space<vmem>>, vector<5x8xf32>
    tpu.vector_store %arg16[%c0_49, %c16], %135 {strides = array<i32>} : memref<10x32xf32, #tpu.memory_space<vmem>>, vector<5x8xf32>,
    %137 = vector.extract_strided_slice %76 {offsets = [0, 24], sizes = [5, 8], strides = [1, 1]} : vector<10x96xf32> to vector<5x8xf32>
    %138 = arith.truncf %137 : vector<5x8xf32> to vector<5x8xbf16>
    %139 = vector.extract_strided_slice %76 {offsets = [0, 56], sizes = [5, 8], strides = [1, 1]} : vector<10x96xf32> to vector<5x8xf32>
    %140 = arith.truncf %139 : vector<5x8xf32> to vector<5x8xbf16>
    %141 = vector.extract_strided_slice %76 {offsets = [0, 88], sizes = [5, 8], strides = [1, 1]} : vector<10x96xf32> to vector<5x8xf32>
    %142 = arith.truncf %141 : vector<5x8xf32> to vector<5x8xbf16>
    %cst_50 = arith.constant dense<0.000000e+00> : vector<5x5xf32>
    %143 = tpu.matmul %138, %140, %cst_50 {dimension_numbers = #tpu.dot_dimension_numbers<[1], [1], [0], [0], [0, 0, 1, 0], [], []>} : vector<5x8xbf16>, vector<5x8xbf16>, vector<5x5xf32> -> vector<5x5xf32>
    %cst_51 = arith.constant dense<0xFF800000> : vector<5xf32>
    %144 = vector.multi_reduction <maximumf>, %143, %cst_51 [1] : vector<5x5xf32> to vector<5xf32>
    %145 = vector.shape_cast %144 : vector<5xf32> to vector<5x1xf32>
    %146 = vector.broadcast %145 : vector<5x1xf32> to vector<5x5xf32>
    %147 = arith.subf %143, %146 : vector<5x5xf32>
    %148 = math.exp %147 : vector<5x5xf32>
    %cst_52 = arith.constant dense<0.000000e+00> : vector<5xf32>
    %149 = vector.multi_reduction <add>, %148, %cst_52 [1] : vector<5x5xf32> to vector<5xf32>
    %150 = vector.shape_cast %149 : vector<5xf32> to vector<5x1xf32>
    %151 = tpu.reciprocal %150 {approx = true} : vector<5x1xf32> -> vector<5x1xf32>
    %152 = vector.broadcast %151 : vector<5x1xf32> to vector<5x5xf32>
    %153 = arith.mulf %148, %152 : vector<5x5xf32>
    %154 = arith.truncf %153 : vector<5x5xf32> to vector<5x5xbf16>
    %cst_53 = arith.constant dense<0.000000e+00> : vector<5x8xf32>
    %155 = tpu.matmul %154, %142, %cst_53 {dimension_numbers = #tpu.dot_dimension_numbers<[1], [0], [0], [1], [0, 0, 1, 1], [], []>} : vector<5x5xbf16>, vector<5x8xbf16>, vector<5x8xf32> -> vector<5x8xf32>
    %c0_54 = arith.constant 0 : index
    %c24 = arith.constant 24 : index
    %156 = vector.load %arg16[%c0_54, %c24] : memref<10x32xf32, #tpu.memory_space<vmem>>, vector<5x8xf32>
    tpu.vector_store %arg16[%c0_54, %c24], %155 {strides = array<i32>} : memref<10x32xf32, #tpu.memory_space<vmem>>, vector<5x8xf32>,
    %157 = vector.extract_strided_slice %76 {offsets = [5, 0], sizes = [5, 8], strides = [1, 1]} : vector<10x96xf32> to vector<5x8xf32>
    %158 = arith.truncf %157 : vector<5x8xf32> to vector<5x8xbf16>
    %159 = vector.extract_strided_slice %76 {offsets = [5, 32], sizes = [5, 8], strides = [1, 1]} : vector<10x96xf32> to vector<5x8xf32>
    %160 = arith.truncf %159 : vector<5x8xf32> to vector<5x8xbf16>
    %161 = vector.extract_strided_slice %76 {offsets = [5, 64], sizes = [5, 8], strides = [1, 1]} : vector<10x96xf32> to vector<5x8xf32>
    %162 = arith.truncf %161 : vector<5x8xf32> to vector<5x8xbf16>
    %cst_55 = arith.constant dense<0.000000e+00> : vector<5x5xf32>
    %163 = tpu.matmul %158, %160, %cst_55 {dimension_numbers = #tpu.dot_dimension_numbers<[1], [1], [0], [0], [0, 0, 1, 0], [], []>} : vector<5x8xbf16>, vector<5x8xbf16>, vector<5x5xf32> -> vector<5x5xf32>
    %cst_56 = arith.constant dense<0xFF800000> : vector<5xf32>
    %164 = vector.multi_reduction <maximumf>, %163, %cst_56 [1] : vector<5x5xf32> to vector<5xf32>
    %165 = vector.shape_cast %164 : vector<5xf32> to vector<5x1xf32>
    %166 = vector.broadcast %165 : vector<5x1xf32> to vector<5x5xf32>
    %167 = arith.subf %163, %166 : vector<5x5xf32>
    %168 = math.exp %167 : vector<5x5xf32>
    %cst_57 = arith.constant dense<0.000000e+00> : vector<5xf32>
    %169 = vector.multi_reduction <add>, %168, %cst_57 [1] : vector<5x5xf32> to vector<5xf32>
    %170 = vector.shape_cast %169 : vector<5xf32> to vector<5x1xf32>
    %171 = tpu.reciprocal %170 {approx = true} : vector<5x1xf32> -> vector<5x1xf32>
    %172 = vector.broadcast %171 : vector<5x1xf32> to vector<5x5xf32>
    %173 = arith.mulf %168, %172 : vector<5x5xf32>
    %174 = arith.truncf %173 : vector<5x5xf32> to vector<5x5xbf16>
    %cst_58 = arith.constant dense<0.000000e+00> : vector<5x8xf32>
    %175 = tpu.matmul %174, %162, %cst_58 {dimension_numbers = #tpu.dot_dimension_numbers<[1], [0], [0], [1], [0, 0, 1, 1], [], []>} : vector<5x5xbf16>, vector<5x8xbf16>, vector<5x8xf32> -> vector<5x8xf32>
    %c5_59 = arith.constant 5 : index
    %c0_60 = arith.constant 0 : index
    %176 = vector.load %arg16[%c5_59, %c0_60] : memref<10x32xf32, #tpu.memory_space<vmem>>, vector<5x8xf32>
    tpu.vector_store %arg16[%c5_59, %c0_60], %175 {strides = array<i32>} : memref<10x32xf32, #tpu.memory_space<vmem>>, vector<5x8xf32>,
    %177 = vector.extract_strided_slice %76 {offsets = [5, 8], sizes = [5, 8], strides = [1, 1]} : vector<10x96xf32> to vector<5x8xf32>
    %178 = arith.truncf %177 : vector<5x8xf32> to vector<5x8xbf16>
    %179 = vector.extract_strided_slice %76 {offsets = [5, 40], sizes = [5, 8], strides = [1, 1]} : vector<10x96xf32> to vector<5x8xf32>
    %180 = arith.truncf %179 : vector<5x8xf32> to vector<5x8xbf16>
    %181 = vector.extract_strided_slice %76 {offsets = [5, 72], sizes = [5, 8], strides = [1, 1]} : vector<10x96xf32> to vector<5x8xf32>
    %182 = arith.truncf %181 : vector<5x8xf32> to vector<5x8xbf16>
    %cst_61 = arith.constant dense<0.000000e+00> : vector<5x5xf32>
    %183 = tpu.matmul %178, %180, %cst_61 {dimension_numbers = #tpu.dot_dimension_numbers<[1], [1], [0], [0], [0, 0, 1, 0], [], []>} : vector<5x8xbf16>, vector<5x8xbf16>, vector<5x5xf32> -> vector<5x5xf32>
    %cst_62 = arith.constant dense<0xFF800000> : vector<5xf32>
    %184 = vector.multi_reduction <maximumf>, %183, %cst_62 [1] : vector<5x5xf32> to vector<5xf32>
    %185 = vector.shape_cast %184 : vector<5xf32> to vector<5x1xf32>
    %186 = vector.broadcast %185 : vector<5x1xf32> to vector<5x5xf32>
    %187 = arith.subf %183, %186 : vector<5x5xf32>
    %188 = math.exp %187 : vector<5x5xf32>
    %cst_63 = arith.constant dense<0.000000e+00> : vector<5xf32>
    %189 = vector.multi_reduction <add>, %188, %cst_63 [1] : vector<5x5xf32> to vector<5xf32>
    %190 = vector.shape_cast %189 : vector<5xf32> to vector<5x1xf32>
    %191 = tpu.reciprocal %190 {approx = true} : vector<5x1xf32> -> vector<5x1xf32>
    %192 = vector.broadcast %191 : vector<5x1xf32> to vector<5x5xf32>
    %193 = arith.mulf %188, %192 : vector<5x5xf32>
    %194 = arith.truncf %193 : vector<5x5xf32> to vector<5x5xbf16>
    %cst_64 = arith.constant dense<0.000000e+00> : vector<5x8xf32>
    %195 = tpu.matmul %194, %182, %cst_64 {dimension_numbers = #tpu.dot_dimension_numbers<[1], [0], [0], [1], [0, 0, 1, 1], [], []>} : vector<5x5xbf16>, vector<5x8xbf16>, vector<5x8xf32> -> vector<5x8xf32>
    %c5_65 = arith.constant 5 : index
    %c8_66 = arith.constant 8 : index
    %196 = vector.load %arg16[%c5_65, %c8_66] : memref<10x32xf32, #tpu.memory_space<vmem>>, vector<5x8xf32>
    tpu.vector_store %arg16[%c5_65, %c8_66], %195 {strides = array<i32>} : memref<10x32xf32, #tpu.memory_space<vmem>>, vector<5x8xf32>,
    %197 = vector.extract_strided_slice %76 {offsets = [5, 16], sizes = [5, 8], strides = [1, 1]} : vector<10x96xf32> to vector<5x8xf32>
    %198 = arith.truncf %197 : vector<5x8xf32> to vector<5x8xbf16>
    %199 = vector.extract_strided_slice %76 {offsets = [5, 48], sizes = [5, 8], strides = [1, 1]} : vector<10x96xf32> to vector<5x8xf32>
    %200 = arith.truncf %199 : vector<5x8xf32> to vector<5x8xbf16>
    %201 = vector.extract_strided_slice %76 {offsets = [5, 80], sizes = [5, 8], strides = [1, 1]} : vector<10x96xf32> to vector<5x8xf32>
    %202 = arith.truncf %201 : vector<5x8xf32> to vector<5x8xbf16>
    %cst_67 = arith.constant dense<0.000000e+00> : vector<5x5xf32>
    %203 = tpu.matmul %198, %200, %cst_67 {dimension_numbers = #tpu.dot_dimension_numbers<[1], [1], [0], [0], [0, 0, 1, 0], [], []>} : vector<5x8xbf16>, vector<5x8xbf16>, vector<5x5xf32> -> vector<5x5xf32>
    %cst_68 = arith.constant dense<0xFF800000> : vector<5xf32>
    %204 = vector.multi_reduction <maximumf>, %203, %cst_68 [1] : vector<5x5xf32> to vector<5xf32>
    %205 = vector.shape_cast %204 : vector<5xf32> to vector<5x1xf32>
    %206 = vector.broadcast %205 : vector<5x1xf32> to vector<5x5xf32>
    %207 = arith.subf %203, %206 : vector<5x5xf32>
    %208 = math.exp %207 : vector<5x5xf32>
    %cst_69 = arith.constant dense<0.000000e+00> : vector<5xf32>
    %209 = vector.multi_reduction <add>, %208, %cst_69 [1] : vector<5x5xf32> to vector<5xf32>
    %210 = vector.shape_cast %209 : vector<5xf32> to vector<5x1xf32>
    %211 = tpu.reciprocal %210 {approx = true} : vector<5x1xf32> -> vector<5x1xf32>
    %212 = vector.broadcast %211 : vector<5x1xf32> to vector<5x5xf32>
    %213 = arith.mulf %208, %212 : vector<5x5xf32>
    %214 = arith.truncf %213 : vector<5x5xf32> to vector<5x5xbf16>
    %cst_70 = arith.constant dense<0.000000e+00> : vector<5x8xf32>
    %215 = tpu.matmul %214, %202, %cst_70 {dimension_numbers = #tpu.dot_dimension_numbers<[1], [0], [0], [1], [0, 0, 1, 1], [], []>} : vector<5x5xbf16>, vector<5x8xbf16>, vector<5x8xf32> -> vector<5x8xf32>
    %c5_71 = arith.constant 5 : index
    %c16_72 = arith.constant 16 : index
    %216 = vector.load %arg16[%c5_71, %c16_72] : memref<10x32xf32, #tpu.memory_space<vmem>>, vector<5x8xf32>
    tpu.vector_store %arg16[%c5_71, %c16_72], %215 {strides = array<i32>} : memref<10x32xf32, #tpu.memory_space<vmem>>, vector<5x8xf32>,
    %217 = vector.extract_strided_slice %76 {offsets = [5, 24], sizes = [5, 8], strides = [1, 1]} : vector<10x96xf32> to vector<5x8xf32>
    %218 = arith.truncf %217 : vector<5x8xf32> to vector<5x8xbf16>
    %219 = vector.extract_strided_slice %76 {offsets = [5, 56], sizes = [5, 8], strides = [1, 1]} : vector<10x96xf32> to vector<5x8xf32>
    %220 = arith.truncf %219 : vector<5x8xf32> to vector<5x8xbf16>
    %221 = vector.extract_strided_slice %76 {offsets = [5, 88], sizes = [5, 8], strides = [1, 1]} : vector<10x96xf32> to vector<5x8xf32>
    %222 = arith.truncf %221 : vector<5x8xf32> to vector<5x8xbf16>
    %cst_73 = arith.constant dense<0.000000e+00> : vector<5x5xf32>
    %223 = tpu.matmul %218, %220, %cst_73 {dimension_numbers = #tpu.dot_dimension_numbers<[1], [1], [0], [0], [0, 0, 1, 0], [], []>} : vector<5x8xbf16>, vector<5x8xbf16>, vector<5x5xf32> -> vector<5x5xf32>
    %cst_74 = arith.constant dense<0xFF800000> : vector<5xf32>
    %224 = vector.multi_reduction <maximumf>, %223, %cst_74 [1] : vector<5x5xf32> to vector<5xf32>
    %225 = vector.shape_cast %224 : vector<5xf32> to vector<5x1xf32>
    %226 = vector.broadcast %225 : vector<5x1xf32> to vector<5x5xf32>
    %227 = arith.subf %223, %226 : vector<5x5xf32>
    %228 = math.exp %227 : vector<5x5xf32>
    %cst_75 = arith.constant dense<0.000000e+00> : vector<5xf32>
    %229 = vector.multi_reduction <add>, %228, %cst_75 [1] : vector<5x5xf32> to vector<5xf32>
    %230 = vector.shape_cast %229 : vector<5xf32> to vector<5x1xf32>
    %231 = tpu.reciprocal %230 {approx = true} : vector<5x1xf32> -> vector<5x1xf32>
    %232 = vector.broadcast %231 : vector<5x1xf32> to vector<5x5xf32>
    %233 = arith.mulf %228, %232 : vector<5x5xf32>
    %234 = arith.truncf %233 : vector<5x5xf32> to vector<5x5xbf16>
    %cst_76 = arith.constant dense<0.000000e+00> : vector<5x8xf32>
    %235 = tpu.matmul %234, %222, %cst_76 {dimension_numbers = #tpu.dot_dimension_numbers<[1], [0], [0], [1], [0, 0, 1, 1], [], []>} : vector<5x5xbf16>, vector<5x8xbf16>, vector<5x8xf32> -> vector<5x8xf32>
    %c5_77 = arith.constant 5 : index
    %c24_78 = arith.constant 24 : index
    %236 = vector.load %arg16[%c5_77, %c24_78] : memref<10x32xf32, #tpu.memory_space<vmem>>, vector<5x8xf32>
    tpu.vector_store %arg16[%c5_77, %c24_78], %235 {strides = array<i32>} : memref<10x32xf32, #tpu.memory_space<vmem>>, vector<5x8xf32>,
    %c0_79 = arith.constant 0 : index
    %c0_80 = arith.constant 0 : index
    %237 = vector.load %arg16[%c0_79, %c0_80] : memref<10x32xf32, #tpu.memory_space<vmem>>, vector<10x32xf32>
    %238 = arith.truncf %237 : vector<10x32xf32> to vector<10x32xbf16>
    %c0_81 = arith.constant 0 : index
    %c0_82 = arith.constant 0 : index
    %c0_83 = arith.constant 0 : index
    %239 = vector.load %arg7[%c0_81, %c0_82, %c0_83] : memref<2x32x32xbf16, #tpu.memory_space<vmem>>, vector<1x32x32xbf16>
    %240 = vector.shape_cast %239 : vector<1x32x32xbf16> to vector<32x32xbf16>
    %cst_84 = arith.constant dense<0.000000e+00> : vector<10x32xf32>
    %241 = tpu.matmul %238, %240, %cst_84 {dimension_numbers = #tpu.dot_dimension_numbers<[1], [0], [0], [1], [0, 0, 1, 1], [], []>} : vector<10x32xbf16>, vector<32x32xbf16>, vector<10x32xf32> -> vector<10x32xf32>
    %c0_85 = arith.constant 0 : index
    %c0_86 = arith.constant 0 : index
    %c0_87 = arith.constant 0 : index
    %242 = vector.load %arg8[%c0_85, %c0_86, %c0_87] : memref<2x1x32xf32, #tpu.memory_space<vmem>>, vector<1x1x32xf32>
    %243 = vector.shape_cast %242 : vector<1x1x32xf32> to vector<1x32xf32>
    %244 = vector.broadcast %243 : vector<1x32xf32> to vector<10x32xf32>
    %245 = arith.addf %241, %244 : vector<10x32xf32>
    %246 = arith.addf %42, %245 : vector<10x32xf32>
    %247 = vector.extract_strided_slice %44 {offsets = [2, 0], sizes = [1, 32], strides = [1, 1]} : vector<4x32xf32> to vector<1x32xf32>
    %248 = vector.extract_strided_slice %44 {offsets = [3, 0], sizes = [1, 32], strides = [1, 1]} : vector<4x32xf32> to vector<1x32xf32>
    %cst_88 = arith.constant dense<0.000000e+00> : vector<10xf32>
    %249 = vector.multi_reduction <add>, %246, %cst_88 [1] : vector<10x32xf32> to vector<10xf32>
    %250 = vector.shape_cast %249 : vector<10xf32> to vector<10x1xf32>
    %cst_89 = arith.constant 3.200000e+01 : f32
    %251 = vector.broadcast %cst_89 : f32 to vector<10x1xf32>
    %252 = arith.divf %250, %251 : vector<10x1xf32>
    %253 = vector.broadcast %252 : vector<10x1xf32> to vector<10x32xf32>
    %254 = arith.subf %246, %253 : vector<10x32xf32>
    %255 = arith.mulf %254, %254 : vector<10x32xf32>
    %cst_90 = arith.constant dense<0.000000e+00> : vector<10xf32>
    %256 = vector.multi_reduction <add>, %255, %cst_90 [1] : vector<10x32xf32> to vector<10xf32>
    %257 = vector.shape_cast %256 : vector<10xf32> to vector<10x1xf32>
    %cst_91 = arith.constant 3.200000e+01 : f32
    %258 = vector.broadcast %cst_91 : f32 to vector<10x1xf32>
    %259 = arith.divf %257, %258 : vector<10x1xf32>
    %260 = vector.broadcast %252 : vector<10x1xf32> to vector<10x32xf32>
    %261 = arith.subf %246, %260 : vector<10x32xf32>
    %cst_92 = arith.constant 9.99999974E-6 : f32
    %262 = vector.broadcast %cst_92 : f32 to vector<10x1xf32>
    %263 = arith.addf %259, %262 : vector<10x1xf32>
    %264 = math.rsqrt %263 : vector<10x1xf32>
    %265 = vector.broadcast %264 : vector<10x1xf32> to vector<10x32xf32>
    %266 = arith.mulf %261, %265 : vector<10x32xf32>
    %267 = vector.broadcast %247 : vector<1x32xf32> to vector<10x32xf32>
    %268 = arith.mulf %266, %267 : vector<10x32xf32>
    %269 = vector.broadcast %248 : vector<1x32xf32> to vector<10x32xf32>
    %270 = arith.addf %268, %269 : vector<10x32xf32>
    %271 = arith.truncf %270 : vector<10x32xf32> to vector<10x32xbf16>
    %c0_93 = arith.constant 0 : index
    %c0_94 = arith.constant 0 : index
    %c0_95 = arith.constant 0 : index
    %272 = vector.load %arg9[%c0_93, %c0_94, %c0_95] : memref<2x32x128xbf16, #tpu.memory_space<vmem>>, vector<1x32x128xbf16>
    %273 = vector.shape_cast %272 : vector<1x32x128xbf16> to vector<32x128xbf16>
    %cst_96 = arith.constant dense<0.000000e+00> : vector<10x128xf32>
    %274 = tpu.matmul %271, %273, %cst_96 {dimension_numbers = #tpu.dot_dimension_numbers<[1], [0], [0], [1], [0, 0, 1, 1], [], []>} : vector<10x32xbf16>, vector<32x128xbf16>, vector<10x128xf32> -> vector<10x128xf32>
    %c0_97 = arith.constant 0 : index
    %c0_98 = arith.constant 0 : index
    %c0_99 = arith.constant 0 : index
    %275 = vector.load %arg10[%c0_97, %c0_98, %c0_99] : memref<2x1x128xf32, #tpu.memory_space<vmem>>, vector<1x1x128xf32>
    %276 = vector.shape_cast %275 : vector<1x1x128xf32> to vector<1x128xf32>
    %277 = vector.broadcast %276 : vector<1x128xf32> to vector<10x128xf32>
    %278 = arith.addf %274, %277 : vector<10x128xf32>
    %cst_100 = arith.constant 1.702000e+00 : f32
    %279 = vector.broadcast %cst_100 : f32 to vector<10x128xf32>
    %280 = arith.mulf %279, %278 : vector<10x128xf32>
    %281 = arith.negf %280 : vector<10x128xf32>
    %282 = math.exp %281 : vector<10x128xf32>
    %cst_101 = arith.constant 1.000000e+00 : f32
    %283 = vector.broadcast %cst_101 : f32 to vector<10x128xf32>
    %284 = arith.addf %283, %282 : vector<10x128xf32>
    %285 = arith.divf %283, %284 : vector<10x128xf32>
    %286 = arith.mulf %278, %285 : vector<10x128xf32>
    %287 = arith.truncf %286 : vector<10x128xf32> to vector<10x128xbf16>
    %c0_102 = arith.constant 0 : index
    %c0_103 = arith.constant 0 : index
    %c0_104 = arith.constant 0 : index
    %288 = vector.load %arg11[%c0_102, %c0_103, %c0_104] : memref<2x128x32xbf16, #tpu.memory_space<vmem>>, vector<1x128x32xbf16>
    %289 = vector.shape_cast %288 : vector<1x128x32xbf16> to vector<128x32xbf16>
    %cst_105 = arith.constant dense<0.000000e+00> : vector<10x32xf32>
    %290 = tpu.matmul %287, %289, %cst_105 {dimension_numbers = #tpu.dot_dimension_numbers<[1], [0], [0], [1], [0, 0, 1, 1], [], []>} : vector<10x128xbf16>, vector<128x32xbf16>, vector<10x32xf32> -> vector<10x32xf32>
    %c0_106 = arith.constant 0 : index
    %c0_107 = arith.constant 0 : index
    %c0_108 = arith.constant 0 : index
    %291 = vector.load %arg12[%c0_106, %c0_107, %c0_108] : memref<2x1x32xf32, #tpu.memory_space<vmem>>, vector<1x1x32xf32>
    %292 = vector.shape_cast %291 : vector<1x1x32xf32> to vector<1x32xf32>
    %293 = vector.broadcast %292 : vector<1x32xf32> to vector<10x32xf32>
    %294 = arith.addf %290, %293 : vector<10x32xf32>
    %295 = arith.addf %246, %294 : vector<10x32xf32>
    %c1_109 = arith.constant 1 : index
    %c0_110 = arith.constant 0 : index
    %c0_111 = arith.constant 0 : index
    %296 = vector.load %arg4[%c1_109, %c0_110, %c0_111] : memref<2x4x32xf32, #tpu.memory_space<vmem>>, vector<1x4x32xf32>
    %297 = vector.shape_cast %296 : vector<1x4x32xf32> to vector<4x32xf32>
    %298 = vector.extract_strided_slice %297 {offsets = [0, 0], sizes = [1, 32], strides = [1, 1]} : vector<4x32xf32> to vector<1x32xf32>
    %299 = vector.extract_strided_slice %297 {offsets = [1, 0], sizes = [1, 32], strides = [1, 1]} : vector<4x32xf32> to vector<1x32xf32>
    %cst_112 = arith.constant dense<0.000000e+00> : vector<10xf32>
    %300 = vector.multi_reduction <add>, %295, %cst_112 [1] : vector<10x32xf32> to vector<10xf32>
    %301 = vector.shape_cast %300 : vector<10xf32> to vector<10x1xf32>
    %cst_113 = arith.constant 3.200000e+01 : f32
    %302 = vector.broadcast %cst_113 : f32 to vector<10x1xf32>
    %303 = arith.divf %301, %302 : vector<10x1xf32>
    %304 = vector.broadcast %303 : vector<10x1xf32> to vector<10x32xf32>
    %305 = arith.subf %295, %304 : vector<10x32xf32>
    %306 = arith.mulf %305, %305 : vector<10x32xf32>
    %cst_114 = arith.constant dense<0.000000e+00> : vector<10xf32>
    %307 = vector.multi_reduction <add>, %306, %cst_114 [1] : vector<10x32xf32> to vector<10xf32>
    %308 = vector.shape_cast %307 : vector<10xf32> to vector<10x1xf32>
    %cst_115 = arith.constant 3.200000e+01 : f32
    %309 = vector.broadcast %cst_115 : f32 to vector<10x1xf32>
    %310 = arith.divf %308, %309 : vector<10x1xf32>
    %311 = vector.broadcast %303 : vector<10x1xf32> to vector<10x32xf32>
    %312 = arith.subf %295, %311 : vector<10x32xf32>
    %cst_116 = arith.constant 9.99999974E-6 : f32
    %313 = vector.broadcast %cst_116 : f32 to vector<10x1xf32>
    %314 = arith.addf %310, %313 : vector<10x1xf32>
    %315 = math.rsqrt %314 : vector<10x1xf32>
    %316 = vector.broadcast %315 : vector<10x1xf32> to vector<10x32xf32>
    %317 = arith.mulf %312, %316 : vector<10x32xf32>
    %318 = vector.broadcast %298 : vector<1x32xf32> to vector<10x32xf32>
    %319 = arith.mulf %317, %318 : vector<10x32xf32>
    %320 = vector.broadcast %299 : vector<1x32xf32> to vector<10x32xf32>
    %321 = arith.addf %319, %320 : vector<10x32xf32>
    %322 = arith.truncf %321 : vector<10x32xf32> to vector<10x32xbf16>
    %c1_117 = arith.constant 1 : index
    %c0_118 = arith.constant 0 : index
    %c0_119 = arith.constant 0 : index
    %323 = vector.load %arg5[%c1_117, %c0_118, %c0_119] : memref<2x32x96xbf16, #tpu.memory_space<vmem>>, vector<1x32x96xbf16>
    %324 = vector.shape_cast %323 : vector<1x32x96xbf16> to vector<32x96xbf16>
    %cst_120 = arith.constant dense<0.000000e+00> : vector<10x96xf32>
    %325 = tpu.matmul %322, %324, %cst_120 {dimension_numbers = #tpu.dot_dimension_numbers<[1], [0], [0], [1], [0, 0, 1, 1], [], []>} : vector<10x32xbf16>, vector<32x96xbf16>, vector<10x96xf32> -> vector<10x96xf32>
    %c1_121 = arith.constant 1 : index
    %c0_122 = arith.constant 0 : index
    %c0_123 = arith.constant 0 : index
    %326 = vector.load %arg6[%c1_121, %c0_122, %c0_123] : memref<2x1x96xf32, #tpu.memory_space<vmem>>, vector<1x1x96xf32>
    %327 = vector.shape_cast %326 : vector<1x1x96xf32> to vector<1x96xf32>
    %328 = vector.broadcast %327 : vector<1x96xf32> to vector<10x96xf32>
    %329 = arith.addf %325, %328 : vector<10x96xf32>
    %330 = vector.extract_strided_slice %329 {offsets = [0, 0], sizes = [5, 8], strides = [1, 1]} : vector<10x96xf32> to vector<5x8xf32>
    %331 = arith.truncf %330 : vector<5x8xf32> to vector<5x8xbf16>
    %332 = vector.extract_strided_slice %329 {offsets = [0, 32], sizes = [5, 8], strides = [1, 1]} : vector<10x96xf32> to vector<5x8xf32>
    %333 = arith.truncf %332 : vector<5x8xf32> to vector<5x8xbf16>
    %334 = vector.extract_strided_slice %329 {offsets = [0, 64], sizes = [5, 8], strides = [1, 1]} : vector<10x96xf32> to vector<5x8xf32>
    %335 = arith.truncf %334 : vector<5x8xf32> to vector<5x8xbf16>
    %cst_124 = arith.constant dense<0.000000e+00> : vector<5x5xf32>
    %336 = tpu.matmul %331, %333, %cst_124 {dimension_numbers = #tpu.dot_dimension_numbers<[1], [1], [0], [0], [0, 0, 1, 0], [], []>} : vector<5x8xbf16>, vector<5x8xbf16>, vector<5x5xf32> -> vector<5x5xf32>
    %cst_125 = arith.constant dense<0xFF800000> : vector<5xf32>
    %337 = vector.multi_reduction <maximumf>, %336, %cst_125 [1] : vector<5x5xf32> to vector<5xf32>
    %338 = vector.shape_cast %337 : vector<5xf32> to vector<5x1xf32>
    %339 = vector.broadcast %338 : vector<5x1xf32> to vector<5x5xf32>
    %340 = arith.subf %336, %339 : vector<5x5xf32>
    %341 = math.exp %340 : vector<5x5xf32>
    %cst_126 = arith.constant dense<0.000000e+00> : vector<5xf32>
    %342 = vector.multi_reduction <add>, %341, %cst_126 [1] : vector<5x5xf32> to vector<5xf32>
    %343 = vector.shape_cast %342 : vector<5xf32> to vector<5x1xf32>
    %344 = tpu.reciprocal %343 {approx = true} : vector<5x1xf32> -> vector<5x1xf32>
    %345 = vector.broadcast %344 : vector<5x1xf32> to vector<5x5xf32>
    %346 = arith.mulf %341, %345 : vector<5x5xf32>
    %347 = arith.truncf %346 : vector<5x5xf32> to vector<5x5xbf16>
    %cst_127 = arith.constant dense<0.000000e+00> : vector<5x8xf32>
    %348 = tpu.matmul %347, %335, %cst_127 {dimension_numbers = #tpu.dot_dimension_numbers<[1], [0], [0], [1], [0, 0, 1, 1], [], []>} : vector<5x5xbf16>, vector<5x8xbf16>, vector<5x8xf32> -> vector<5x8xf32>
    %c0_128 = arith.constant 0 : index
    %c0_129 = arith.constant 0 : index
    %349 = vector.load %arg16[%c0_128, %c0_129] : memref<10x32xf32, #tpu.memory_space<vmem>>, vector<5x8xf32>
    tpu.vector_store %arg16[%c0_128, %c0_129], %348 {strides = array<i32>} : memref<10x32xf32, #tpu.memory_space<vmem>>, vector<5x8xf32>,
    %350 = vector.extract_strided_slice %329 {offsets = [0, 8], sizes = [5, 8], strides = [1, 1]} : vector<10x96xf32> to vector<5x8xf32>
    %351 = arith.truncf %350 : vector<5x8xf32> to vector<5x8xbf16>
    %352 = vector.extract_strided_slice %329 {offsets = [0, 40], sizes = [5, 8], strides = [1, 1]} : vector<10x96xf32> to vector<5x8xf32>
    %353 = arith.truncf %352 : vector<5x8xf32> to vector<5x8xbf16>
    %354 = vector.extract_strided_slice %329 {offsets = [0, 72], sizes = [5, 8], strides = [1, 1]} : vector<10x96xf32> to vector<5x8xf32>
    %355 = arith.truncf %354 : vector<5x8xf32> to vector<5x8xbf16>
    %cst_130 = arith.constant dense<0.000000e+00> : vector<5x5xf32>
    %356 = tpu.matmul %351, %353, %cst_130 {dimension_numbers = #tpu.dot_dimension_numbers<[1], [1], [0], [0], [0, 0, 1, 0], [], []>} : vector<5x8xbf16>, vector<5x8xbf16>, vector<5x5xf32> -> vector<5x5xf32>
    %cst_131 = arith.constant dense<0xFF800000> : vector<5xf32>
    %357 = vector.multi_reduction <maximumf>, %356, %cst_131 [1] : vector<5x5xf32> to vector<5xf32>
    %358 = vector.shape_cast %357 : vector<5xf32> to vector<5x1xf32>
    %359 = vector.broadcast %358 : vector<5x1xf32> to vector<5x5xf32>
    %360 = arith.subf %356, %359 : vector<5x5xf32>
    %361 = math.exp %360 : vector<5x5xf32>
    %cst_132 = arith.constant dense<0.000000e+00> : vector<5xf32>
    %362 = vector.multi_reduction <add>, %361, %cst_132 [1] : vector<5x5xf32> to vector<5xf32>
    %363 = vector.shape_cast %362 : vector<5xf32> to vector<5x1xf32>
    %364 = tpu.reciprocal %363 {approx = true} : vector<5x1xf32> -> vector<5x1xf32>
    %365 = vector.broadcast %364 : vector<5x1xf32> to vector<5x5xf32>
    %366 = arith.mulf %361, %365 : vector<5x5xf32>
    %367 = arith.truncf %366 : vector<5x5xf32> to vector<5x5xbf16>
    %cst_133 = arith.constant dense<0.000000e+00> : vector<5x8xf32>
    %368 = tpu.matmul %367, %355, %cst_133 {dimension_numbers = #tpu.dot_dimension_numbers<[1], [0], [0], [1], [0, 0, 1, 1], [], []>} : vector<5x5xbf16>, vector<5x8xbf16>, vector<5x8xf32> -> vector<5x8xf32>
    %c0_134 = arith.constant 0 : index
    %c8_135 = arith.constant 8 : index
    %369 = vector.load %arg16[%c0_134, %c8_135] : memref<10x32xf32, #tpu.memory_space<vmem>>, vector<5x8xf32>
    tpu.vector_store %arg16[%c0_134, %c8_135], %368 {strides = array<i32>} : memref<10x32xf32, #tpu.memory_space<vmem>>, vector<5x8xf32>,
    %370 = vector.extract_strided_slice %329 {offsets = [0, 16], sizes = [5, 8], strides = [1, 1]} : vector<10x96xf32> to vector<5x8xf32>
    %371 = arith.truncf %370 : vector<5x8xf32> to vector<5x8xbf16>
    %372 = vector.extract_strided_slice %329 {offsets = [0, 48], sizes = [5, 8], strides = [1, 1]} : vector<10x96xf32> to vector<5x8xf32>
    %373 = arith.truncf %372 : vector<5x8xf32> to vector<5x8xbf16>
    %374 = vector.extract_strided_slice %329 {offsets = [0, 80], sizes = [5, 8], strides = [1, 1]} : vector<10x96xf32> to vector<5x8xf32>
    %375 = arith.truncf %374 : vector<5x8xf32> to vector<5x8xbf16>
    %cst_136 = arith.constant dense<0.000000e+00> : vector<5x5xf32>
    %376 = tpu.matmul %371, %373, %cst_136 {dimension_numbers = #tpu.dot_dimension_numbers<[1], [1], [0], [0], [0, 0, 1, 0], [], []>} : vector<5x8xbf16>, vector<5x8xbf16>, vector<5x5xf32> -> vector<5x5xf32>
    %cst_137 = arith.constant dense<0xFF800000> : vector<5xf32>
    %377 = vector.multi_reduction <maximumf>, %376, %cst_137 [1] : vector<5x5xf32> to vector<5xf32>
    %378 = vector.shape_cast %377 : vector<5xf32> to vector<5x1xf32>
    %379 = vector.broadcast %378 : vector<5x1xf32> to vector<5x5xf32>
    %380 = arith.subf %376, %379 : vector<5x5xf32>
    %381 = math.exp %380 : vector<5x5xf32>
    %cst_138 = arith.constant dense<0.000000e+00> : vector<5xf32>
    %382 = vector.multi_reduction <add>, %381, %cst_138 [1] : vector<5x5xf32> to vector<5xf32>
    %383 = vector.shape_cast %382 : vector<5xf32> to vector<5x1xf32>
    %384 = tpu.reciprocal %383 {approx = true} : vector<5x1xf32> -> vector<5x1xf32>
    %385 = vector.broadcast %384 : vector<5x1xf32> to vector<5x5xf32>
    %386 = arith.mulf %381, %385 : vector<5x5xf32>
    %387 = arith.truncf %386 : vector<5x5xf32> to vector<5x5xbf16>
    %cst_139 = arith.constant dense<0.000000e+00> : vector<5x8xf32>
    %388 = tpu.matmul %387, %375, %cst_139 {dimension_numbers = #tpu.dot_dimension_numbers<[1], [0], [0], [1], [0, 0, 1, 1], [], []>} : vector<5x5xbf16>, vector<5x8xbf16>, vector<5x8xf32> -> vector<5x8xf32>
    %c0_140 = arith.constant 0 : index
    %c16_141 = arith.constant 16 : index
    %389 = vector.load %arg16[%c0_140, %c16_141] : memref<10x32xf32, #tpu.memory_space<vmem>>, vector<5x8xf32>
    tpu.vector_store %arg16[%c0_140, %c16_141], %388 {strides = array<i32>} : memref<10x32xf32, #tpu.memory_space<vmem>>, vector<5x8xf32>,
    %390 = vector.extract_strided_slice %329 {offsets = [0, 24], sizes = [5, 8], strides = [1, 1]} : vector<10x96xf32> to vector<5x8xf32>
    %391 = arith.truncf %390 : vector<5x8xf32> to vector<5x8xbf16>
    %392 = vector.extract_strided_slice %329 {offsets = [0, 56], sizes = [5, 8], strides = [1, 1]} : vector<10x96xf32> to vector<5x8xf32>
    %393 = arith.truncf %392 : vector<5x8xf32> to vector<5x8xbf16>
    %394 = vector.extract_strided_slice %329 {offsets = [0, 88], sizes = [5, 8], strides = [1, 1]} : vector<10x96xf32> to vector<5x8xf32>
    %395 = arith.truncf %394 : vector<5x8xf32> to vector<5x8xbf16>
    %cst_142 = arith.constant dense<0.000000e+00> : vector<5x5xf32>
    %396 = tpu.matmul %391, %393, %cst_142 {dimension_numbers = #tpu.dot_dimension_numbers<[1], [1], [0], [0], [0, 0, 1, 0], [], []>} : vector<5x8xbf16>, vector<5x8xbf16>, vector<5x5xf32> -> vector<5x5xf32>
    %cst_143 = arith.constant dense<0xFF800000> : vector<5xf32>
    %397 = vector.multi_reduction <maximumf>, %396, %cst_143 [1] : vector<5x5xf32> to vector<5xf32>
    %398 = vector.shape_cast %397 : vector<5xf32> to vector<5x1xf32>
    %399 = vector.broadcast %398 : vector<5x1xf32> to vector<5x5xf32>
    %400 = arith.subf %396, %399 : vector<5x5xf32>
    %401 = math.exp %400 : vector<5x5xf32>
    %cst_144 = arith.constant dense<0.000000e+00> : vector<5xf32>
    %402 = vector.multi_reduction <add>, %401, %cst_144 [1] : vector<5x5xf32> to vector<5xf32>
    %403 = vector.shape_cast %402 : vector<5xf32> to vector<5x1xf32>
    %404 = tpu.reciprocal %403 {approx = true} : vector<5x1xf32> -> vector<5x1xf32>
    %405 = vector.broadcast %404 : vector<5x1xf32> to vector<5x5xf32>
    %406 = arith.mulf %401, %405 : vector<5x5xf32>
    %407 = arith.truncf %406 : vector<5x5xf32> to vector<5x5xbf16>
    %cst_145 = arith.constant dense<0.000000e+00> : vector<5x8xf32>
    %408 = tpu.matmul %407, %395, %cst_145 {dimension_numbers = #tpu.dot_dimension_numbers<[1], [0], [0], [1], [0, 0, 1, 1], [], []>} : vector<5x5xbf16>, vector<5x8xbf16>, vector<5x8xf32> -> vector<5x8xf32>
    %c0_146 = arith.constant 0 : index
    %c24_147 = arith.constant 24 : index
    %409 = vector.load %arg16[%c0_146, %c24_147] : memref<10x32xf32, #tpu.memory_space<vmem>>, vector<5x8xf32>
    tpu.vector_store %arg16[%c0_146, %c24_147], %408 {strides = array<i32>} : memref<10x32xf32, #tpu.memory_space<vmem>>, vector<5x8xf32>,
    %410 = vector.extract_strided_slice %329 {offsets = [5, 0], sizes = [5, 8], strides = [1, 1]} : vector<10x96xf32> to vector<5x8xf32>
    %411 = arith.truncf %410 : vector<5x8xf32> to vector<5x8xbf16>
    %412 = vector.extract_strided_slice %329 {offsets = [5, 32], sizes = [5, 8], strides = [1, 1]} : vector<10x96xf32> to vector<5x8xf32>
    %413 = arith.truncf %412 : vector<5x8xf32> to vector<5x8xbf16>
    %414 = vector.extract_strided_slice %329 {offsets = [5, 64], sizes = [5, 8], strides = [1, 1]} : vector<10x96xf32> to vector<5x8xf32>
    %415 = arith.truncf %414 : vector<5x8xf32> to vector<5x8xbf16>
    %cst_148 = arith.constant dense<0.000000e+00> : vector<5x5xf32>
    %416 = tpu.matmul %411, %413, %cst_148 {dimension_numbers = #tpu.dot_dimension_numbers<[1], [1], [0], [0], [0, 0, 1, 0], [], []>} : vector<5x8xbf16>, vector<5x8xbf16>, vector<5x5xf32> -> vector<5x5xf32>
    %cst_149 = arith.constant dense<0xFF800000> : vector<5xf32>
    %417 = vector.multi_reduction <maximumf>, %416, %cst_149 [1] : vector<5x5xf32> to vector<5xf32>
    %418 = vector.shape_cast %417 : vector<5xf32> to vector<5x1xf32>
    %419 = vector.broadcast %418 : vector<5x1xf32> to vector<5x5xf32>
    %420 = arith.subf %416, %419 : vector<5x5xf32>
    %421 = math.exp %420 : vector<5x5xf32>
    %cst_150 = arith.constant dense<0.000000e+00> : vector<5xf32>
    %422 = vector.multi_reduction <add>, %421, %cst_150 [1] : vector<5x5xf32> to vector<5xf32>
    %423 = vector.shape_cast %422 : vector<5xf32> to vector<5x1xf32>
    %424 = tpu.reciprocal %423 {approx = true} : vector<5x1xf32> -> vector<5x1xf32>
    %425 = vector.broadcast %424 : vector<5x1xf32> to vector<5x5xf32>
    %426 = arith.mulf %421, %425 : vector<5x5xf32>
    %427 = arith.truncf %426 : vector<5x5xf32> to vector<5x5xbf16>
    %cst_151 = arith.constant dense<0.000000e+00> : vector<5x8xf32>
    %428 = tpu.matmul %427, %415, %cst_151 {dimension_numbers = #tpu.dot_dimension_numbers<[1], [0], [0], [1], [0, 0, 1, 1], [], []>} : vector<5x5xbf16>, vector<5x8xbf16>, vector<5x8xf32> -> vector<5x8xf32>
    %c5_152 = arith.constant 5 : index
    %c0_153 = arith.constant 0 : index
    %429 = vector.load %arg16[%c5_152, %c0_153] : memref<10x32xf32, #tpu.memory_space<vmem>>, vector<5x8xf32>
    tpu.vector_store %arg16[%c5_152, %c0_153], %428 {strides = array<i32>} : memref<10x32xf32, #tpu.memory_space<vmem>>, vector<5x8xf32>,
    %430 = vector.extract_strided_slice %329 {offsets = [5, 8], sizes = [5, 8], strides = [1, 1]} : vector<10x96xf32> to vector<5x8xf32>
    %431 = arith.truncf %430 : vector<5x8xf32> to vector<5x8xbf16>
    %432 = vector.extract_strided_slice %329 {offsets = [5, 40], sizes = [5, 8], strides = [1, 1]} : vector<10x96xf32> to vector<5x8xf32>
    %433 = arith.truncf %432 : vector<5x8xf32> to vector<5x8xbf16>
    %434 = vector.extract_strided_slice %329 {offsets = [5, 72], sizes = [5, 8], strides = [1, 1]} : vector<10x96xf32> to vector<5x8xf32>
    %435 = arith.truncf %434 : vector<5x8xf32> to vector<5x8xbf16>
    %cst_154 = arith.constant dense<0.000000e+00> : vector<5x5xf32>
    %436 = tpu.matmul %431, %433, %cst_154 {dimension_numbers = #tpu.dot_dimension_numbers<[1], [1], [0], [0], [0, 0, 1, 0], [], []>} : vector<5x8xbf16>, vector<5x8xbf16>, vector<5x5xf32> -> vector<5x5xf32>
    %cst_155 = arith.constant dense<0xFF800000> : vector<5xf32>
    %437 = vector.multi_reduction <maximumf>, %436, %cst_155 [1] : vector<5x5xf32> to vector<5xf32>
    %438 = vector.shape_cast %437 : vector<5xf32> to vector<5x1xf32>
    %439 = vector.broadcast %438 : vector<5x1xf32> to vector<5x5xf32>
    %440 = arith.subf %436, %439 : vector<5x5xf32>
    %441 = math.exp %440 : vector<5x5xf32>
    %cst_156 = arith.constant dense<0.000000e+00> : vector<5xf32>
    %442 = vector.multi_reduction <add>, %441, %cst_156 [1] : vector<5x5xf32> to vector<5xf32>
    %443 = vector.shape_cast %442 : vector<5xf32> to vector<5x1xf32>
    %444 = tpu.reciprocal %443 {approx = true} : vector<5x1xf32> -> vector<5x1xf32>
    %445 = vector.broadcast %444 : vector<5x1xf32> to vector<5x5xf32>
    %446 = arith.mulf %441, %445 : vector<5x5xf32>
    %447 = arith.truncf %446 : vector<5x5xf32> to vector<5x5xbf16>
    %cst_157 = arith.constant dense<0.000000e+00> : vector<5x8xf32>
    %448 = tpu.matmul %447, %435, %cst_157 {dimension_numbers = #tpu.dot_dimension_numbers<[1], [0], [0], [1], [0, 0, 1, 1], [], []>} : vector<5x5xbf16>, vector<5x8xbf16>, vector<5x8xf32> -> vector<5x8xf32>
    %c5_158 = arith.constant 5 : index
    %c8_159 = arith.constant 8 : index
    %449 = vector.load %arg16[%c5_158, %c8_159] : memref<10x32xf32, #tpu.memory_space<vmem>>, vector<5x8xf32>
    tpu.vector_store %arg16[%c5_158, %c8_159], %448 {strides = array<i32>} : memref<10x32xf32, #tpu.memory_space<vmem>>, vector<5x8xf32>,
    %450 = vector.extract_strided_slice %329 {offsets = [5, 16], sizes = [5, 8], strides = [1, 1]} : vector<10x96xf32> to vector<5x8xf32>
    %451 = arith.truncf %450 : vector<5x8xf32> to vector<5x8xbf16>
    %452 = vector.extract_strided_slice %329 {offsets = [5, 48], sizes = [5, 8], strides = [1, 1]} : vector<10x96xf32> to vector<5x8xf32>
    %453 = arith.truncf %452 : vector<5x8xf32> to vector<5x8xbf16>
    %454 = vector.extract_strided_slice %329 {offsets = [5, 80], sizes = [5, 8], strides = [1, 1]} : vector<10x96xf32> to vector<5x8xf32>
    %455 = arith.truncf %454 : vector<5x8xf32> to vector<5x8xbf16>
    %cst_160 = arith.constant dense<0.000000e+00> : vector<5x5xf32>
    %456 = tpu.matmul %451, %453, %cst_160 {dimension_numbers = #tpu.dot_dimension_numbers<[1], [1], [0], [0], [0, 0, 1, 0], [], []>} : vector<5x8xbf16>, vector<5x8xbf16>, vector<5x5xf32> -> vector<5x5xf32>
    %cst_161 = arith.constant dense<0xFF800000> : vector<5xf32>
    %457 = vector.multi_reduction <maximumf>, %456, %cst_161 [1] : vector<5x5xf32> to vector<5xf32>
    %458 = vector.shape_cast %457 : vector<5xf32> to vector<5x1xf32>
    %459 = vector.broadcast %458 : vector<5x1xf32> to vector<5x5xf32>
    %460 = arith.subf %456, %459 : vector<5x5xf32>
    %461 = math.exp %460 : vector<5x5xf32>
    %cst_162 = arith.constant dense<0.000000e+00> : vector<5xf32>
    %462 = vector.multi_reduction <add>, %461, %cst_162 [1] : vector<5x5xf32> to vector<5xf32>
    %463 = vector.shape_cast %462 : vector<5xf32> to vector<5x1xf32>
    %464 = tpu.reciprocal %463 {approx = true} : vector<5x1xf32> -> vector<5x1xf32>
    %465 = vector.broadcast %464 : vector<5x1xf32> to vector<5x5xf32>
    %466 = arith.mulf %461, %465 : vector<5x5xf32>
    %467 = arith.truncf %466 : vector<5x5xf32> to vector<5x5xbf16>
    %cst_163 = arith.constant dense<0.000000e+00> : vector<5x8xf32>
    %468 = tpu.matmul %467, %455, %cst_163 {dimension_numbers = #tpu.dot_dimension_numbers<[1], [0], [0], [1], [0, 0, 1, 1], [], []>} : vector<5x5xbf16>, vector<5x8xbf16>, vector<5x8xf32> -> vector<5x8xf32>
    %c5_164 = arith.constant 5 : index
    %c16_165 = arith.constant 16 : index
    %469 = vector.load %arg16[%c5_164, %c16_165] : memref<10x32xf32, #tpu.memory_space<vmem>>, vector<5x8xf32>
    tpu.vector_store %arg16[%c5_164, %c16_165], %468 {strides = array<i32>} : memref<10x32xf32, #tpu.memory_space<vmem>>, vector<5x8xf32>,
    %470 = vector.extract_strided_slice %329 {offsets = [5, 24], sizes = [5, 8], strides = [1, 1]} : vector<10x96xf32> to vector<5x8xf32>
    %471 = arith.truncf %470 : vector<5x8xf32> to vector<5x8xbf16>
    %472 = vector.extract_strided_slice %329 {offsets = [5, 56], sizes = [5, 8], strides = [1, 1]} : vector<10x96xf32> to vector<5x8xf32>
    %473 = arith.truncf %472 : vector<5x8xf32> to vector<5x8xbf16>
    %474 = vector.extract_strided_slice %329 {offsets = [5, 88], sizes = [5, 8], strides = [1, 1]} : vector<10x96xf32> to vector<5x8xf32>
    %475 = arith.truncf %474 : vector<5x8xf32> to vector<5x8xbf16>
    %cst_166 = arith.constant dense<0.000000e+00> : vector<5x5xf32>
    %476 = tpu.matmul %471, %473, %cst_166 {dimension_numbers = #tpu.dot_dimension_numbers<[1], [1], [0], [0], [0, 0, 1, 0], [], []>} : vector<5x8xbf16>, vector<5x8xbf16>, vector<5x5xf32> -> vector<5x5xf32>
    %cst_167 = arith.constant dense<0xFF800000> : vector<5xf32>
    %477 = vector.multi_reduction <maximumf>, %476, %cst_167 [1] : vector<5x5xf32> to vector<5xf32>
    %478 = vector.shape_cast %477 : vector<5xf32> to vector<5x1xf32>
    %479 = vector.broadcast %478 : vector<5x1xf32> to vector<5x5xf32>
    %480 = arith.subf %476, %479 : vector<5x5xf32>
    %481 = math.exp %480 : vector<5x5xf32>
    %cst_168 = arith.constant dense<0.000000e+00> : vector<5xf32>
    %482 = vector.multi_reduction <add>, %481, %cst_168 [1] : vector<5x5xf32> to vector<5xf32>
    %483 = vector.shape_cast %482 : vector<5xf32> to vector<5x1xf32>
    %484 = tpu.reciprocal %483 {approx = true} : vector<5x1xf32> -> vector<5x1xf32>
    %485 = vector.broadcast %484 : vector<5x1xf32> to vector<5x5xf32>
    %486 = arith.mulf %481, %485 : vector<5x5xf32>
    %487 = arith.truncf %486 : vector<5x5xf32> to vector<5x5xbf16>
    %cst_169 = arith.constant dense<0.000000e+00> : vector<5x8xf32>
    %488 = tpu.matmul %487, %475, %cst_169 {dimension_numbers = #tpu.dot_dimension_numbers<[1], [0], [0], [1], [0, 0, 1, 1], [], []>} : vector<5x5xbf16>, vector<5x8xbf16>, vector<5x8xf32> -> vector<5x8xf32>
    %c5_170 = arith.constant 5 : index
    %c24_171 = arith.constant 24 : index
    %489 = vector.load %arg16[%c5_170, %c24_171] : memref<10x32xf32, #tpu.memory_space<vmem>>, vector<5x8xf32>
    tpu.vector_store %arg16[%c5_170, %c24_171], %488 {strides = array<i32>} : memref<10x32xf32, #tpu.memory_space<vmem>>, vector<5x8xf32>,
    %c0_172 = arith.constant 0 : index
    %c0_173 = arith.constant 0 : index
    %490 = vector.load %arg16[%c0_172, %c0_173] : memref<10x32xf32, #tpu.memory_space<vmem>>, vector<10x32xf32>
    %491 = arith.truncf %490 : vector<10x32xf32> to vector<10x32xbf16>
    %c1_174 = arith.constant 1 : index
    %c0_175 = arith.constant 0 : index
    %c0_176 = arith.constant 0 : index
    %492 = vector.load %arg7[%c1_174, %c0_175, %c0_176] : memref<2x32x32xbf16, #tpu.memory_space<vmem>>, vector<1x32x32xbf16>
    %493 = vector.shape_cast %492 : vector<1x32x32xbf16> to vector<32x32xbf16>
    %cst_177 = arith.constant dense<0.000000e+00> : vector<10x32xf32>
    %494 = tpu.matmul %491, %493, %cst_177 {dimension_numbers = #tpu.dot_dimension_numbers<[1], [0], [0], [1], [0, 0, 1, 1], [], []>} : vector<10x32xbf16>, vector<32x32xbf16>, vector<10x32xf32> -> vector<10x32xf32>
    %c1_178 = arith.constant 1 : index
    %c0_179 = arith.constant 0 : index
    %c0_180 = arith.constant 0 : index
    %495 = vector.load %arg8[%c1_178, %c0_179, %c0_180] : memref<2x1x32xf32, #tpu.memory_space<vmem>>, vector<1x1x32xf32>
    %496 = vector.shape_cast %495 : vector<1x1x32xf32> to vector<1x32xf32>
    %497 = vector.broadcast %496 : vector<1x32xf32> to vector<10x32xf32>
    %498 = arith.addf %494, %497 : vector<10x32xf32>
    %499 = arith.addf %295, %498 : vector<10x32xf32>
    %500 = vector.extract_strided_slice %297 {offsets = [2, 0], sizes = [1, 32], strides = [1, 1]} : vector<4x32xf32> to vector<1x32xf32>
    %501 = vector.extract_strided_slice %297 {offsets = [3, 0], sizes = [1, 32], strides = [1, 1]} : vector<4x32xf32> to vector<1x32xf32>
    %cst_181 = arith.constant dense<0.000000e+00> : vector<10xf32>
    %502 = vector.multi_reduction <add>, %499, %cst_181 [1] : vector<10x32xf32> to vector<10xf32>
    %503 = vector.shape_cast %502 : vector<10xf32> to vector<10x1xf32>
    %cst_182 = arith.constant 3.200000e+01 : f32
    %504 = vector.broadcast %cst_182 : f32 to vector<10x1xf32>
    %505 = arith.divf %503, %504 : vector<10x1xf32>
    %506 = vector.broadcast %505 : vector<10x1xf32> to vector<10x32xf32>
    %507 = arith.subf %499, %506 : vector<10x32xf32>
    %508 = arith.mulf %507, %507 : vector<10x32xf32>
    %cst_183 = arith.constant dense<0.000000e+00> : vector<10xf32>
    %509 = vector.multi_reduction <add>, %508, %cst_183 [1] : vector<10x32xf32> to vector<10xf32>
    %510 = vector.shape_cast %509 : vector<10xf32> to vector<10x1xf32>
    %cst_184 = arith.constant 3.200000e+01 : f32
    %511 = vector.broadcast %cst_184 : f32 to vector<10x1xf32>
    %512 = arith.divf %510, %511 : vector<10x1xf32>
    %513 = vector.broadcast %505 : vector<10x1xf32> to vector<10x32xf32>
    %514 = arith.subf %499, %513 : vector<10x32xf32>
    %cst_185 = arith.constant 9.99999974E-6 : f32
    %515 = vector.broadcast %cst_185 : f32 to vector<10x1xf32>
    %516 = arith.addf %512, %515 : vector<10x1xf32>
    %517 = math.rsqrt %516 : vector<10x1xf32>
    %518 = vector.broadcast %517 : vector<10x1xf32> to vector<10x32xf32>
    %519 = arith.mulf %514, %518 : vector<10x32xf32>
    %520 = vector.broadcast %500 : vector<1x32xf32> to vector<10x32xf32>
    %521 = arith.mulf %519, %520 : vector<10x32xf32>
    %522 = vector.broadcast %501 : vector<1x32xf32> to vector<10x32xf32>
    %523 = arith.addf %521, %522 : vector<10x32xf32>
    %524 = arith.truncf %523 : vector<10x32xf32> to vector<10x32xbf16>
    %c1_186 = arith.constant 1 : index
    %c0_187 = arith.constant 0 : index
    %c0_188 = arith.constant 0 : index
    %525 = vector.load %arg9[%c1_186, %c0_187, %c0_188] : memref<2x32x128xbf16, #tpu.memory_space<vmem>>, vector<1x32x128xbf16>
    %526 = vector.shape_cast %525 : vector<1x32x128xbf16> to vector<32x128xbf16>
    %cst_189 = arith.constant dense<0.000000e+00> : vector<10x128xf32>
    %527 = tpu.matmul %524, %526, %cst_189 {dimension_numbers = #tpu.dot_dimension_numbers<[1], [0], [0], [1], [0, 0, 1, 1], [], []>} : vector<10x32xbf16>, vector<32x128xbf16>, vector<10x128xf32> -> vector<10x128xf32>
    %c1_190 = arith.constant 1 : index
    %c0_191 = arith.constant 0 : index
    %c0_192 = arith.constant 0 : index
    %528 = vector.load %arg10[%c1_190, %c0_191, %c0_192] : memref<2x1x128xf32, #tpu.memory_space<vmem>>, vector<1x1x128xf32>
    %529 = vector.shape_cast %528 : vector<1x1x128xf32> to vector<1x128xf32>
    %530 = vector.broadcast %529 : vector<1x128xf32> to vector<10x128xf32>
    %531 = arith.addf %527, %530 : vector<10x128xf32>
    %cst_193 = arith.constant 1.702000e+00 : f32
    %532 = vector.broadcast %cst_193 : f32 to vector<10x128xf32>
    %533 = arith.mulf %532, %531 : vector<10x128xf32>
    %534 = arith.negf %533 : vector<10x128xf32>
    %535 = math.exp %534 : vector<10x128xf32>
    %cst_194 = arith.constant 1.000000e+00 : f32
    %536 = vector.broadcast %cst_194 : f32 to vector<10x128xf32>
    %537 = arith.addf %536, %535 : vector<10x128xf32>
    %538 = arith.divf %536, %537 : vector<10x128xf32>
    %539 = arith.mulf %531, %538 : vector<10x128xf32>
    %540 = arith.truncf %539 : vector<10x128xf32> to vector<10x128xbf16>
    %c1_195 = arith.constant 1 : index
    %c0_196 = arith.constant 0 : index
    %c0_197 = arith.constant 0 : index
    %541 = vector.load %arg11[%c1_195, %c0_196, %c0_197] : memref<2x128x32xbf16, #tpu.memory_space<vmem>>, vector<1x128x32xbf16>
    %542 = vector.shape_cast %541 : vector<1x128x32xbf16> to vector<128x32xbf16>
    %cst_198 = arith.constant dense<0.000000e+00> : vector<10x32xf32>
    %543 = tpu.matmul %540, %542, %cst_198 {dimension_numbers = #tpu.dot_dimension_numbers<[1], [0], [0], [1], [0, 0, 1, 1], [], []>} : vector<10x128xbf16>, vector<128x32xbf16>, vector<10x32xf32> -> vector<10x32xf32>
    %c1_199 = arith.constant 1 : index
    %c0_200 = arith.constant 0 : index
    %c0_201 = arith.constant 0 : index
    %544 = vector.load %arg12[%c1_199, %c0_200, %c0_201] : memref<2x1x32xf32, #tpu.memory_space<vmem>>, vector<1x1x32xf32>
    %545 = vector.shape_cast %544 : vector<1x1x32xf32> to vector<1x32xf32>
    %546 = vector.broadcast %545 : vector<1x32xf32> to vector<10x32xf32>
    %547 = arith.addf %543, %546 : vector<10x32xf32>
    %548 = arith.addf %499, %547 : vector<10x32xf32>
    %549 = vector.extract_strided_slice %548 {offsets = [0, 0], sizes = [1, 32], strides = [1, 1]} : vector<10x32xf32> to vector<1x32xf32>
    %550 = vector.extract_strided_slice %18 {offsets = [2, 0], sizes = [1, 32], strides = [1, 1]} : vector<4x32xf32> to vector<1x32xf32>
    %551 = vector.extract_strided_slice %18 {offsets = [3, 0], sizes = [1, 32], strides = [1, 1]} : vector<4x32xf32> to vector<1x32xf32>
    %cst_202 = arith.constant dense<0.000000e+00> : vector<1xf32>
    %552 = vector.multi_reduction <add>, %549, %cst_202 [1] : vector<1x32xf32> to vector<1xf32>
    %553 = vector.shape_cast %552 : vector<1xf32> to vector<1x1xf32>
    %cst_203 = arith.constant 3.200000e+01 : f32
    %554 = vector.broadcast %cst_203 : f32 to vector<1x1xf32>
    %555 = arith.divf %553, %554 : vector<1x1xf32>
    %556 = vector.broadcast %555 : vector<1x1xf32> to vector<1x32xf32>
    %557 = arith.subf %549, %556 : vector<1x32xf32>
    %558 = arith.mulf %557, %557 : vector<1x32xf32>
    %cst_204 = arith.constant dense<0.000000e+00> : vector<1xf32>
    %559 = vector.multi_reduction <add>, %558, %cst_204 [1] : vector<1x32xf32> to vector<1xf32>
    %560 = vector.shape_cast %559 : vector<1xf32> to vector<1x1xf32>
    %cst_205 = arith.constant 3.200000e+01 : f32
    %561 = vector.broadcast %cst_205 : f32 to vector<1x1xf32>
    %562 = arith.divf %560, %561 : vector<1x1xf32>
    %563 = vector.broadcast %555 : vector<1x1xf32> to vector<1x32xf32>
    %564 = arith.subf %549, %563 : vector<1x32xf32>
    %cst_206 = arith.constant 9.99999974E-6 : f32
    %565 = vector.broadcast %cst_206 : f32 to vector<1x1xf32>
    %566 = arith.addf %562, %565 : vector<1x1xf32>
    %567 = math.rsqrt %566 : vector<1x1xf32>
    %568 = vector.broadcast %567 : vector<1x1xf32> to vector<1x32xf32>
    %569 = arith.mulf %564, %568 : vector<1x32xf32>
    %570 = arith.mulf %569, %550 : vector<1x32xf32>
    %571 = arith.addf %570, %551 : vector<1x32xf32>
    %572 = arith.truncf %571 : vector<1x32xf32> to vector<1x32xbf16>
    %c0_207 = arith.constant 0 : index
    %c0_208 = arith.constant 0 : index
    %573 = vector.load %arg13[%c0_207, %c0_208] : memref<32x16xbf16, #tpu.memory_space<vmem>>, vector<32x16xbf16>
    %cst_209 = arith.constant dense<0.000000e+00> : vector<1x16xf32>
    %574 = tpu.matmul %572, %573, %cst_209 {dimension_numbers = #tpu.dot_dimension_numbers<[1], [0], [0], [1], [0, 0, 1, 1], [], []>} : vector<1x32xbf16>, vector<32x16xbf16>, vector<1x16xf32> -> vector<1x16xf32>
    %c0_210 = arith.constant 0 : index
    %c0_211 = arith.constant 0 : index
    %575 = vector.load %arg14[%c0_210, %c0_211] : memref<2x16xf32, #tpu.memory_space<vmem>>, vector<1x16xf32>
    tpu.vector_store %arg14[%c0_210, %c0_211], %574 {strides = array<i32>} : memref<2x16xf32, #tpu.memory_space<vmem>>, vector<1x16xf32>,
    %576 = vector.extract_strided_slice %548 {offsets = [5, 0], sizes = [1, 32], strides = [1, 1]} : vector<10x32xf32> to vector<1x32xf32>
    %577 = vector.extract_strided_slice %18 {offsets = [2, 0], sizes = [1, 32], strides = [1, 1]} : vector<4x32xf32> to vector<1x32xf32>
    %578 = vector.extract_strided_slice %18 {offsets = [3, 0], sizes = [1, 32], strides = [1, 1]} : vector<4x32xf32> to vector<1x32xf32>
    %cst_212 = arith.constant dense<0.000000e+00> : vector<1xf32>
    %579 = vector.multi_reduction <add>, %576, %cst_212 [1] : vector<1x32xf32> to vector<1xf32>
    %580 = vector.shape_cast %579 : vector<1xf32> to vector<1x1xf32>
    %cst_213 = arith.constant 3.200000e+01 : f32
    %581 = vector.broadcast %cst_213 : f32 to vector<1x1xf32>
    %582 = arith.divf %580, %581 : vector<1x1xf32>
    %583 = vector.broadcast %582 : vector<1x1xf32> to vector<1x32xf32>
    %584 = arith.subf %576, %583 : vector<1x32xf32>
    %585 = arith.mulf %584, %584 : vector<1x32xf32>
    %cst_214 = arith.constant dense<0.000000e+00> : vector<1xf32>
    %586 = vector.multi_reduction <add>, %585, %cst_214 [1] : vector<1x32xf32> to vector<1xf32>
    %587 = vector.shape_cast %586 : vector<1xf32> to vector<1x1xf32>
    %cst_215 = arith.constant 3.200000e+01 : f32
    %588 = vector.broadcast %cst_215 : f32 to vector<1x1xf32>
    %589 = arith.divf %587, %588 : vector<1x1xf32>
    %590 = vector.broadcast %582 : vector<1x1xf32> to vector<1x32xf32>
    %591 = arith.subf %576, %590 : vector<1x32xf32>
    %cst_216 = arith.constant 9.99999974E-6 : f32
    %592 = vector.broadcast %cst_216 : f32 to vector<1x1xf32>
    %593 = arith.addf %589, %592 : vector<1x1xf32>
    %594 = math.rsqrt %593 : vector<1x1xf32>
    %595 = vector.broadcast %594 : vector<1x1xf32> to vector<1x32xf32>
    %596 = arith.mulf %591, %595 : vector<1x32xf32>
    %597 = arith.mulf %596, %577 : vector<1x32xf32>
    %598 = arith.addf %597, %578 : vector<1x32xf32>
    %599 = arith.truncf %598 : vector<1x32xf32> to vector<1x32xbf16>
    %c0_217 = arith.constant 0 : index
    %c0_218 = arith.constant 0 : index
    %600 = vector.load %arg13[%c0_217, %c0_218] : memref<32x16xbf16, #tpu.memory_space<vmem>>, vector<32x16xbf16>
    %cst_219 = arith.constant dense<0.000000e+00> : vector<1x16xf32>
    %601 = tpu.matmul %599, %600, %cst_219 {dimension_numbers = #tpu.dot_dimension_numbers<[1], [0], [0], [1], [0, 0, 1, 1], [], []>} : vector<1x32xbf16>, vector<32x16xbf16>, vector<1x16xf32> -> vector<1x16xf32>
    %c1_220 = arith.constant 1 : index
    %c0_221 = arith.constant 0 : index
    %602 = vector.load %arg14[%c1_220, %c0_221] : memref<2x16xf32, #tpu.memory_space<vmem>>, vector<1x16xf32>
    tpu.vector_store %arg14[%c1_220, %c0_221], %601 {strides = array<i32>} : memref<2x16xf32, #tpu.memory_space<vmem>>, vector<1x16xf32>,
    return
  }
}

</mosaic_0001>

<bundles_post_ra>
// kernel: image_encoder_forward.1
= control target key start
LH: loop header
LB: loop body
LE: loop exit
PB: predicated region body
PF: predicated region fallthrough
CT: control target
= control target key end

     0   :  { %s3186_s0 = inlined_call_operand.vmem [shape: f32[8,192], index: 0, kind: input, shape index: {}]   ;;  %s3187_s1 = inlined_call_operand.vmem [shape: bf16[192,32], index: 1, kind: input, shape index: {}]   ;;  %s3188_s2 = inlined_call_operand.vmem [shape: f32[5,32], index: 2, kind: input, shape index: {}]   ;;  %s3189_s3 = inlined_call_operand.vmem [shape: f32[4,32], index: 3, kind: input, shape index: {}]   ;;  %s3190_s4 = inlined_call_operand.vmem [shape: f32[2,4,32], index: 4, kind: input, shape index: {}]   ;;  %s3191_s5 = inlined_call_operand.vmem [shape: bf16[2,32,96], index: 5, kind: input, shape index: {}]   ;;  %s3192_s6 = inlined_call_operand.vmem [shape: f32[2,1,96], index: 6, kind: input, shape index: {}]   ;;  %s3193_s7 = inlined_call_operand.vmem [shape: bf16[2,32,32], index: 7, kind: input, shape index: {}]   ;;  %s3194_s8 = inlined_call_operand.vmem [shape: f32[2,1,32], index: 8, kind: input, shape index: {}]   ;;  %s3195_s9 = inlined_call_operand.vmem [shape: bf16[2,32,128], index: 9, kind: input, shape index: {}]   ;;  %s3196_s10 = inlined_call_operand.vmem [shape: f32[2,1,128], index: 10, kind: input, shape index: {}]   ;;  %s3197_s11 = inlined_call_operand.vmem [shape: bf16[2,128,32], index: 11, kind: input, shape index: {}]   ;;  %s3198_s12 = inlined_call_operand.vmem [shape: f32[2,1,32], index: 12, kind: input, shape index: {}]   ;;  %s3199_s13 = inlined_call_operand.vmem [shape: bf16[32,16], index: 13, kind: input, shape index: {}]   ;;  %s3200_s14 = inlined_call_operand.hbm [shape: f32[2,16], index: 14, kind: output, shape index: {}]  }
   0x1   :  { %v2348_v0 = vld [vmem:[%s3187_s1 + $0x38] sm:$0xff]  ;;  %v2347_v2 = vld [vmem:[%s3187_s1 + $0x30] sm:$0xff]  ;;  %v2346_v4 = vld [vmem:[%s3187_s1 + $0x28] sm:$0xff] }
   0x2   :  { %v2352_v1 = vld [vmem:[%s3187_s1 + $0x58] sm:$0xff]  ;;  %153 = vmatpush.bf16.msra.mxu0 %v2348_v0  ;;  %v2351_v3 = vld [vmem:[%s3187_s1 + $0x50] sm:$0xff]  ;;  %v2350_v5 = vld [vmem:[%s3187_s1 + $0x48] sm:$0xff] }
   0x3   :  { %170 = vmatpush.bf16.msra.mxu1 %v2352_v1 }
   0x6   :  { %154 = vmatpush.bf16.msra.mxu0 %v2347_v2 }
   0x7   :  { %171 = vmatpush.bf16.msra.mxu1 %v2351_v3 }
   0x8   :  { %19 = vsyncpa [#allocation5], 0  ;;  %v2345_v6 = vld [vmem:[%s3187_s1 + $0x20] sm:$0xff]  ;;  %v50_v8 = vld [vmem:[%s3186_s0 + $0x8] sm:$0xff]  ;;  %vm149_vm0 = vcmask 523264   ;;  %vm3211_vm1 = vcmask 253952  }
   0x9   :  { %v2349_v7 = vld [vmem:[%s3187_s1 + $0x40] sm:$0xff]  ;;  %v2344_v9 = vld [vmem:[%s3187_s1 + $0x18] sm:$0xff]  ;;  %v52_v10 = vpack.c.bf16 %v50_v8, %v50_v8  ;;  %v2343_v11 = vld [vmem:[%s3187_s1 + $0x10] sm:$0xff]  ;;  %vm186_vm2 = vcmask 257024   ;;  %vm192_vm3 = vcmask 261124   ;;  %vm197_vm4 = vcmask 261120  }
   0xa   :  { %155 = vmatpush.bf16.msra.mxu0 %v2346_v4  ;;  %v2342_v12 = vld [vmem:[%s3187_s1 + $0x8] sm:$0xff]  ;;  %v2341_v13 = vld [vmem:[%s3187_s1] sm:$0xff]  ;;  %vm201_vm5 = vcmask 254976   ;;  %v2543_v30 = vmov 32.0   ;;  %s2544_s18 = smov 88   ;;  %s2545_s19 = smov 96  }
   0xb   :  { %172 = vmatpush.bf16.msra.mxu1 %v2350_v5  ;;  %v49_v14 = vld [vmem:[%s3186_s0] sm:$0xff]  ;;  %2410 = vrcp.f32 %v2543_v30  ;;  %s2546_s20 = smov 120   ;;  %s2547_s21 = smov 80  }
   0xc   :  { %v51_v15 = vpack.c.bf16 %v49_v14, %v49_v14  ;;  %v179_v16 = vld [vmem:[%s3188_s2] sm:$0x1f]  ;;  %s2548_s22 = smov 72   ;;  %s2549_s23 = smov 112  }
   0xd   :  { %181 = vst.msk [vmem:[#allocation2] sm:$0x1] %vm3211_vm1, %v179_v16  ;;  %v183_v19 = vrot.slane %v179_v16, 1  ;;  %v189_v20 = vrot.slane %v179_v16, 5  ;;  %v196_v58 = vld [vmem:[%s3189_s3] sm:$0xf] }
   0xe   :  { %156 = vmatpush.bf16.msra.mxu0 %v2345_v6  ;;  %188 = vst.msk [vmem:[#allocation2 + $0x5] sm:$0x1] %vm3211_vm1, %v179_v16  ;;  %v250_v62 = vperm.slane %v196_v58, 0  ;;  %v253_v2 = vperm.slane %v196_v58, 1  ;;  %s2550_s24 = smov 64   ;;  %s2551_s25 = smov 104  }
   0xf   :  { %173 = vmatpush.bf16.msra.mxu1 %v2349_v7  ;;  %s3207_s26 = smov 48   ;;  %s2554_s0 = smov 56  }
  0x10   :  { %s3209_s1 = smov 40   ;;  %s3205_s2 = smov 8  }
  0x11   :  { %v2411_v31 = vpop.eup %2410  ;;  %s3203_s27 = smov 16   ;;  %s3201_s28 = smov 24  }
  0x12   :  { %157 = vmatpush.bf16.msra.mxu0 %v2344_v9  ;;  %2135 = vmatmul.msk.bf16.vlgmr.msra.gmra.mxu1 %vm149_vm0, %v52_v10  ;;  %v206_v32 = vmul.f32 32.0, %v2411_v31  ;;  %vm210_vm6 = vweird.f32 %v2411_v31  ;;  %s2078_s15 = sshll.u32 %s3200_s14, 4  ;;  %s2079_s15 = int_to_ptr.hbm [resolvable:$true] %s2078_s15 }
  0x14   :  { %v207_v33 = vsub.f32 1.0, %v206_v32 }
  0x16   :  { %158 = vmatpush.bf16.msra.mxu0 %v2343_v11  ;;  %v208_v34 = vmul.f32 %v2411_v31, %v207_v33 }
  0x18   :  { %v209_v35 = vadd.f32 %v2411_v31, %v208_v34 }
  0x1a   :  { %159 = vmatpush.bf16.msra.mxu0 %v2342_v12  ;;  %v2684_v36 = vsel %vm210_vm6, %v2411_v31, %v209_v35  ;;  %vm349_vm6 = vcmask 64512  }
  0x1e   :  { %160 = vmatpush.bf16.msra.mxu0 %v2341_v13 }
  0x21   :  { %161 = vmatmul.bf16.vlgmr.msra.gmra.mxu0 %v51_v15 }
  0x8f   :  { %v175_v17 = vpop.f32.mrf.mxu1 }
  0x97   :  { %v177_v18 = vpop.f32.mrf.mxu1 }
  0x9e   :  { %v162_v21 = vpop.f32.mrf.mxu0 }
  0x9f   :  { %v176_v22 = vadd.f32 %v175_v17, %v162_v21 }
  0xa1   :  { %v185_v23 = vadd.f32 %v183_v19, %v176_v22  ;;  %v191_v24 = vadd.f32 %v189_v20, %v176_v22 }
  0xa3   :  { %187 = vst.msk [vmem:[#allocation2 + $0x1] sm:$0xf] %vm186_vm2, %v185_v23 }
  0xa4   :  { %193 = vst.msk [vmem:[#allocation2 + $0x2] sm:$0xf0] %vm192_vm3, %v191_v24  ;;  %v2354_v24 = vld [vmem:[%s3191_s5 + $0x8] sm:$0xff] }
  0xa5   :  { %337 = vmatpush.bf16.msra.mxu2 %v2354_v24 }
  0xa6   :  { %v164_v25 = vpop.f32.mrf.mxu0 }
  0xab   :  { %v194_v26 = vld [vmem:[#allocation2] sm:$0xff]  ;;  %v195_v28 = vld [vmem:[#allocation2 + $0x8] sm:$0x3] }
  0xac   :  { %v198_v27 = vsel %vm197_vm4, %v194_v26, 0.0  ;;  %v202_v29 = vsel %vm201_vm5, %v195_v28, 0.0 }
  0xad   :  { %199 = vadd.xlane.f32.xlu0 %v198_v27 }
  0xb5   :  { %203 = vadd.xlane.f32.xlu0 %v202_v29 }
 0x120   :  { %v200_v37 = vpop.xlane.xlu0 %199 }
 0x121   :  { %v212_v38 = vmul.f32 %v2684_v36, %v200_v37 }
 0x123   :  { %v214_v39 = vsub.f32 %v194_v26, %v212_v38  ;;  %v2353_v26 = vld [vmem:[%s3191_s5] sm:$0xff] }
 0x124   :  { %338 = vmatpush.bf16.msra.mxu2 %v2353_v26 }
 0x125   :  { %v216_v40 = vmul.f32 %v214_v39, %v214_v39 }
 0x127   :  { %v218_v41 = vsel %vm197_vm4, %v216_v40, 0.0 }
 0x128   :  { %219 = vadd.xlane.f32.xlu1 %v218_v41  ;;  %v204_v42 = vpop.xlane.xlu0 %203 }
 0x129   :  { %v213_v43 = vmul.f32 %v2684_v36, %v204_v42 }
 0x12b   :  { %v215_v44 = vsub.f32 %v195_v28, %v213_v43 }
 0x12d   :  { %v217_v45 = vmul.f32 %v215_v44, %v215_v44 }
 0x12f   :  { %v221_v46 = vsel %vm201_vm5, %v217_v45, 0.0 }
 0x130   :  { %222 = vadd.xlane.f32.xlu1 %v221_v46 }
 0x19b   :  { %v220_v47 = vpop.xlane.xlu1 %219 }
 0x19c   :  { %v224_v48 = vmul.f32 %v220_v47, %v2684_v36 }
 0x19e   :  { %v226_v49 = vadd.f32 1e-05, %v224_v48 }
 0x1a0   :  { %2412 = vrsqrt.f32 %v226_v49  ;;  %vm234_vm8 = vweird.f32 %v226_v49 }
 0x1a3   :  { %v223_v50 = vpop.xlane.xlu1 %222 }
 0x1a4   :  { %v225_v51 = vmul.f32 %v223_v50, %v2684_v36 }
 0x1a6   :  { %v2413_v52 = vpop.eup %2412  ;;  %v227_v53 = vadd.f32 1e-05, %v225_v51 }
 0x1a7   :  { %v229_v54 = vmul.f32 %v2413_v52, %v226_v49  ;;  %vm235_vm7 = vweird.f32 %v2413_v52 }
 0x1a8   :  { %2414 = vrsqrt.f32 %v227_v53  ;;  %vm236_vm9 = vmor %vm234_vm8, %vm235_vm7  ;;  %vm244_vm11 = vweird.f32 %v227_v53  ;;  %vm369_vm7 = vcmask 36864   ;;  %vm388_vm8 = vcmask 1041408  }
 0x1a9   :  { %v230_v55 = vmul.f32 %v2413_v52, %v229_v54 }
 0x1ab   :  { %v231_v56 = vmul.f32 0.5, %v230_v55 }
 0x1ad   :  { %v232_v57 = vsub.f32 1.5, %v231_v56 }
 0x1ae   :  { %v2415_v59 = vpop.eup %2414 }
 0x1af   :  { %v233_v60 = vmul.f32 %v2413_v52, %v232_v57  ;;  %v239_v61 = vmul.f32 %v2415_v59, %v227_v53  ;;  %vm245_vm10 = vweird.f32 %v2415_v59  ;;  %v2402_v57 = vld [vmem:[%s3192_s6] ss:$0 sm:$0xff] }
 0x1b0   :  { %vm246_vm12 = vmor %vm244_vm11, %vm245_vm10  ;;  %vm384_vm10 = vcmask 39936   ;;  %vm408_vm11 = vcmask 61440  }
 0x1b1   :  { %v237_v63 = vsel %vm236_vm9, %v2413_v52, %v233_v60  ;;  %v240_v0 = vmul.f32 %v2415_v59, %v239_v61  ;;  %vm389_vm9 = vcmask 1042432  }
 0x1b2   :  { %v248_v1 = vmul.f32 %v237_v63, %v214_v39 }
 0x1b3   :  { %v241_v3 = vmul.f32 0.5, %v240_v0 }
 0x1b4   :  { %v251_v4 = vmul.f32 %v250_v62, %v248_v1 }
 0x1b5   :  { %v242_v5 = vsub.f32 1.5, %v241_v3 }
 0x1b6   :  { %v2695_v6 = vadd.f32 %v253_v2, %v251_v4 }
 0x1b7   :  { %v243_v7 = vmul.f32 %v2415_v59, %v242_v5 }
 0x1b8   :  { %v257_v8 = vsel %vm197_vm4, %v2695_v6, 0.0 }
 0x1b9   :  { %v247_v9 = vsel %vm246_vm12, %v2415_v59, %v243_v7  ;;  %258 = vadd.xlane.f32.xlu2 %v257_v8  ;;  %vm470_vm12 = vcmask 127040  }
 0x1ba   :  { %v249_v10 = vmul.f32 %v247_v9, %v215_v44  ;;  %v2720_v44 = vld [vmem:[%s3190_s4] sm:$0xf] }
 0x1bb   :  { %v301_v47 = vperm.slane %v2720_v44, 0  ;;  %v304_v52 = vperm.slane %v2720_v44, 1 }
 0x1bc   :  { %v252_v11 = vmul.f32 %v250_v62, %v249_v10 }
 0x1be   :  { %v2699_v12 = vadd.f32 %v253_v2, %v252_v11 }
 0x1c0   :  { %v260_v13 = vsel %vm201_vm5, %v2699_v12, 0.0 }
 0x1c1   :  { %261 = vadd.xlane.f32.xlu2 %v260_v13 }
 0x22c   :  { %v259_v14 = vpop.xlane.xlu2 %258 }
 0x22d   :  { %v263_v15 = vmul.f32 %v259_v14, %v2684_v36 }
 0x22f   :  { %v265_v16 = vsub.f32 %v2695_v6, %v263_v15 }
 0x231   :  { %v267_v17 = vmul.f32 %v265_v16, %v265_v16 }
 0x233   :  { %v269_v18 = vsel %vm197_vm4, %v267_v17, 0.0 }
 0x234   :  { %270 = vadd.xlane.f32.xlu0 %v269_v18  ;;  %v262_v19 = vpop.xlane.xlu2 %261 }
 0x235   :  { %v264_v20 = vmul.f32 %v262_v19, %v2684_v36 }
 0x237   :  { %v266_v21 = vsub.f32 %v2699_v12, %v264_v20 }
 0x239   :  { %v268_v22 = vmul.f32 %v266_v21, %v266_v21 }
 0x23b   :  { %v272_v23 = vsel %vm201_vm5, %v268_v22, 0.0 }
 0x23c   :  { %273 = vadd.xlane.f32.xlu1 %v272_v23 }
 0x2a7   :  { %v271_v25 = vpop.xlane.xlu0 %270 }
 0x2a8   :  { %v275_v27 = vmul.f32 %v271_v25, %v2684_v36 }
 0x2aa   :  { %v277_v28 = vadd.f32 1e-05, %v275_v27 }
 0x2ac   :  { %2416 = vrsqrt.f32 %v277_v28  ;;  %vm285_vm14 = vweird.f32 %v277_v28 }
 0x2af   :  { %v274_v29 = vpop.xlane.xlu1 %273 }
 0x2b0   :  { %v276_v30 = vmul.f32 %v274_v29, %v2684_v36 }
 0x2b2   :  { %v2417_v31 = vpop.eup %2416  ;;  %v278_v32 = vadd.f32 1e-05, %v276_v30 }
 0x2b3   :  { %v280_v33 = vmul.f32 %v2417_v31, %v277_v28  ;;  %vm286_vm13 = vweird.f32 %v2417_v31  ;;  %v2552_v28 = vmov 65535  }
 0x2b4   :  { %2418 = vrsqrt.f32 %v278_v32  ;;  %vm287_vm15 = vmor %vm285_vm14, %vm286_vm13  ;;  %vm295_vm2 = vweird.f32 %v278_v32  ;;  %v390_v29 = vsel %vm388_vm8, 4294967295, %v2552_v28  ;;  %vm532_vm13 = vcmask 192640  }
 0x2b5   :  { %v281_v34 = vmul.f32 %v2417_v31, %v280_v33  ;;  %v2766_v30 = vsel %vm389_vm9, %v390_v29, 0  ;;  %vm3212_vm14 = vcmask 258240  }
 0x2b7   :  { %v282_v35 = vmul.f32 0.5, %v281_v34 }
 0x2b9   :  { %v283_v37 = vsub.f32 1.5, %v282_v35 }
 0x2ba   :  { %v2419_v38 = vpop.eup %2418 }
 0x2bb   :  { %v284_v39 = vmul.f32 %v2417_v31, %v283_v37  ;;  %v290_v40 = vmul.f32 %v2419_v38, %v278_v32  ;;  %vm296_vm0 = vweird.f32 %v2419_v38 }
 0x2bc   :  { %vm297_vm3 = vmor %vm295_vm2, %vm296_vm0 }
 0x2bd   :  { %v291_v41 = vmul.f32 %v2419_v38, %v290_v40  ;;  %v288_v42 = vsel %vm287_vm15, %v2417_v31, %v284_v39 }
 0x2be   :  { %v299_v46 = vmul.f32 %v288_v42, %v265_v16 }
 0x2bf   :  { %v292_v43 = vmul.f32 0.5, %v291_v41 }
 0x2c0   :  { %v302_v51 = vmul.f32 %v301_v47, %v299_v46 }
 0x2c1   :  { %v293_v45 = vsub.f32 1.5, %v292_v43 }
 0x2c2   :  { %v305_v54 = vadd.f32 %v304_v52, %v302_v51 }
 0x2c3   :  { %v294_v48 = vmul.f32 %v2419_v38, %v293_v45 }
 0x2c5   :  { %v298_v49 = vsel %vm297_vm3, %v2419_v38, %v294_v48 }
 0x2c6   :  { %v300_v50 = vmul.f32 %v298_v49, %v266_v21 }
 0x2c8   :  { %v303_v53 = vmul.f32 %v301_v47, %v300_v50 }
 0x2ca   :  { %v306_v55 = vadd.f32 %v304_v52, %v303_v53 }
 0x2cc   :  { %v307_v56 = vpack.c.bf16 %v306_v55, %v305_v54 }
 0x2ce   :  { %2144 = vmatmul.msk.bf16.vlgmr.msra.gmra.mxu2 %vm197_vm4, %v307_v56 }
 0x351   :  { %v340_v58 = vpop.f32.mrf.mxu2 }
 0x352   :  { %v341_v59 = vadd.f32 %v2402_v57, %v340_v58 }
 0x354   :  { %v2728_v60 = vpack.c.bf16 %v341_v59, %v341_v59 }
 0x356   :  { %412 = vrot.lane.b32.xlu1 %v2728_v60, %s2544_s18  ;;  %347 = vrot.lane.b32.xlu2 %v2728_v60, %s2545_s19 }
 0x359   :  { %v342_v61 = vpop.f32.mrf.mxu2 }
 0x35a   :  { %v343_v62 = vadd.f32 %v2402_v57, %v342_v61 }
 0x35c   :  { %v596_v63 = vpack.c.bf16 %v343_v62, %v341_v59 }
 0x35e   :  { %410 = vrot.lane.b32.xlu2 %v2728_v60, %s2546_s20  ;;  %v598_v0 = vshrl.u32 %v596_v63, 16  ;;  %v601_v1 = vshll.u32 %v596_v63, 16 }
 0x360   :  { %v600_v2 = vrot.slane %v598_v0, 2  ;;  %v603_v3 = vrot.slane %v601_v1, 3 }
 0x362   :  { %v2740_v4 = vor.u32 %v603_v3, %v600_v2 }
 0x366   :  { %474 = vrot.lane.b32.xlu2 %v2728_v60, %s2547_s21 }
 0x36e   :  { %536 = vrot.lane.b32.xlu2 %v2728_v60, %s2548_s22 }
 0x376   :  { %662 = vrot.lane.b32.xlu2 %v2740_v4, %s2544_s18 }
 0x37e   :  { %721 = vrot.lane.b32.xlu2 %v2740_v4, %s2549_s23 }
 0x3b0   :  { %v348_v5 = vpop.permute.xlu2 %347 }
 0x3b1   :  { %v354_v7 = vsel %vm349_vm6, %v348_v5, 0 }
 0x3b2   :  { %363 = vmatpush.bf16.xpose.msra.mxu3 %v354_v7 }
 0x3b8   :  { %v411_v8 = vpop.permute.xlu2 %410 }
 0x3b9   :  { %2145 = vmatmul.msk.bf16.vlgmr.msra.gmra.mxu3 %vm349_vm6, %v2728_v60 }
 0x3c0   :  { %v475_v9 = vpop.permute.xlu2 %474 }
 0x3c1   :  { %v480_v33 = vsel %vm349_vm6, %v475_v9, 0 }
 0x3c8   :  { %v413_v10 = vpop.permute.xlu1 %412  ;;  %v537_v11 = vpop.permute.xlu2 %536 }
 0x3c9   :  { %v418_v13 = vsel %vm349_vm6, %v413_v10, 0  ;;  %v542_v14 = vsel %vm349_vm6, %v537_v11, 0 }
 0x3ca   :  { %427 = vmatpush.bf16.xpose.msrb.mxu3 %v418_v13  ;;  %551 = vmatpush.bf16.xpose.msrb.mxu0 %v542_v14 }
 0x3d0   :  { %v663_v15 = vpop.permute.xlu2 %662 }
 0x3d1   :  { %v668_v16 = vsel %vm349_vm6, %v663_v15, 0  ;;  %2147 = vmatmul.msk.bf16.vlgmr.msrb.gmra.mxu3 %vm349_vm6, %v411_v8 }
 0x3d2   :  { %677 = vmatpush.bf16.xpose.msra.mxu0 %v668_v16 }
 0x3d8   :  { %v722_v45 = vpop.permute.xlu2 %721 }
 0x43c   :  { %v365_v17 = vpop.f32.mrf.mxu3 }
 0x43d   :  { %v370_v18 = vsel %vm369_vm7, %v365_v17, -inf }
 0x43e   :  { %371 = vmax.xlane.f32.xlu0 %v370_v18 }
 0x444   :  { %v367_v19 = vpop.f32.mrf.mxu3 }
 0x452   :  { %382 = vrot.lane.b32.xlu0 %v2728_v60, %s2550_s24 }
 0x454   :  { %v429_v20 = vpop.f32.mrf.mxu3 }
 0x455   :  { %v433_v21 = vsel %vm369_vm7, %v429_v20, -inf }
 0x456   :  { %434 = vmax.xlane.f32.xlu2 %v433_v21 }
 0x45a   :  { %472 = vrot.lane.b32.xlu0 %v2728_v60, %s2549_s23 }
 0x45c   :  { %v431_v22 = vpop.f32.mrf.mxu3 }
 0x462   :  { %534 = vrot.lane.b32.xlu0 %v2728_v60, %s2551_s25 }
 0x46a   :  { %660 = vrot.lane.b32.xlu0 %v2740_v4, %s2546_s20 }
 0x472   :  { %782 = vrot.lane.b32.xlu0 %v2740_v4, %s2551_s25 }
 0x4b1   :  { %v372_v23 = vpop.xlane.xlu0 %371 }
 0x4b2   :  { %v373_v24 = vsub.f32 %v365_v17, %v372_v23 }
 0x4b4   :  { %v374_v25 = vmul.f32 1.442695, %v373_v24 }
 0x4b6   :  { %2420 = vpow2.f32 %v374_v25 }
 0x4bc   :  { %v2421_v26 = vpop.eup %2420 }
 0x4bd   :  { %v376_v27 = vsel %vm369_vm7, %v2421_v26, 0.0 }
 0x4be   :  { %377 = vadd.xlane.f32.xlu1 %v376_v27 }
 0x4c4   :  { %v383_v31 = vpop.permute.xlu0 %382 }
 0x4c5   :  { %v393_v32 = vand.u32 %v2766_v30, %v383_v31 }
 0x4c7   :  { %402 = vmatpush.bf16.msrb.mxu2 %v393_v32 }
 0x4c9   :  { %v435_v50 = vpop.xlane.xlu2 %434 }
 0x4ca   :  { %v436_v52 = vsub.f32 %v429_v20, %v435_v50 }
 0x4cb   :  { %489 = vmatpush.bf16.xpose.msra.mxu2 %v480_v33 }
 0x4cc   :  { %v473_v34 = vpop.permute.xlu0 %472  ;;  %v437_v55 = vmul.f32 1.442695, %v436_v52 }
 0x4d4   :  { %v535_v35 = vpop.permute.xlu0 %534 }
 0x4d5   :  { %2151 = vmatmul.msk.bf16.vlgmr.msrb.gmra.mxu0 %vm349_vm6, %v535_v35 }
 0x4d7   :  { %605 = vrot.lane.b32.xlu1 %v2740_v4, %s2545_s19 }
 0x4dc   :  { %v661_v37 = vpop.permute.xlu0 %660 }
 0x4df   :  { %723 = vrot.lane.b32.xlu1 %v2740_v4, %s2547_s21 }
 0x4e4   :  { %v783_v56 = vpop.permute.xlu0 %782 }
 0x4e5   :  { %2155 = vmatmul.msk.bf16.vlgmr.msra.gmra.mxu0 %vm349_vm6, %v661_v37 }
 0x4e7   :  { %784 = vrot.lane.b32.xlu1 %v2740_v4, %s2548_s22 }
 0x531   :  { %v378_v38 = vpop.xlane.xlu1 %377 }
 0x532   :  { %2422 = vrcp.f32 %v378_v38 }
 0x533   :  { %2424 = vpow2.f32 %v437_v55 }
 0x538   :  { %v2423_v39 = vpop.eup %2422 }
 0x539   :  { %v380_v40 = vmul.f32 %v2423_v39, %v2421_v26  ;;  %v2788_v59 = vpop.eup %2424 }
 0x53a   :  { %v439_v62 = vsel %vm369_vm7, %v2788_v59, 0.0 }
 0x53b   :  { %v381_v41 = vpack.c.bf16 %v380_v40, %v380_v40 }
 0x53d   :  { %2146 = vmatmul.msk.bf16.vlgmr.msrb.gmra.mxu2 %vm384_vm10, %v381_v41 }
 0x549   :  { %v606_v42 = vpop.permute.xlu1 %605 }
 0x54a   :  { %v611_v43 = vsel %vm349_vm6, %v606_v42, 0 }
 0x54b   :  { %620 = vmatpush.bf16.xpose.msrb.mxu2 %v611_v43 }
 0x54d   :  { %2149 = vmatmul.msk.bf16.vlgmr.msra.gmra.mxu2 %vm349_vm6, %v473_v34 }
 0x551   :  { %v724_v46 = vpop.permute.xlu1 %723 }
 0x552   :  { %v729_v47 = vsel %vm349_vm6, %v724_v46, 0  ;;  %v553_v48 = vpop.f32.mrf.mxu0 }
 0x553   :  { %738 = vmatpush.bf16.xpose.msra.mxu2 %v729_v47  ;;  %v557_v49 = vsel %vm369_vm7, %v553_v48, -inf }
 0x554   :  { %558 = vmax.xlane.f32.xlu0 %v557_v49 }
 0x559   :  { %v785_v51 = vpop.permute.xlu1 %784 }
 0x55a   :  { %v790_v53 = vsel %vm349_vm6, %v785_v51, 0  ;;  %v555_v54 = vpop.f32.mrf.mxu0 }
 0x55b   :  { %799 = vmatpush.bf16.xpose.msrb.mxu0 %v790_v53 }
 0x55d   :  { %2153 = vmatmul.msk.bf16.vlgmr.msrb.gmra.mxu2 %vm349_vm6, %v2740_v4 }
 0x562   :  { %v679_v57 = vpop.f32.mrf.mxu0  ;;  %2159 = vmatmul.msk.bf16.vlgmr.msrb.gmra.mxu0 %vm349_vm6, %v783_v56 }
 0x563   :  { %v683_v58 = vsel %vm369_vm7, %v679_v57, -inf }
 0x564   :  { %684 = vmax.xlane.f32.xlu1 %v683_v58 }
 0x56a   :  { %v681_v61 = vpop.f32.mrf.mxu0 }
 0x56c   :  { %440 = vadd.xlane.f32.xlu1 %v439_v62 }
 0x56d   :  { %2157 = vmatmul.msk.bf16.vlgmr.msra.gmra.mxu2 %vm349_vm6, %v722_v45 }
 0x5c0   :  { %v404_v63 = vpop.f32.mrf.mxu2 }
 0x5c1   :  { %409 = vst.msk [vmem:[#allocation3] sm:$0x1f] %vm408_vm11, %v404_v63 }
 0x5c7   :  { %v559_v5 = vpop.xlane.xlu0 %558 }
 0x5c8   :  { %v406_v0 = vpop.f32.mrf.mxu2  ;;  %v560_v7 = vsub.f32 %v553_v48, %v559_v5 }
 0x5ca   :  { %v561_v11 = vmul.f32 1.442695, %v560_v7 }
 0x5cc   :  { %2426 = vpow2.f32 %v561_v11 }
 0x5d0   :  { %v491_v1 = vpop.f32.mrf.mxu2 }
 0x5d1   :  { %v495_v2 = vsel %vm369_vm7, %v491_v1, -inf }
 0x5d2   :  { %496 = vmax.xlane.f32.xlu1 %v495_v2  ;;  %v2799_v16 = vpop.eup %2426 }
 0x5d3   :  { %v563_v18 = vsel %vm369_vm7, %v2799_v16, 0.0 }
 0x5d7   :  { %v685_v21 = vpop.xlane.xlu1 %684 }
 0x5d8   :  { %v493_v3 = vpop.f32.mrf.mxu2  ;;  %v686_v22 = vsub.f32 %v679_v57, %v685_v21 }
 0x5da   :  { %v687_v23 = vmul.f32 1.442695, %v686_v22 }
 0x5dc   :  { %2428 = vpow2.f32 %v687_v23 }
 0x5df   :  { %v801_v8 = vpop.f32.mrf.mxu0  ;;  %v441_v26 = vpop.xlane.xlu1 %440 }
 0x5e0   :  { %v622_v9 = vpop.f32.mrf.mxu2  ;;  %v805_v10 = vsel %vm369_vm7, %v801_v8, -inf }
 0x5e1   :  { %806 = vmax.xlane.f32.xlu2 %v805_v10  ;;  %v626_v15 = vsel %vm369_vm7, %v622_v9, -inf }
 0x5e2   :  { %v2813_v24 = vpop.eup %2428 }
 0x5e3   :  { %v689_v25 = vsel %vm369_vm7, %v2813_v24, 0.0 }
 0x5e7   :  { %v803_v13 = vpop.f32.mrf.mxu0 }
 0x5e8   :  { %v624_v14 = vpop.f32.mrf.mxu2 }
 0x5e9   :  { %627 = vmax.xlane.f32.xlu2 %v626_v15 }
 0x5eb   :  { %507 = vrot.lane.b32.xlu1 %v2728_v60, %s3207_s26 }
 0x5f0   :  { %v2801_v17 = vpop.f32.mrf.mxu2 }
 0x5f1   :  { %564 = vadd.xlane.f32.xlu2 %v563_v18  ;;  %v744_v19 = vsel %vm369_vm7, %v2801_v17, -inf }
 0x5f2   :  { %745 = vmax.xlane.f32.xlu0 %v744_v19 }
 0x5f3   :  { %638 = vrot.lane.b32.xlu1 %v2740_v4, %s2550_s24 }
 0x5f8   :  { %v742_v20 = vpop.f32.mrf.mxu2 }
 0x606   :  { %445 = vrot.lane.b32.xlu0 %v2728_v60, %s2554_s0 }
 0x609   :  { %569 = vrot.lane.b32.xlu2 %v2728_v60, %s3209_s1 }
 0x61d   :  { %690 = vadd.xlane.f32.xlu1 %v689_v25 }
 0x645   :  { %v497_v27 = vpop.xlane.xlu1 %496 }
 0x646   :  { %v498_v28 = vsub.f32 %v491_v1, %v497_v27 }
 0x648   :  { %v499_v29 = vmul.f32 1.442695, %v498_v28 }
 0x64a   :  { %2430 = vpow2.f32 %v499_v29 }
 0x650   :  { %v2431_v31 = vpop.eup %2430 }
 0x651   :  { %v501_v32 = vsel %vm369_vm7, %v2431_v31, 0.0 }
 0x652   :  { %502 = vadd.xlane.f32.xlu2 %v501_v32 }
 0x654   :  { %v807_v33 = vpop.xlane.xlu2 %806 }
 0x655   :  { %v808_v60 = vsub.f32 %v801_v8, %v807_v33 }
 0x657   :  { %v809_v34 = vmul.f32 1.442695, %v808_v60 }
 0x659   :  { %2432 = vpow2.f32 %v809_v34 }
 0x65c   :  { %v628_v35 = vpop.xlane.xlu2 %627 }
 0x65d   :  { %v629_v37 = vsub.f32 %v622_v9, %v628_v35  ;;  %v508_v38 = vpop.permute.xlu1 %507 }
 0x65e   :  { %v513_v39 = vand.u32 %v508_v38, %v2766_v30 }
 0x65f   :  { %v2819_v40 = vpop.eup %2432  ;;  %v630_v41 = vmul.f32 1.442695, %v629_v37 }
 0x660   :  { %522 = vmatpush.bf16.msra.mxu3 %v513_v39  ;;  %v811_v42 = vsel %vm369_vm7, %v2819_v40, 0.0 }
 0x661   :  { %2434 = vpow2.f32 %v630_v41  ;;  %812 = vadd.xlane.f32.xlu1 %v811_v42 }
 0x662   :  { %2436 = vrcp.f32 %v441_v26 }
 0x664   :  { %v565_v48 = vpop.xlane.xlu2 %564 }
 0x665   :  { %v639_v43 = vpop.permute.xlu1 %638  ;;  %v746_v49 = vpop.xlane.xlu0 %745  ;;  %2438 = vrcp.f32 %v565_v48  ;;  %v2356_v48 = vld [vmem:[%s3193_s7 + $0x8] sm:$0xff] }
 0x666   :  { %v644_v45 = vand.u32 %v639_v43, %v2766_v30  ;;  %v747_v57 = vsub.f32 %v2801_v17, %v746_v49  ;;  %875 = vmatpush.bf16.msrb.mxu2 %v2356_v48  ;;  %v2355_v49 = vld [vmem:[%s3193_s7] sm:$0xff]  ;;  %v2362_v48 = vld [vmem:[%s3197_s11 + $0x18] sm:$0xff] }
 0x667   :  { %v2435_v46 = vpop.eup %2434 }
 0x668   :  { %653 = vmatpush.bf16.msrb.mxu3 %v644_v45  ;;  %v632_v47 = vsel %vm369_vm7, %v2435_v46, 0.0  ;;  %v2437_v50 = vpop.eup %2436  ;;  %v748_v61 = vmul.f32 1.442695, %v747_v57 }
 0x669   :  { %633 = vadd.xlane.f32.xlu0 %v632_v47  ;;  %v443_v52 = vmul.f32 %v2437_v50, %v2788_v59 }
 0x66a   :  { %695 = vrot.lane.b32.xlu2 %v2740_v4, %s2554_s0  ;;  %2440 = vpow2.f32 %v748_v61  ;;  %876 = vmatpush.bf16.msrb.mxu2 %v2355_v49  ;;  %v2404_v49 = vld [vmem:[%s3196_s10] ss:$0 sm:$0xff] }
 0x66b   :  { %v444_v56 = vpack.c.bf16 %v443_v52, %v443_v52  ;;  %v2439_v58 = vpop.eup %2438 }
 0x66c   :  { %v570_v51 = vpop.permute.xlu2 %569  ;;  %v567_v59 = vmul.f32 %v2439_v58, %v2799_v16 }
 0x66d   :  { %v575_v55 = vand.u32 %v570_v51, %v2766_v30 }
 0x66e   :  { %v568_v62 = vpack.c.bf16 %v567_v59, %v567_v59 }
 0x670   :  { %v2441_v63 = vpop.eup %2440 }
 0x671   :  { %v750_v0 = vsel %vm369_vm7, %v2441_v63, 0.0 }
 0x678   :  { %v446_v53 = vpop.permute.xlu0 %445 }
 0x679   :  { %v451_v54 = vand.u32 %v446_v53, %v2766_v30 }
 0x67b   :  { %460 = vmatpush.bf16.msrb.mxu1 %v451_v54 }
 0x67d   :  { %756 = vrot.lane.b32.xlu0 %v2740_v4, %s3207_s26 }
 0x67e   :  { %2148 = vmatmul.msk.bf16.vlgmr.msrb.gmra.mxu1 %vm384_vm10, %v444_v56  ;;  %v2403_v56 = vld [vmem:[%s3194_s8] ss:$0 sm:$0xff] }
 0x67f   :  { %584 = vmatpush.bf16.msra.mxu1 %v575_v55 }
 0x685   :  { %817 = vrot.lane.b32.xlu0 %v2740_v4, %s3209_s1 }
 0x68e   :  { %2152 = vmatmul.msk.bf16.vlgmr.msra.gmra.mxu1 %vm384_vm10, %v568_v62 }
 0x690   :  { %v691_v1 = vpop.xlane.xlu1 %690 }
 0x691   :  { %2442 = vrcp.f32 %v691_v1 }
 0x693   :  { %751 = vadd.xlane.f32.xlu2 %v750_v0 }
 0x697   :  { %v2443_v3 = vpop.eup %2442 }
 0x698   :  { %v693_v7 = vmul.f32 %v2443_v3, %v2813_v24 }
 0x69a   :  { %v694_v11 = vpack.c.bf16 %v693_v7, %v693_v7 }
 0x6c5   :  { %v503_v2 = vpop.xlane.xlu2 %502 }
 0x6c6   :  { %2444 = vrcp.f32 %v503_v2 }
 0x6cc   :  { %v2445_v5 = vpop.eup %2444 }
 0x6cd   :  { %v505_v8 = vmul.f32 %v2445_v5, %v2431_v31  ;;  %v696_v4 = vpop.permute.xlu2 %695 }
 0x6ce   :  { %v701_v9 = vand.u32 %v696_v4, %v2766_v30 }
 0x6cf   :  { %v506_v10 = vpack.c.bf16 %v505_v8, %v505_v8 }
 0x6d0   :  { %710 = vmatpush.bf16.msrb.mxu1 %v701_v9 }
 0x6d1   :  { %2150 = vmatmul.msk.bf16.vlgmr.msra.gmra.mxu3 %vm384_vm10, %v506_v10 }
 0x6d3   :  { %2156 = vmatmul.msk.bf16.vlgmr.msrb.gmra.mxu1 %vm384_vm10, %v694_v11  ;;  %v2358_v11 = vld [vmem:[%s3195_s9 + $0x8] sm:$0xff] }
 0x6d4   :  { %v813_v17 = vpop.xlane.xlu1 %812 }
 0x6dc   :  { %v634_v13 = vpop.xlane.xlu0 %633 }
 0x6dd   :  { %2446 = vrcp.f32 %v634_v13 }
 0x6de   :  { %2448 = vrcp.f32 %v813_v17 }
 0x6e3   :  { %v2447_v14 = vpop.eup %2446 }
 0x6e4   :  { %v636_v15 = vmul.f32 %v2447_v14, %v2435_v46  ;;  %v2449_v20 = vpop.eup %2448 }
 0x6e5   :  { %v815_v21 = vmul.f32 %v2449_v20, %v2819_v40 }
 0x6e6   :  { %v637_v16 = vpack.c.bf16 %v636_v15, %v636_v15  ;;  %v2357_v15 = vld [vmem:[%s3195_s9] sm:$0xff] }
 0x6e7   :  { %v816_v24 = vpack.c.bf16 %v815_v21, %v815_v21 }
 0x6e8   :  { %2154 = vmatmul.msk.bf16.vlgmr.msrb.gmra.mxu3 %vm384_vm10, %v637_v16 }
 0x6ef   :  { %v757_v18 = vpop.permute.xlu0 %756 }
 0x6f0   :  { %v762_v19 = vand.u32 %v757_v18, %v2766_v30 }
 0x6f2   :  { %771 = vmatpush.bf16.msra.mxu3 %v762_v19 }
 0x6f6   :  { %965 = vmatpush.bf16.msrb.mxu3 %v2358_v11 }
 0x6f7   :  { %v818_v22 = vpop.permute.xlu0 %817 }
 0x6f8   :  { %v823_v23 = vand.u32 %v818_v22, %v2766_v30 }
 0x6fa   :  { %832 = vmatpush.bf16.msra.mxu1 %v823_v23  ;;  %966 = vmatpush.bf16.msrb.mxu3 %v2357_v15 }
 0x6fb   :  { %v462_v25 = vpop.f32.mrf.mxu1 }
 0x6fc   :  { %467 = vrot.lane.b32.xlu1 %v462_v25, %s3205_s2 }
 0x6fd   :  { %2160 = vmatmul.msk.bf16.vlgmr.msra.gmra.mxu1 %vm384_vm10, %v816_v24 }
 0x703   :  { %v464_v26 = vpop.f32.mrf.mxu1 }
 0x706   :  { %v752_v27 = vpop.xlane.xlu2 %751 }
 0x707   :  { %2450 = vrcp.f32 %v752_v27 }
 0x70b   :  { %v586_v28 = vpop.f32.mrf.mxu1 }
 0x70d   :  { %v2451_v29 = vpop.eup %2450 }
 0x70e   :  { %v754_v31 = vmul.f32 %v2451_v29, %v2441_v63 }
 0x710   :  { %v755_v32 = vpack.c.bf16 %v754_v31, %v754_v31 }
 0x712   :  { %2158 = vmatmul.msk.bf16.vlgmr.msra.gmra.mxu3 %vm384_vm10, %v755_v32 }
 0x713   :  { %v588_v33 = vpop.f32.mrf.mxu1 }
 0x714   :  { %v929_v33 = vperm.slane %v2720_v44, 2 }
 0x750   :  { %v712_v60 = vpop.f32.mrf.mxu1 }
 0x751   :  { %717 = vrot.lane.b32.xlu0 %v712_v60, %s3205_s2 }
 0x754   :  { %v524_v34 = vpop.f32.mrf.mxu3 }
 0x755   :  { %529 = vrot.lane.b32.xlu2 %v524_v34, %s3203_s27 }
 0x758   :  { %v714_v35 = vpop.f32.mrf.mxu1 }
 0x75c   :  { %v526_v37 = vpop.f32.mrf.mxu3 }
 0x75d   :  { %v932_v37 = vperm.slane %v2720_v44, 3  ;;  %v2364_v44 = vld [vmem:[%s3197_s11 + $0x28] sm:$0xff] }
 0x76b   :  { %v655_v38 = vpop.f32.mrf.mxu3 }
 0x76c   :  { %659 = vst.msk [vmem:[#allocation3 + $0x5] sm:$0x1f] %vm408_vm11, %v655_v38 }
 0x76e   :  { %v468_v39 = vpop.permute.xlu1 %467 }
 0x76f   :  { %471 = vst.msk [vmem:[#allocation3] sm:$0x1f] %vm470_vm12, %v468_v39 }
 0x773   :  { %v657_v40 = vpop.f32.mrf.mxu3 }
 0x77a   :  { %v834_v41 = vpop.f32.mrf.mxu1 }
 0x77b   :  { %839 = vrot.lane.b32.xlu1 %v834_v41, %s3201_s28 }
 0x782   :  { %v836_v42 = vpop.f32.mrf.mxu1 }
 0x795   :  { %v773_v43 = vpop.f32.mrf.mxu3 }
 0x796   :  { %778 = vrot.lane.b32.xlu0 %v773_v43, %s3203_s27 }
 0x79d   :  { %v775_v45 = vpop.f32.mrf.mxu3 }
 0x79e   :  { %591 = vrot.lane.b32.xlu0 %v586_v28, %s3201_s28  ;;  %v2366_v45 = vld [vmem:[%s3197_s11 + $0x38] sm:$0xff] }
 0x79f   :  { %1084 = vmatpush.bf16.msra.mxu0 %v2366_v45 }
 0x7af   :  { %v530_v46 = vpop.permute.xlu2 %529 }
 0x7b0   :  { %533 = vst.msk [vmem:[#allocation3] sm:$0x1f] %vm532_vm13, %v530_v46  ;;  %v2365_v46 = vld [vmem:[%s3197_s11 + $0x30] sm:$0xff] }
 0x7b1   :  { %1085 = vmatpush.bf16.msra.mxu0 %v2365_v46  ;;  %v2368_v46 = vld [vmem:[%s3191_s5 + $0x18] sm:$0xff] }
 0x7b2   :  { %1184 = vmatpush.bf16.msrb.mxu1 %v2368_v46 }
 0x7b5   :  { %1086 = vmatpush.bf16.msra.mxu0 %v2364_v44 }
 0x7c3   :  { %v718_v47 = vpop.permute.xlu0 %717 }
 0x7c4   :  { %720 = vst.msk [vmem:[#allocation3 + $0x5] sm:$0x1f] %vm470_vm12, %v718_v47  ;;  %v2363_v47 = vld [vmem:[%s3197_s11 + $0x20] sm:$0xff] }
 0x7c5   :  { %1087 = vmatpush.bf16.msra.mxu0 %v2363_v47 }
 0x7c9   :  { %1088 = vmatpush.bf16.msra.mxu0 %v2362_v48  ;;  %v2367_v48 = vld [vmem:[%s3191_s5 + $0x10] sm:$0xff] }
 0x7ca   :  { %1185 = vmatpush.bf16.msrb.mxu1 %v2367_v48 }
 0x7ed   :  { %v840_v51 = vpop.permute.xlu1 %839 }
 0x808   :  { %v779_v50 = vpop.permute.xlu0 %778 }
 0x809   :  { %781 = vst.msk [vmem:[#allocation3 + $0x5] sm:$0x1f] %vm532_vm13, %v779_v50 }
 0x80a   :  { %842 = vst.msk [vmem:[#allocation3 + $0x5] sm:$0x1f] %vm3212_vm14, %v840_v51  ;;  %v2361_v51 = vld [vmem:[%s3197_s11 + $0x10] sm:$0xff] }
 0x80b   :  { %1089 = vmatpush.bf16.msra.mxu0 %v2361_v51 }
 0x810   :  { %v592_v52 = vpop.permute.xlu0 %591 }
 0x811   :  { %595 = vst.msk [vmem:[#allocation3] sm:$0x1f] %vm3212_vm14, %v592_v52  ;;  %v844_v54 = vld [vmem:[#allocation3 + $0x8] sm:$0x3] }
 0x818   :  { %v843_v53 = vld [vmem:[#allocation3] sm:$0xff] }
 0x819   :  { %v845_v55 = vpack.c.bf16 %v844_v54, %v843_v53  ;;  %v2360_v54 = vld [vmem:[%s3197_s11 + $0x8] sm:$0xff] }
 0x81a   :  { %1090 = vmatpush.bf16.msra.mxu0 %v2360_v54 }
 0x81b   :  { %2169 = vmatmul.msk.bf16.vlgmr.msrb.gmra.mxu2 %vm197_vm4, %v845_v55 }
 0x89e   :  { %v878_v57 = vpop.f32.mrf.mxu2 }
 0x89f   :  { %v879_v58 = vadd.f32 %v2403_v56, %v878_v57  ;;  %v2359_v57 = vld [vmem:[%s3197_s11] sm:$0xff] }
 0x8a0   :  { %1091 = vmatpush.bf16.msra.mxu0 %v2359_v57 }
 0x8a1   :  { %v2873_v61 = vadd.f32 %v879_v58, %v2695_v6 }
 0x8a3   :  { %v885_v59 = vsel %vm197_vm4, %v2873_v61, 0.0 }
 0x8a4   :  { %886 = vadd.xlane.f32.xlu0 %v885_v59 }
 0x8a6   :  { %v880_v62 = vpop.f32.mrf.mxu2 }
 0x8a7   :  { %v881_v63 = vadd.f32 %v2403_v56, %v880_v62 }
 0x8a9   :  { %v2878_v0 = vadd.f32 %v881_v63, %v2699_v12 }
 0x8ab   :  { %v888_v1 = vsel %vm201_vm5, %v2878_v0, 0.0 }
 0x8ac   :  { %889 = vadd.xlane.f32.xlu2 %v888_v1 }
 0x917   :  { %v887_v2 = vpop.xlane.xlu0 %886 }
 0x918   :  { %v891_v3 = vmul.f32 %v887_v2, %v2684_v36 }
 0x91a   :  { %v893_v5 = vsub.f32 %v2873_v61, %v891_v3 }
 0x91c   :  { %v895_v6 = vmul.f32 %v893_v5, %v893_v5 }
 0x91e   :  { %v897_v7 = vsel %vm197_vm4, %v895_v6, 0.0 }
 0x91f   :  { %v890_v8 = vpop.xlane.xlu2 %889  ;;  %898 = vadd.xlane.f32.xlu1 %v897_v7 }
 0x920   :  { %v892_v4 = vmul.f32 %v890_v8, %v2684_v36 }
 0x922   :  { %v894_v9 = vsub.f32 %v2878_v0, %v892_v4 }
 0x924   :  { %v896_v12 = vmul.f32 %v894_v9, %v894_v9 }
 0x926   :  { %v900_v10 = vsel %vm201_vm5, %v896_v12, 0.0 }
 0x927   :  { %901 = vadd.xlane.f32.xlu0 %v900_v10 }
 0x992   :  { %v899_v13 = vpop.xlane.xlu1 %898 }
 0x993   :  { %v903_v14 = vmul.f32 %v899_v13, %v2684_v36 }
 0x995   :  { %v905_v16 = vadd.f32 1e-05, %v903_v14 }
 0x997   :  { %2452 = vrsqrt.f32 %v905_v16  ;;  %vm913_vm0 = vweird.f32 %v905_v16 }
 0x99a   :  { %v902_v17 = vpop.xlane.xlu0 %901 }
 0x99b   :  { %v904_v18 = vmul.f32 %v902_v17, %v2684_v36 }
 0x99d   :  { %v2453_v19 = vpop.eup %2452  ;;  %v906_v20 = vadd.f32 1e-05, %v904_v18 }
 0x99e   :  { %v908_v21 = vmul.f32 %v2453_v19, %v905_v16  ;;  %vm914_vm15 = vweird.f32 %v2453_v19 }
 0x99f   :  { %2454 = vrsqrt.f32 %v906_v20  ;;  %vm915_vm2 = vmor %vm913_vm0, %vm914_vm15  ;;  %vm923_vm8 = vweird.f32 %v906_v20 }
 0x9a0   :  { %v909_v22 = vmul.f32 %v2453_v19, %v908_v21 }
 0x9a2   :  { %v910_v23 = vmul.f32 0.5, %v909_v22 }
 0x9a4   :  { %v911_v24 = vsub.f32 1.5, %v910_v23 }
 0x9a5   :  { %v2455_v25 = vpop.eup %2454 }
 0x9a6   :  { %v912_v26 = vmul.f32 %v2453_v19, %v911_v24  ;;  %v918_v27 = vmul.f32 %v2455_v25, %v906_v20  ;;  %vm924_vm3 = vweird.f32 %v2455_v25 }
 0x9a7   :  { %vm925_vm9 = vmor %vm923_vm8, %vm924_vm3 }
 0x9a8   :  { %v919_v28 = vmul.f32 %v2455_v25, %v918_v27  ;;  %v916_v29 = vsel %vm915_vm2, %v2453_v19, %v912_v26  ;;  %v2405_v27 = vld [vmem:[%s3198_s12] ss:$0 sm:$0xff] }
 0x9a9   :  { %v927_v60 = vmul.f32 %v916_v29, %v893_v5 }
 0x9aa   :  { %v920_v31 = vmul.f32 0.5, %v919_v28 }
 0x9ab   :  { %v930_v38 = vmul.f32 %v929_v33, %v927_v60 }
 0x9ac   :  { %v921_v32 = vsub.f32 1.5, %v920_v31 }
 0x9ad   :  { %v933_v41 = vadd.f32 %v932_v37, %v930_v38 }
 0x9ae   :  { %v922_v34 = vmul.f32 %v2455_v25, %v921_v32 }
 0x9b0   :  { %v926_v35 = vsel %vm925_vm9, %v2455_v25, %v922_v34 }
 0x9b1   :  { %v928_v39 = vmul.f32 %v926_v35, %v894_v9 }
 0x9b3   :  { %v931_v40 = vmul.f32 %v929_v33, %v928_v39 }
 0x9b5   :  { %v934_v42 = vadd.f32 %v932_v37, %v931_v40 }
 0x9b7   :  { %v935_v43 = vpack.c.bf16 %v934_v42, %v933_v41 }
 0x9b9   :  { %2178 = vmatmul.msk.bf16.vlgmr.msrb.gmra.mxu3 %vm197_vm4, %v935_v43 }
 0xa3c   :  { %v968_v50 = vpop.f32.mrf.mxu3 }
 0xa3d   :  { %v969_v52 = vadd.f32 %v2404_v49, %v968_v50 }
 0xa3f   :  { %v2179_v53 = vmul.f32 -1.702, %v969_v52 }
 0xa41   :  { %v977_v55 = vmul.f32 1.442695, %v2179_v53 }
 0xa43   :  { %2456 = vpow2.f32 %v977_v55 }
 0xa44   :  { %v970_v56 = vpop.f32.mrf.mxu3 }
 0xa45   :  { %v971_v58 = vadd.f32 %v2404_v49, %v970_v56 }
 0xa47   :  { %v2180_v59 = vmul.f32 -1.702, %v971_v58 }
 0xa49   :  { %v2457_v62 = vpop.eup %2456  ;;  %v979_v63 = vmul.f32 1.442695, %v2180_v59 }
 0xa4a   :  { %v981_v1 = vadd.f32 1.0, %v2457_v62 }
 0xa4b   :  { %2458 = vpow2.f32 %v979_v63 }
 0xa4c   :  { %2460 = vrcp.f32 %v981_v1  ;;  %v994_v10 = vand.u32 2147483648, %v981_v1  ;;  %vm988_vm0 = vweird.f32 %v981_v1  ;;  %v992_v11 = vand.u32 2147483647, %v981_v1 }
 0xa4e   :  { %v995_v18 = vor.u32 1.1754944e-38, %v994_v10  ;;  %vm993_vm8 = vcmp.eq.f32.partialorder %v992_v11, 8.507059e+37 }
 0xa51   :  { %v2459_v2 = vpop.eup %2458 }
 0xa52   :  { %v2461_v3 = vpop.eup %2460  ;;  %v982_v5 = vadd.f32 1.0, %v2459_v2 }
 0xa53   :  { %v984_v6 = vmul.f32 %v2461_v3, %v981_v1  ;;  %vm989_vm15 = vweird.f32 %v2461_v3  ;;  %v2956_v1 = vld [vmem:[%s3190_s4 + $0x4] sm:$0xf] }
 0xa54   :  { %2462 = vrcp.f32 %v982_v5  ;;  %vm990_vm2 = vmor %vm988_vm0, %vm989_vm15  ;;  %v1009_v14 = vand.u32 2147483648, %v982_v5  ;;  %v1007_v17 = vand.u32 2147483647, %v982_v5  ;;  %vm1003_vm9 = vweird.f32 %v982_v5 }
 0xa55   :  { %v985_v7 = vsub.f32 1.0, %v984_v6  ;;  %v1146_v6 = vperm.slane %v2956_v1, 0 }
 0xa56   :  { %v1010_v21 = vor.u32 1.1754944e-38, %v1009_v14  ;;  %vm1008_vm14 = vcmp.eq.f32.partialorder %v1007_v17, 8.507059e+37 }
 0xa57   :  { %v986_v8 = vmul.f32 %v2461_v3, %v985_v7 }
 0xa59   :  { %v987_v9 = vadd.f32 %v2461_v3, %v986_v8 }
 0xa5a   :  { %v2463_v4 = vpop.eup %2462 }
 0xa5b   :  { %v999_v12 = vmul.f32 %v2463_v4, %v982_v5  ;;  %v991_v15 = vsel %vm990_vm2, %v2461_v3, %v987_v9  ;;  %vm1004_vm3 = vweird.f32 %v2463_v4  ;;  %v1149_v9 = vperm.slane %v2956_v1, 1 }
 0xa5c   :  { %v996_v20 = vsel %vm993_vm8, %v995_v18, %v991_v15  ;;  %vm1005_vm1 = vmor %vm1003_vm9, %vm1004_vm3 }
 0xa5d   :  { %v1000_v13 = vsub.f32 1.0, %v999_v12  ;;  %v1013_v24 = vmul.f32 %v996_v20, %v969_v52 }
 0xa5f   :  { %v1001_v16 = vmul.f32 %v2463_v4, %v1000_v13 }
 0xa61   :  { %v1002_v19 = vadd.f32 %v2463_v4, %v1001_v16  ;;  %v2406_v16 = vld [vmem:[%s3192_s6 + $0x1] ss:$0 sm:$0xff]  ;;  %s3213_s6 = smov 40  }
 0xa63   :  { %v1006_v22 = vsel %vm1005_vm1, %v2463_v4, %v1002_v19 }
 0xa64   :  { %v1011_v23 = vsel %vm1008_vm14, %v1010_v21, %v1006_v22 }
 0xa65   :  { %v1014_v25 = vmul.f32 %v1011_v23, %v971_v58 }
 0xa67   :  { %v1015_v26 = vpack.c.bf16 %v1014_v25, %v1013_v24 }
 0xa69   :  { %1092 = vmatmul.bf16.vlgmr.msra.gmra.mxu0 %v1015_v26 }
 0xae6   :  { %v1093_v28 = vpop.f32.mrf.mxu0 }
 0xae7   :  { %v1094_v29 = vadd.f32 %v2405_v27, %v1093_v28 }
 0xae9   :  { %v2930_v31 = vadd.f32 %v1094_v29, %v2873_v61 }
 0xaeb   :  { %v1102_v32 = vsel %vm197_vm4, %v2930_v31, 0.0 }
 0xaec   :  { %1103 = vadd.xlane.f32.xlu2 %v1102_v32 }
 0xaee   :  { %v1095_v33 = vpop.f32.mrf.mxu0 }
 0xaef   :  { %v1096_v60 = vadd.f32 %v2405_v27, %v1095_v33 }
 0xaf1   :  { %v2935_v34 = vadd.f32 %v1096_v60, %v2878_v0 }
 0xaf3   :  { %v1105_v35 = vsel %vm201_vm5, %v2935_v34, 0.0 }
 0xaf4   :  { %1106 = vadd.xlane.f32.xlu1 %v1105_v35 }
 0xb5f   :  { %v1104_v37 = vpop.xlane.xlu2 %1103 }
 0xb60   :  { %v1108_v38 = vmul.f32 %v1104_v37, %v2684_v36 }
 0xb62   :  { %v1110_v39 = vsub.f32 %v2930_v31, %v1108_v38 }
 0xb64   :  { %v1112_v61 = vmul.f32 %v1110_v39, %v1110_v39 }
 0xb66   :  { %v1114_v40 = vsel %vm197_vm4, %v1112_v61, 0.0 }
 0xb67   :  { %v1107_v41 = vpop.xlane.xlu1 %1106  ;;  %1115 = vadd.xlane.f32.xlu0 %v1114_v40 }
 0xb68   :  { %v1109_v42 = vmul.f32 %v1107_v41, %v2684_v36 }
 0xb6a   :  { %v1111_v43 = vsub.f32 %v2935_v34, %v1109_v42 }
 0xb6c   :  { %v1113_v0 = vmul.f32 %v1111_v43, %v1111_v43 }
 0xb6e   :  { %v1117_v45 = vsel %vm201_vm5, %v1113_v0, 0.0 }
 0xb6f   :  { %1118 = vadd.xlane.f32.xlu2 %v1117_v45 }
 0xbda   :  { %v1116_v44 = vpop.xlane.xlu0 %1115 }
 0xbdb   :  { %v1120_v47 = vmul.f32 %v1116_v44, %v2684_v36 }
 0xbdd   :  { %v1122_v49 = vadd.f32 1e-05, %v1120_v47 }
 0xbdf   :  { %2464 = vrsqrt.f32 %v1122_v49  ;;  %vm1130_vm14 = vweird.f32 %v1122_v49 }
 0xbe2   :  { %v1119_v50 = vpop.xlane.xlu2 %1118 }
 0xbe3   :  { %v1121_v51 = vmul.f32 %v1119_v50, %v2684_v36 }
 0xbe5   :  { %v2465_v52 = vpop.eup %2464  ;;  %v1123_v53 = vadd.f32 1e-05, %v1121_v51 }
 0xbe6   :  { %v1125_v54 = vmul.f32 %v2465_v52, %v1122_v49  ;;  %vm1131_vm1 = vweird.f32 %v2465_v52 }
 0xbe7   :  { %2466 = vrsqrt.f32 %v1123_v53  ;;  %vm1132_vm15 = vmor %vm1130_vm14, %vm1131_vm1  ;;  %vm1140_vm2 = vweird.f32 %v1123_v53 }
 0xbe8   :  { %v1126_v55 = vmul.f32 %v2465_v52, %v1125_v54 }
 0xbea   :  { %v1127_v56 = vmul.f32 0.5, %v1126_v55 }
 0xbec   :  { %v1128_v57 = vsub.f32 1.5, %v1127_v56 }
 0xbed   :  { %v2467_v58 = vpop.eup %2466 }
 0xbee   :  { %v1129_v59 = vmul.f32 %v2465_v52, %v1128_v57  ;;  %v1135_v62 = vmul.f32 %v2467_v58, %v1123_v53  ;;  %vm1141_vm0 = vweird.f32 %v2467_v58 }
 0xbef   :  { %vm1142_vm3 = vmor %vm1140_vm2, %vm1141_vm0 }
 0xbf0   :  { %v1136_v63 = vmul.f32 %v2467_v58, %v1135_v62  ;;  %v1133_v2 = vsel %vm1132_vm15, %v2465_v52, %v1129_v59 }
 0xbf1   :  { %v1144_v7 = vmul.f32 %v1133_v2, %v1110_v39 }
 0xbf2   :  { %v1137_v3 = vmul.f32 0.5, %v1136_v63 }
 0xbf3   :  { %v1147_v12 = vmul.f32 %v1146_v6, %v1144_v7 }
 0xbf4   :  { %v1138_v5 = vsub.f32 1.5, %v1137_v3 }
 0xbf5   :  { %v1150_v13 = vadd.f32 %v1149_v9, %v1147_v12 }
 0xbf6   :  { %v1139_v8 = vmul.f32 %v2467_v58, %v1138_v5 }
 0xbf8   :  { %v1143_v4 = vsel %vm1142_vm3, %v2467_v58, %v1139_v8 }
 0xbf9   :  { %v1145_v10 = vmul.f32 %v1143_v4, %v1111_v43 }
 0xbfb   :  { %v1148_v11 = vmul.f32 %v1146_v6, %v1145_v10 }
 0xbfd   :  { %v1151_v14 = vadd.f32 %v1149_v9, %v1148_v11 }
 0xbff   :  { %v1152_v15 = vpack.c.bf16 %v1151_v14, %v1150_v13 }
 0xc01   :  { %2227 = vmatmul.msk.bf16.vlgmr.msrb.gmra.mxu1 %vm197_vm4, %v1152_v15 }
 0xc7e   :  { %v1187_v17 = vpop.f32.mrf.mxu1 }
 0xc7f   :  { %v1188_v18 = vadd.f32 %v2406_v16, %v1187_v17 }
 0xc81   :  { %v2964_v19 = vpack.c.bf16 %v1188_v18, %v1188_v18 }
 0xc83   :  { %1227 = vrot.lane.b32.xlu2 %v2964_v19, %s2550_s24  ;;  %1194 = vrot.lane.b32.xlu1 %v2964_v19, %s2545_s19 }
 0xc86   :  { %v1189_v20 = vpop.f32.mrf.mxu1 }
 0xc87   :  { %v1190_v21 = vadd.f32 %v2406_v16, %v1189_v20 }
 0xc89   :  { %v1432_v22 = vpack.c.bf16 %v1190_v21, %v1188_v18 }
 0xc8b   :  { %1310 = vrot.lane.b32.xlu2 %v2964_v19, %s2549_s23  ;;  %1249 = vrot.lane.b32.xlu1 %v2964_v19, %s2546_s20  ;;  %v1434_v23 = vshrl.u32 %v1432_v22, 16  ;;  %v1437_v24 = vshll.u32 %v1432_v22, 16 }
 0xc8d   :  { %v1436_v25 = vrot.slane %v1434_v23, 2  ;;  %v1439_v26 = vrot.slane %v1437_v24, 3 }
 0xc8f   :  { %v2976_v27 = vor.u32 %v1439_v26, %v1436_v25 }
 0xc93   :  { %1373 = vrot.lane.b32.xlu1 %v2964_v19, %s2548_s22 }
 0xc9b   :  { %1441 = vrot.lane.b32.xlu1 %v2976_v27, %s2545_s19  ;;  %s3215_s19 = smov 8  }
 0xca3   :  { %1559 = vrot.lane.b32.xlu1 %v2976_v27, %s2547_s21 }
 0xcab   :  { %1618 = vrot.lane.b32.xlu1 %v2976_v27, %s2551_s25 }
 0xcdd   :  { %v1228_v28 = vpop.permute.xlu2 %1227 }
 0xcde   :  { %v1233_v29 = vand.u32 %v1228_v28, %v2766_v30 }
 0xce0   :  { %1242 = vmatpush.bf16.msra.mxu3 %v1233_v29 }
 0xce5   :  { %v1311_v49 = vpop.permute.xlu2 %1310 }
 0xcf5   :  { %v1195_v32 = vpop.permute.xlu1 %1194 }
 0xcf6   :  { %v1200_v33 = vsel %vm349_vm6, %v1195_v32, 0 }
 0xcf7   :  { %1209 = vmatpush.bf16.xpose.msra.mxu2 %v1200_v33 }
 0xcfd   :  { %v1250_v40 = vpop.permute.xlu1 %1249 }
 0xcfe   :  { %2228 = vmatmul.msk.bf16.vlgmr.msra.gmra.mxu2 %vm349_vm6, %v2964_v19 }
 0xd05   :  { %v1374_v43 = vpop.permute.xlu1 %1373 }
 0xd06   :  { %v1379_v46 = vsel %vm349_vm6, %v1374_v43, 0 }
 0xd0d   :  { %v1442_v54 = vpop.permute.xlu1 %1441 }
 0xd0e   :  { %v1447_v57 = vsel %vm349_vm6, %v1442_v54, 0 }
 0xd15   :  { %v1560_v63 = vpop.permute.xlu1 %1559 }
 0xd16   :  { %v1565_v5 = vsel %vm349_vm6, %v1560_v63, 0 }
 0xd1d   :  { %v1619_v6 = vpop.permute.xlu1 %1618 }
 0xd81   :  { %v1211_v60 = vpop.f32.mrf.mxu2 }
 0xd82   :  { %v1215_v35 = vsel %vm369_vm7, %v1211_v60, -inf }
 0xd83   :  { %1216 = vmax.xlane.f32.xlu0 %v1215_v35 }
 0xd89   :  { %v1213_v37 = vpop.f32.mrf.mxu2 }
 0xd97   :  { %1251 = vrot.lane.b32.xlu0 %v2964_v19, %s2544_s18 }
 0xd9f   :  { %1312 = vrot.lane.b32.xlu0 %v2964_v19, %s2547_s21  ;;  %s3217_s21 = smov 24  }
 0xda7   :  { %1371 = vrot.lane.b32.xlu0 %v2964_v19, %s2551_s25 }
 0xdaf   :  { %1496 = vrot.lane.b32.xlu0 %v2976_v27, %s2546_s20  ;;  %s3216_s20 = smov 16  }
 0xdb7   :  { %1557 = vrot.lane.b32.xlu0 %v2976_v27, %s2549_s23 }
 0xdf6   :  { %v1217_v38 = vpop.xlane.xlu0 %1216 }
 0xdf7   :  { %v1218_v39 = vsub.f32 %v1211_v60, %v1217_v38 }
 0xdf9   :  { %v1219_v61 = vmul.f32 1.442695, %v1218_v39 }
 0xdfb   :  { %2468 = vpow2.f32 %v1219_v61 }
 0xe01   :  { %v2469_v41 = vpop.eup %2468 }
 0xe02   :  { %v1221_v42 = vsel %vm369_vm7, %v2469_v41, 0.0 }
 0xe03   :  { %1222 = vadd.xlane.f32.xlu2 %v1221_v42 }
 0xe09   :  { %v1252_v0 = vpop.permute.xlu0 %1251 }
 0xe0a   :  { %v1257_v45 = vsel %vm349_vm6, %v1252_v0, 0 }
 0xe0b   :  { %1266 = vmatpush.bf16.xpose.msra.mxu1 %v1257_v45 }
 0xe11   :  { %v1313_v44 = vpop.permute.xlu0 %1312 }
 0xe12   :  { %v1318_v47 = vsel %vm349_vm6, %v1313_v44, 0  ;;  %2230 = vmatmul.msk.bf16.vlgmr.msra.gmra.mxu1 %vm349_vm6, %v1250_v40 }
 0xe13   :  { %1388 = vmatpush.bf16.xpose.msrb.mxu1 %v1379_v46  ;;  %1327 = vmatpush.bf16.xpose.msrb.mxu3 %v1318_v47 }
 0xe19   :  { %v1372_v48 = vpop.permute.xlu0 %1371 }
 0xe1b   :  { %1498 = vrot.lane.b32.xlu2 %v2976_v27, %s2544_s18  ;;  %s3214_s18 = smov 48  }
 0xe21   :  { %v1497_v58 = vpop.permute.xlu0 %1496 }
 0xe22   :  { %2234 = vmatmul.msk.bf16.vlgmr.msrb.gmra.mxu1 %vm349_vm6, %v1372_v48 }
 0xe23   :  { %1620 = vrot.lane.b32.xlu2 %v2976_v27, %s2548_s22 }
 0xe29   :  { %v1558_v12 = vpop.permute.xlu0 %1557 }
 0xe76   :  { %v1223_v50 = vpop.xlane.xlu2 %1222 }
 0xe77   :  { %2470 = vrcp.f32 %v1223_v50 }
 0xe7d   :  { %v2471_v51 = vpop.eup %2470 }
 0xe7e   :  { %v1225_v52 = vmul.f32 %v2471_v51, %v2469_v41  ;;  %v1499_v53 = vpop.permute.xlu2 %1498 }
 0xe7f   :  { %v1504_v55 = vsel %vm349_vm6, %v1499_v53, 0 }
 0xe80   :  { %v1226_v56 = vpack.c.bf16 %v1225_v52, %v1225_v52  ;;  %1513 = vmatpush.bf16.xpose.msra.mxu1 %v1504_v55 }
 0xe82   :  { %2229 = vmatmul.msk.bf16.vlgmr.msra.gmra.mxu3 %vm384_vm10, %v1226_v56 }
 0xe83   :  { %1456 = vmatpush.bf16.xpose.msra.mxu3 %v1447_v57 }
 0xe86   :  { %v1621_v59 = vpop.permute.xlu2 %1620 }
 0xe87   :  { %v1626_v62 = vsel %vm349_vm6, %v1621_v59, 0  ;;  %2238 = vmatmul.msk.bf16.vlgmr.msra.gmra.mxu1 %vm349_vm6, %v1497_v58 }
 0xe88   :  { %1635 = vmatpush.bf16.xpose.msrb.mxu1 %v1626_v62 }
 0xe8f   :  { %v1268_v2 = vpop.f32.mrf.mxu1 }
 0xe90   :  { %v1272_v3 = vsel %vm369_vm7, %v1268_v2, -inf }
 0xe91   :  { %1273 = vmax.xlane.f32.xlu2 %v1272_v3 }
 0xe92   :  { %2232 = vmatmul.msk.bf16.vlgmr.msrb.gmra.mxu3 %vm349_vm6, %v1311_v49 }
 0xe93   :  { %1574 = vmatpush.bf16.xpose.msrb.mxu3 %v1565_v5 }
 0xe97   :  { %v1270_v7 = vpop.f32.mrf.mxu1  ;;  %2242 = vmatmul.msk.bf16.vlgmr.msrb.gmra.mxu1 %vm349_vm6, %v1619_v6 }
 0xe9f   :  { %v1390_v8 = vpop.f32.mrf.mxu1 }
 0xea0   :  { %v1394_v4 = vsel %vm369_vm7, %v1390_v8, -inf }
 0xea1   :  { %1395 = vmax.xlane.f32.xlu0 %v1394_v4 }
 0xea2   :  { %2236 = vmatmul.msk.bf16.vlgmr.msra.gmra.mxu3 %vm349_vm6, %v2976_v27 }
 0xea7   :  { %v1392_v9 = vpop.f32.mrf.mxu1 }
 0xeb2   :  { %2240 = vmatmul.msk.bf16.vlgmr.msrb.gmra.mxu3 %vm349_vm6, %v1558_v12  ;;  %vm3218_vm6 = vcmask 258240  }
 0xf04   :  { %v1274_v10 = vpop.xlane.xlu2 %1273  ;;  %v1515_v11 = vpop.f32.mrf.mxu1 }
 0xf05   :  { %v1275_v13 = vsub.f32 %v1268_v2, %v1274_v10  ;;  %v1244_v14 = vpop.f32.mrf.mxu3  ;;  %v1519_v15 = vsel %vm369_vm7, %v1515_v11, -inf }
 0xf06   :  { %1248 = vst.msk [vmem:[#allocation3] sm:$0x1f] %vm408_vm11, %v1244_v14  ;;  %1520 = vmax.xlane.f32.xlu2 %v1519_v15 }
 0xf07   :  { %v1276_v16 = vmul.f32 1.442695, %v1275_v13 }
 0xf09   :  { %2472 = vpow2.f32 %v1276_v16 }
 0xf0c   :  { %v1517_v17 = vpop.f32.mrf.mxu1 }
 0xf0d   :  { %v1246_v18 = vpop.f32.mrf.mxu3 }
 0xf0f   :  { %v3024_v20 = vpop.eup %2472 }
 0xf10   :  { %v1278_v21 = vsel %vm369_vm7, %v3024_v20, 0.0 }
 0xf11   :  { %1279 = vadd.xlane.f32.xlu2 %v1278_v21 }
 0xf14   :  { %v1396_v22 = vpop.xlane.xlu0 %1395  ;;  %v1637_v23 = vpop.f32.mrf.mxu1 }
 0xf15   :  { %v1397_v24 = vsub.f32 %v1390_v8, %v1396_v22  ;;  %v1329_v25 = vpop.f32.mrf.mxu3  ;;  %v1641_v26 = vsel %vm369_vm7, %v1637_v23, -inf }
 0xf16   :  { %1642 = vmax.xlane.f32.xlu1 %v1641_v26  ;;  %v1333_v33 = vsel %vm369_vm7, %v1329_v25, -inf }
 0xf17   :  { %v1398_v28 = vmul.f32 1.442695, %v1397_v24 }
 0xf19   :  { %2474 = vpow2.f32 %v1398_v28 }
 0xf1c   :  { %v1639_v29 = vpop.f32.mrf.mxu1 }
 0xf1d   :  { %v1331_v32 = vpop.f32.mrf.mxu3 }
 0xf1e   :  { %1334 = vmax.xlane.f32.xlu1 %v1333_v33 }
 0xf1f   :  { %v3030_v60 = vpop.eup %2474 }
 0xf20   :  { %v1400_v35 = vsel %vm369_vm7, %v3030_v60, 0.0 }
 0xf21   :  { %1401 = vadd.xlane.f32.xlu2 %v1400_v35 }
 0xf25   :  { %v1458_v37 = vpop.f32.mrf.mxu3 }
 0xf26   :  { %v1462_v38 = vsel %vm369_vm7, %v1458_v37, -inf }
 0xf27   :  { %1463 = vmax.xlane.f32.xlu0 %v1462_v38 }
 0xf2d   :  { %v1460_v39 = vpop.f32.mrf.mxu3 }
 0xf35   :  { %v3035_v61 = vpop.f32.mrf.mxu3 }
 0xf36   :  { %v1580_v41 = vsel %vm369_vm7, %v3035_v61, -inf }
 0xf37   :  { %1284 = vrot.lane.b32.xlu1 %v2964_v19, %s2554_s0 }
 0xf39   :  { %1406 = vrot.lane.b32.xlu2 %v2964_v19, %s3213_s6 }
 0xf3b   :  { %1345 = vrot.lane.b32.xlu0 %v2964_v19, %s3214_s18 }
 0xf3d   :  { %v1578_v40 = vpop.f32.mrf.mxu3 }
 0xf41   :  { %1531 = vrot.lane.b32.xlu2 %v2976_v27, %s2554_s0 }
 0xf49   :  { %1474 = vrot.lane.b32.xlu2 %v2976_v27, %s2550_s24 }
 0xf65   :  { %1581 = vmax.xlane.f32.xlu0 %v1580_v41 }
 0xf79   :  { %v1521_v42 = vpop.xlane.xlu2 %1520 }
 0xf7a   :  { %v1522_v43 = vsub.f32 %v1515_v11, %v1521_v42 }
 0xf7c   :  { %v1523_v0 = vmul.f32 1.442695, %v1522_v43 }
 0xf7e   :  { %2476 = vpow2.f32 %v1523_v0 }
 0xf84   :  { %v3049_v45 = vpop.eup %2476  ;;  %v1280_v47 = vpop.xlane.xlu2 %1279 }
 0xf85   :  { %v1525_v19 = vsel %vm369_vm7, %v3049_v45, 0.0 }
 0xf86   :  { %1526 = vadd.xlane.f32.xlu1 %v1525_v19 }
 0xf89   :  { %v1643_v46 = vpop.xlane.xlu1 %1642 }
 0xf8a   :  { %v1644_v44 = vsub.f32 %v1637_v23, %v1643_v46 }
 0xf8c   :  { %v1645_v48 = vmul.f32 1.442695, %v1644_v44 }
 0xf8e   :  { %2478 = vpow2.f32 %v1645_v48 }
 0xf91   :  { %v1335_v49 = vpop.xlane.xlu1 %1334 }
 0xf92   :  { %v1336_v50 = vsub.f32 %v1329_v25, %v1335_v49 }
 0xf94   :  { %v3053_v51 = vpop.eup %2478  ;;  %v1337_v52 = vmul.f32 1.442695, %v1336_v50  ;;  %v1402_v53 = vpop.xlane.xlu2 %1401 }
 0xf95   :  { %v1647_v54 = vsel %vm369_vm7, %v3053_v51, 0.0 }
 0xf96   :  { %2480 = vpow2.f32 %v1337_v52  ;;  %1648 = vadd.xlane.f32.xlu2 %v1647_v54 }
 0xf9a   :  { %v1464_v55 = vpop.xlane.xlu0 %1463 }
 0xf9b   :  { %v1465_v56 = vsub.f32 %v1458_v37, %v1464_v55 }
 0xf9c   :  { %v2481_v57 = vpop.eup %2480  ;;  %v1407_v58 = vpop.permute.xlu2 %1406 }
 0xf9d   :  { %v1466_v59 = vmul.f32 1.442695, %v1465_v56  ;;  %v1339_v62 = vsel %vm369_vm7, %v2481_v57, 0.0  ;;  %v1412_v4 = vand.u32 %v1407_v58, %v2766_v30 }
 0xf9e   :  { %1340 = vadd.xlane.f32.xlu0 %v1339_v62 }
 0xf9f   :  { %2482 = vpow2.f32 %v1466_v59 }
 0xfa0   :  { %2484 = vrcp.f32 %v1280_v47 }
 0xfa1   :  { %2486 = vrcp.f32 %v1402_v53 }
 0xfa4   :  { %v1532_v63 = vpop.permute.xlu2 %1531 }
 0xfa5   :  { %v2483_v2 = vpop.eup %2482  ;;  %v1537_v11 = vand.u32 %v1532_v63, %v2766_v30 }
 0xfa6   :  { %v2485_v3 = vpop.eup %2484  ;;  %v1468_v5 = vsel %vm369_vm7, %v2483_v2, 0.0 }
 0xfa7   :  { %1469 = vadd.xlane.f32.xlu0 %v1468_v5  ;;  %v1282_v6 = vmul.f32 %v2485_v3, %v3024_v20  ;;  %v2487_v15 = vpop.eup %2486 }
 0xfa8   :  { %v1404_v16 = vmul.f32 %v2487_v15, %v3030_v60 }
 0xfa9   :  { %v1285_v7 = vpop.permute.xlu1 %1284  ;;  %v1283_v12 = vpack.c.bf16 %v1282_v6, %v1282_v6  ;;  %v2370_v6 = vld [vmem:[%s3193_s7 + $0x18] sm:$0xff] }
 0xfaa   :  { %v1290_v8 = vand.u32 %v1285_v7, %v2766_v30  ;;  %v1405_v17 = vpack.c.bf16 %v1404_v16, %v1404_v16  ;;  %1713 = vmatpush.bf16.msra.mxu3 %v2370_v6  ;;  %v2369_v7 = vld [vmem:[%s3193_s7 + $0x10] sm:$0xff] }
 0xfac   :  { %v1475_v9 = vpop.permute.xlu2 %1474  ;;  %1299 = vmatpush.bf16.msrb.mxu2 %v1290_v8 }
 0xfad   :  { %v1346_v10 = vpop.permute.xlu0 %1345  ;;  %v1480_v14 = vand.u32 %v1475_v9, %v2766_v30 }
 0xfae   :  { %v1351_v13 = vand.u32 %v1346_v10, %v2766_v30  ;;  %1714 = vmatpush.bf16.msra.mxu3 %v2369_v7 }
 0xfaf   :  { %2231 = vmatmul.msk.bf16.vlgmr.msrb.gmra.mxu2 %vm384_vm10, %v1283_v12 }
 0xfb0   :  { %1421 = vmatpush.bf16.msra.mxu2 %v1412_v4  ;;  %1360 = vmatpush.bf16.msrb.mxu0 %v1351_v13 }
 0xfb4   :  { %1546 = vmatpush.bf16.msrb.mxu2 %v1537_v11  ;;  %1489 = vmatpush.bf16.msra.mxu0 %v1480_v14  ;;  %v2407_v11 = vld [vmem:[%s3194_s8 + $0x1] ss:$0 sm:$0xff] }
 0xfbb   :  { %1653 = vrot.lane.b32.xlu0 %v2976_v27, %s3213_s6 }
 0xfbf   :  { %2235 = vmatmul.msk.bf16.vlgmr.msra.gmra.mxu2 %vm384_vm10, %v1405_v17 }
 0xfd8   :  { %v1582_v18 = vpop.xlane.xlu0 %1581 }
 0xfd9   :  { %v1583_v20 = vsub.f32 %v3035_v61, %v1582_v18 }
 0xfdb   :  { %v1584_v21 = vmul.f32 1.442695, %v1583_v20 }
 0xfdd   :  { %2488 = vpow2.f32 %v1584_v21 }
 0xfe3   :  { %v2489_v22 = vpop.eup %2488 }
 0xfe4   :  { %v1586_v23 = vsel %vm369_vm7, %v2489_v22, 0.0  ;;  %vm3219_vm7 = vmmov %vm3218_vm6 }
 0xfe5   :  { %1587 = vadd.xlane.f32.xlu1 %v1586_v23 }
 0xff9   :  { %v1527_v24 = vpop.xlane.xlu1 %1526 }
 0xffa   :  { %2490 = vrcp.f32 %v1527_v24 }
 0xffe   :  { %1592 = vrot.lane.b32.xlu1 %v2976_v27, %s3214_s18 }
0x1000   :  { %v2491_v25 = vpop.eup %2490 }
0x1001   :  { %v1529_v26 = vmul.f32 %v2491_v25, %v3049_v45 }
0x1003   :  { %v1530_v28 = vpack.c.bf16 %v1529_v26, %v1529_v26 }
0x1005   :  { %2239 = vmatmul.msk.bf16.vlgmr.msrb.gmra.mxu2 %vm384_vm10, %v1530_v28 }
0x1009   :  { %v1649_v37 = vpop.xlane.xlu2 %1648 }
0x1011   :  { %v1341_v29 = vpop.xlane.xlu0 %1340 }
0x1012   :  { %2492 = vrcp.f32 %v1341_v29 }
0x1018   :  { %v2493_v32 = vpop.eup %2492 }
0x1019   :  { %v1343_v33 = vmul.f32 %v2493_v32, %v2481_v57 }
0x101a   :  { %v1470_v35 = vpop.xlane.xlu0 %1469 }
0x101b   :  { %v1344_v60 = vpack.c.bf16 %v1343_v33, %v1343_v33  ;;  %2494 = vrcp.f32 %v1470_v35 }
0x101c   :  { %2496 = vrcp.f32 %v1649_v37 }
0x101d   :  { %2233 = vmatmul.msk.bf16.vlgmr.msrb.gmra.mxu0 %vm384_vm10, %v1344_v60 }
0x1021   :  { %v2495_v38 = vpop.eup %2494 }
0x1022   :  { %v1472_v39 = vmul.f32 %v2495_v38, %v2483_v2  ;;  %v2497_v27 = vpop.eup %2496  ;;  %v2371_v38 = vld [vmem:[%s3195_s9 + $0x10] sm:$0xff] }
0x1023   :  { %v1651_v40 = vmul.f32 %v2497_v27, %v3053_v51 }
0x1024   :  { %v1473_v61 = vpack.c.bf16 %v1472_v39, %v1472_v39 }
0x1025   :  { %v1652_v43 = vpack.c.bf16 %v1651_v40, %v1651_v40 }
0x102d   :  { %2237 = vmatmul.msk.bf16.vlgmr.msra.gmra.mxu0 %vm384_vm10, %v1473_v61  ;;  %v1654_v41 = vpop.permute.xlu0 %1653 }
0x102e   :  { %v1659_v42 = vand.u32 %v1654_v41, %v2766_v30 }
0x1030   :  { %1668 = vmatpush.bf16.msra.mxu2 %v1659_v42 }
0x1032   :  { %v1301_v0 = vpop.f32.mrf.mxu2 }
0x1033   :  { %1306 = vrot.lane.b32.xlu2 %v1301_v0, %s3215_s19  ;;  %2243 = vmatmul.msk.bf16.vlgmr.msra.gmra.mxu2 %vm384_vm10, %v1652_v43 }
0x103a   :  { %v1303_v45 = vpop.f32.mrf.mxu2 }
0x1042   :  { %v1423_v19 = vpop.f32.mrf.mxu2 }
0x104a   :  { %v1425_v46 = vpop.f32.mrf.mxu2 }
0x1058   :  { %v1588_v44 = vpop.xlane.xlu1 %1587 }
0x1059   :  { %2498 = vrcp.f32 %v1588_v44 }
0x105f   :  { %v2499_v47 = vpop.eup %2498 }
0x1060   :  { %v1590_v48 = vmul.f32 %v2499_v47, %v2489_v22 }
0x1062   :  { %v1591_v51 = vpack.c.bf16 %v1590_v48, %v1590_v48 }
0x1070   :  { %v1593_v49 = vpop.permute.xlu1 %1592 }
0x1071   :  { %v1598_v50 = vand.u32 %v1593_v49, %v2766_v30 }
0x1073   :  { %1607 = vmatpush.bf16.msrb.mxu0 %v1598_v50  ;;  %v1767_v50 = vperm.slane %v2956_v1, 2 }
0x1076   :  { %2241 = vmatmul.msk.bf16.vlgmr.msrb.gmra.mxu0 %vm384_vm10, %v1591_v51 }
0x1088   :  { %v1548_v52 = vpop.f32.mrf.mxu2 }
0x1089   :  { %1553 = vrot.lane.b32.xlu0 %v1548_v52, %s3215_s19 }
0x108d   :  { %v1307_v53 = vpop.permute.xlu2 %1306 }
0x108e   :  { %1309 = vst.msk [vmem:[#allocation3] sm:$0x1f] %vm470_vm12, %v1307_v53 }
0x1090   :  { %v1550_v54 = vpop.f32.mrf.mxu2 }
0x1091   :  { %v1770_v54 = vperm.slane %v2956_v1, 3  ;;  %v2378_v1 = vld [vmem:[%s3197_s11 + $0x68] sm:$0xff] }
0x109a   :  { %v1362_v55 = vpop.f32.mrf.mxu0 }
0x109b   :  { %1367 = vrot.lane.b32.xlu1 %v1362_v55, %s3216_s20 }
0x10a2   :  { %v1364_v56 = vpop.f32.mrf.mxu0 }
0x10a3   :  { %1428 = vrot.lane.b32.xlu1 %v1423_v19, %s3217_s21 }
0x10aa   :  { %v1491_v57 = vpop.f32.mrf.mxu0 }
0x10ab   :  { %1495 = vst.msk [vmem:[#allocation3 + $0x5] sm:$0x1f] %vm408_vm11, %v1491_v57 }
0x10b2   :  { %v1493_v30 = vpop.f32.mrf.mxu0 }
0x10b6   :  { %v1670_v58 = vpop.f32.mrf.mxu2 }
0x10be   :  { %v1672_v59 = vpop.f32.mrf.mxu2 }
0x10f3   :  { %v1609_v62 = vpop.f32.mrf.mxu0 }
0x10f4   :  { %1614 = vrot.lane.b32.xlu0 %v1609_v62, %s3216_s20  ;;  %v2380_v62 = vld [vmem:[%s3197_s11 + $0x78] sm:$0xff] }
0x10f5   :  { %1926 = vmatpush.bf16.msra.mxu1 %v2380_v62  ;;  %v2384_v62 = vld [vmem:[%s3199_s13 + $0x8] sm:$0xff] }
0x10f6   :  { %2063 = vmatpush.bf16.msrb.mxu3 %v2384_v62 }
0x10fb   :  { %v1554_v63 = vpop.permute.xlu0 %1553  ;;  %v1611_v2 = vpop.f32.mrf.mxu0 }
0x10fc   :  { %1556 = vst.msk [vmem:[#allocation3 + $0x5] sm:$0x1f] %vm470_vm12, %v1554_v63  ;;  %1675 = vrot.lane.b32.xlu0 %v1670_v58, %s3217_s21  ;;  %v2379_v63 = vld [vmem:[%s3197_s11 + $0x70] sm:$0xff]  ;;  %v2377_v2 = vld [vmem:[%s3197_s11 + $0x60] sm:$0xff] }
0x10fd   :  { %1927 = vmatpush.bf16.msra.mxu1 %v2379_v63  ;;  %v2383_v63 = vld [vmem:[%s3199_s13] sm:$0xff] }
0x10fe   :  { %2064 = vmatpush.bf16.msrb.mxu3 %v2383_v63 }
0x1101   :  { %1928 = vmatpush.bf16.msra.mxu1 %v2378_v1 }
0x1105   :  { %1929 = vmatpush.bf16.msra.mxu1 %v2377_v2 }
0x110d   :  { %v1368_v3 = vpop.permute.xlu1 %1367 }
0x110e   :  { %1370 = vst.msk [vmem:[#allocation3] sm:$0x1f] %vm532_vm13, %v1368_v3  ;;  %v2408_v3 = vld [vmem:[%s3196_s10 + $0x1] ss:$0 sm:$0xff] }
0x1115   :  { %v1429_v5 = vpop.permute.xlu1 %1428 }
0x1116   :  { %1431 = vst.msk [vmem:[#allocation3] sm:$0x1f] %vm3218_vm6, %v1429_v5  ;;  %v2376_v5 = vld [vmem:[%s3197_s11 + $0x58] sm:$0xff] }
0x1117   :  { %1930 = vmatpush.bf16.msra.mxu1 %v2376_v5 }
0x1166   :  { %v1615_v8 = vpop.permute.xlu0 %1614 }
0x1167   :  { %1617 = vst.msk [vmem:[#allocation3 + $0x5] sm:$0x1f] %vm532_vm13, %v1615_v8  ;;  %v2375_v8 = vld [vmem:[%s3197_s11 + $0x50] sm:$0xff] }
0x1168   :  { %1931 = vmatpush.bf16.msra.mxu1 %v2375_v8 }
0x116e   :  { %v1676_v4 = vpop.permute.xlu0 %1675 }
0x116f   :  { %1678 = vst.msk [vmem:[#allocation3 + $0x5] sm:$0x1f] %vm3219_vm7, %v1676_v4  ;;  %vm2004_vm7 = vcmask 259077  }
0x1176   :  { %v1679_v9 = vld [vmem:[#allocation3] sm:$0xff]  ;;  %v1680_v12 = vld [vmem:[#allocation3 + $0x8] sm:$0x3] }
0x1177   :  { %v1681_v10 = vpack.c.bf16 %v1680_v12, %v1679_v9  ;;  %v2374_v12 = vld [vmem:[%s3197_s11 + $0x48] sm:$0xff] }
0x1178   :  { %1932 = vmatpush.bf16.msra.mxu1 %v2374_v12 }
0x1179   :  { %2257 = vmatmul.msk.bf16.vlgmr.msra.gmra.mxu3 %vm197_vm4, %v1681_v10 }
0x11fc   :  { %v1716_v13 = vpop.f32.mrf.mxu3 }
0x11fd   :  { %v1717_v14 = vadd.f32 %v2407_v11, %v1716_v13  ;;  %v2373_v13 = vld [vmem:[%s3197_s11 + $0x40] sm:$0xff] }
0x11fe   :  { %1933 = vmatpush.bf16.msra.mxu1 %v2373_v13 }
0x11ff   :  { %v3107_v15 = vadd.f32 %v1717_v14, %v2930_v31 }
0x1201   :  { %v1723_v16 = vsel %vm197_vm4, %v3107_v15, 0.0 }
0x1202   :  { %1724 = vadd.xlane.f32.xlu2 %v1723_v16 }
0x1204   :  { %v1718_v17 = vpop.f32.mrf.mxu3 }
0x1205   :  { %v1719_v18 = vadd.f32 %v2407_v11, %v1718_v17 }
0x1207   :  { %v1722_v20 = vadd.f32 %v1719_v18, %v2935_v34  ;;  %v2372_v34 = vld [vmem:[%s3195_s9 + $0x18] sm:$0xff] }
0x1208   :  { %1805 = vmatpush.bf16.msra.mxu0 %v2372_v34 }
0x1209   :  { %v1726_v21 = vsel %vm201_vm5, %v1722_v20, 0.0 }
0x120a   :  { %1727 = vadd.xlane.f32.xlu1 %v1726_v21 }
0x120c   :  { %1806 = vmatpush.bf16.msra.mxu0 %v2371_v38 }
0x1275   :  { %v1725_v22 = vpop.xlane.xlu2 %1724 }
0x1276   :  { %v1729_v23 = vmul.f32 %v1725_v22, %v2684_v36 }
0x1278   :  { %v1731_v24 = vsub.f32 %v3107_v15, %v1729_v23 }
0x127a   :  { %v1733_v25 = vmul.f32 %v1731_v24, %v1731_v24 }
0x127c   :  { %v1735_v31 = vsel %vm197_vm4, %v1733_v25, 0.0 }
0x127d   :  { %v1728_v26 = vpop.xlane.xlu1 %1727  ;;  %1736 = vadd.xlane.f32.xlu0 %v1735_v31 }
0x127e   :  { %v1730_v28 = vmul.f32 %v1728_v26, %v2684_v36 }
0x1280   :  { %v1732_v29 = vsub.f32 %v1722_v20, %v1730_v28 }
0x1282   :  { %v1734_v32 = vmul.f32 %v1732_v29, %v1732_v29 }
0x1284   :  { %v1738_v33 = vsel %vm201_vm5, %v1734_v32, 0.0 }
0x1285   :  { %1739 = vadd.xlane.f32.xlu2 %v1738_v33 }
0x12f0   :  { %v1737_v60 = vpop.xlane.xlu0 %1736 }
0x12f1   :  { %v1741_v35 = vmul.f32 %v1737_v60, %v2684_v36 }
0x12f3   :  { %v1743_v37 = vadd.f32 1e-05, %v1741_v35 }
0x12f5   :  { %2500 = vrsqrt.f32 %v1743_v37  ;;  %vm1751_vm10 = vweird.f32 %v1743_v37 }
0x12f8   :  { %v1740_v39 = vpop.xlane.xlu2 %1739 }
0x12f9   :  { %v1742_v27 = vmul.f32 %v1740_v39, %v2684_v36 }
0x12fb   :  { %v2501_v61 = vpop.eup %2500  ;;  %v1744_v40 = vadd.f32 1e-05, %v1742_v27 }
0x12fc   :  { %v1746_v41 = vmul.f32 %v2501_v61, %v1743_v37  ;;  %vm1752_vm5 = vweird.f32 %v2501_v61 }
0x12fd   :  { %2502 = vrsqrt.f32 %v1744_v40  ;;  %vm1753_vm11 = vmor %vm1751_vm10, %vm1752_vm5  ;;  %vm1761_vm13 = vweird.f32 %v1744_v40  ;;  %vm3220_vm5 = vcmask 253952  }
0x12fe   :  { %v1747_v42 = vmul.f32 %v2501_v61, %v1746_v41  ;;  %vm3221_vm10 = vmmov %vm3220_vm5 }
0x1300   :  { %v1748_v43 = vmul.f32 0.5, %v1747_v42 }
0x1302   :  { %v1749_v0 = vsub.f32 1.5, %v1748_v43 }
0x1303   :  { %v2503_v45 = vpop.eup %2502 }
0x1304   :  { %v1750_v19 = vmul.f32 %v2501_v61, %v1749_v0  ;;  %v1756_v46 = vmul.f32 %v2503_v45, %v1744_v40  ;;  %vm1762_vm12 = vweird.f32 %v2503_v45 }
0x1305   :  { %vm1763_vm8 = vmor %vm1761_vm13, %vm1762_vm12 }
0x1306   :  { %v1757_v44 = vmul.f32 %v2503_v45, %v1756_v46  ;;  %v1754_v47 = vsel %vm1753_vm11, %v2501_v61, %v1750_v19 }
0x1307   :  { %v1765_v51 = vmul.f32 %v1754_v47, %v1731_v24 }
0x1308   :  { %v1758_v48 = vmul.f32 0.5, %v1757_v44 }
0x1309   :  { %v1768_v55 = vmul.f32 %v1767_v50, %v1765_v51 }
0x130a   :  { %v1759_v49 = vsub.f32 1.5, %v1758_v48 }
0x130b   :  { %v1771_v30 = vadd.f32 %v1770_v54, %v1768_v55 }
0x130c   :  { %v1760_v52 = vmul.f32 %v2503_v45, %v1759_v49 }
0x130e   :  { %v1764_v53 = vsel %vm1763_vm8, %v2503_v45, %v1760_v52  ;;  %v2409_v45 = vld [vmem:[%s3198_s12 + $0x1] ss:$0 sm:$0xff] }
0x130f   :  { %v1766_v56 = vmul.f32 %v1764_v53, %v1732_v29 }
0x1311   :  { %v1769_v57 = vmul.f32 %v1767_v50, %v1766_v56 }
0x1313   :  { %v1772_v58 = vadd.f32 %v1770_v54, %v1769_v57 }
0x1315   :  { %v1773_v59 = vpack.c.bf16 %v1772_v58, %v1771_v30 }
0x1317   :  { %2271 = vmatmul.msk.bf16.vlgmr.msra.gmra.mxu0 %vm197_vm4, %v1773_v59  ;;  %v2381_v59 = vld [vmem:[%s3199_s13] sm:$0xff] }
0x1394   :  { %v1808_v6 = vpop.f32.mrf.mxu0 }
0x1395   :  { %v1809_v7 = vadd.f32 %v2408_v3, %v1808_v6 }
0x1397   :  { %v2272_v4 = vmul.f32 -1.702, %v1809_v7 }
0x1399   :  { %v1817_v9 = vmul.f32 1.442695, %v2272_v4 }
0x139b   :  { %2504 = vpow2.f32 %v1817_v9 }
0x139c   :  { %v1810_v10 = vpop.f32.mrf.mxu0 }
0x139d   :  { %v1811_v11 = vadd.f32 %v2408_v3, %v1810_v10 }
0x139f   :  { %v2273_v14 = vmul.f32 -1.702, %v1811_v11 }
0x13a1   :  { %v2505_v16 = vpop.eup %2504  ;;  %v1819_v17 = vmul.f32 1.442695, %v2273_v14 }
0x13a2   :  { %v1821_v18 = vadd.f32 1.0, %v2505_v16 }
0x13a3   :  { %2506 = vpow2.f32 %v1819_v17 }
0x13a4   :  { %2508 = vrcp.f32 %v1821_v18  ;;  %v1834_v29 = vand.u32 2147483648, %v1821_v18  ;;  %vm1828_vm1 = vweird.f32 %v1821_v18  ;;  %v1832_v32 = vand.u32 2147483647, %v1821_v18 }
0x13a6   :  { %v1835_v38 = vor.u32 1.1754944e-38, %v1834_v29  ;;  %vm1833_vm0 = vcmp.eq.f32.partialorder %v1832_v32, 8.507059e+37 }
0x13a9   :  { %v2507_v20 = vpop.eup %2506 }
0x13aa   :  { %v2509_v21 = vpop.eup %2508  ;;  %v1822_v22 = vadd.f32 1.0, %v2507_v20 }
0x13ab   :  { %v1824_v23 = vmul.f32 %v2509_v21, %v1821_v18  ;;  %vm1829_vm9 = vweird.f32 %v2509_v21 }
0x13ac   :  { %2510 = vrcp.f32 %v1822_v22  ;;  %vm1830_vm14 = vmor %vm1828_vm1, %vm1829_vm9  ;;  %v1849_v34 = vand.u32 2147483648, %v1822_v22  ;;  %v1847_v37 = vand.u32 2147483647, %v1822_v22  ;;  %vm1843_vm2 = vweird.f32 %v1822_v22 }
0x13ad   :  { %v1825_v24 = vsub.f32 1.0, %v1824_v23 }
0x13ae   :  { %v1850_v61 = vor.u32 1.1754944e-38, %v1849_v34  ;;  %vm1848_vm6 = vcmp.eq.f32.partialorder %v1847_v37, 8.507059e+37 }
0x13af   :  { %v1826_v25 = vmul.f32 %v2509_v21, %v1825_v24 }
0x13b1   :  { %v1827_v26 = vadd.f32 %v2509_v21, %v1826_v25 }
0x13b2   :  { %v2511_v31 = vpop.eup %2510 }
0x13b3   :  { %v1839_v28 = vmul.f32 %v2511_v31, %v1822_v22  ;;  %v1831_v60 = vsel %vm1830_vm14, %v2509_v21, %v1827_v26  ;;  %vm1844_vm15 = vweird.f32 %v2511_v31  ;;  %vm2002_vm14 = vcmask 122880  }
0x13b4   :  { %v1836_v27 = vsel %vm1833_vm0, %v1835_v38, %v1831_v60  ;;  %vm1845_vm3 = vmor %vm1843_vm2, %vm1844_vm15 }
0x13b5   :  { %v1840_v33 = vsub.f32 1.0, %v1839_v28  ;;  %v1853_v42 = vmul.f32 %v1836_v27, %v1809_v7 }
0x13b7   :  { %v1841_v35 = vmul.f32 %v2511_v31, %v1840_v33 }
0x13b9   :  { %v1842_v39 = vadd.f32 %v2511_v31, %v1841_v35 }
0x13bb   :  { %v1846_v40 = vsel %vm1845_vm3, %v2511_v31, %v1842_v39 }
0x13bc   :  { %v1851_v41 = vsel %vm1848_vm6, %v1850_v61, %v1846_v40 }
0x13bd   :  { %v1854_v43 = vmul.f32 %v1851_v41, %v1811_v11 }
0x13bf   :  { %v1855_v0 = vpack.c.bf16 %v1854_v43, %v1853_v42 }
0x13c1   :  { %1934 = vmatmul.bf16.vlgmr.msra.gmra.mxu1 %v1855_v0 }
0x143e   :  { %v1935_v19 = vpop.f32.mrf.mxu1 }
0x143f   :  { %v1936_v46 = vadd.f32 %v2409_v45, %v1935_v19 }
0x1441   :  { %v1939_v44 = vadd.f32 %v1936_v46, %v3107_v15  ;;  %v2382_v15 = vld [vmem:[%s3199_s13 + $0x8] sm:$0xff] }
0x1442   :  { %1995 = vmatpush.bf16.msrb.mxu2 %v2382_v15 }
0x1443   :  { %v2005_v47 = vsel %vm2004_vm7, %v1939_v44, 0.0  ;;  %v1940_v48 = vsel %vm3220_vm5, %v1939_v44, 0.0 }
0x1444   :  { %2006 = vadd.xlane.f32.xlu1 %v2005_v47  ;;  %1941 = vadd.xlane.f32.xlu0 %v1940_v48 }
0x1446   :  { %v1937_v49 = vpop.f32.mrf.mxu1  ;;  %1996 = vmatpush.bf16.msrb.mxu2 %v2381_v59 }
0x14b7   :  { %v2007_v50 = vpop.xlane.xlu1 %2006  ;;  %v1942_v51 = vpop.xlane.xlu0 %1941 }
0x14b8   :  { %v2008_v52 = vmul.f32 %v2007_v50, %v2684_v36  ;;  %v1943_v53 = vmul.f32 %v1942_v51, %v2684_v36 }
0x14ba   :  { %v2009_v54 = vsub.f32 %v1939_v44, %v2008_v52  ;;  %v1944_v55 = vsub.f32 %v1939_v44, %v1943_v53 }
0x14bc   :  { %v2010_v56 = vmul.f32 %v2009_v54, %v2009_v54  ;;  %v1945_v57 = vmul.f32 %v1944_v55, %v1944_v55 }
0x14be   :  { %v2011_v30 = vsel %vm2004_vm7, %v2010_v56, 0.0  ;;  %v1946_v58 = vsel %vm3221_vm10, %v1945_v57, 0.0 }
0x14bf   :  { %2012 = vadd.xlane.f32.xlu2 %v2011_v30  ;;  %1947 = vadd.xlane.f32.xlu1 %v1946_v58 }
0x1532   :  { %v2013_v1 = vpop.xlane.xlu2 %2012  ;;  %v1948_v2 = vpop.xlane.xlu1 %1947 }
0x1533   :  { %v2014_v3 = vmul.f32 %v2013_v1, %v2684_v36  ;;  %v1949_v5 = vmul.f32 %v1948_v2, %v2684_v36  ;;  %v2516_v36 = vld [vmem:[%s3189_s3] sm:$0xf]  ;;  %s2559_s3 = smov [#allocation4]  }
0x1534   :  { %v2027_v20 = vrot.slane %v2516_v36, 5  ;;  %v1963_v23 = vrot.slane %v2516_v36, 2  ;;  %v2030_v31 = vrot.slane %v2516_v36, 6  ;;  %v1966_v28 = vrot.slane %v2516_v36, 3  ;;  %s2076_s17 = sshll.u32 %s2559_s3, 4  ;;  %s2077_s17 = int_to_ptr.vmem [resolvable:$true] %s2076_s17 }
0x1535   :  { %v2015_v6 = vadd.f32 1e-05, %v2014_v3  ;;  %v1950_v7 = vadd.f32 1e-05, %v1949_v5 }
0x1537   :  { %2512 = vrsqrt.f32 %v2015_v6  ;;  %vm2022_vm13 = vweird.f32 %v2015_v6  ;;  %vm1957_vm9 = vweird.f32 %v1950_v7 }
0x1538   :  { %2514 = vrsqrt.f32 %v1950_v7 }
0x153d   :  { %v2513_v8 = vpop.eup %2512 }
0x153e   :  { %v2515_v4 = vpop.eup %2514  ;;  %v2017_v9 = vmul.f32 %v2513_v8, %v2015_v6  ;;  %vm2023_vm11 = vweird.f32 %v2513_v8 }
0x153f   :  { %v1952_v12 = vmul.f32 %v2515_v4, %v1950_v7  ;;  %vm1958_vm12 = vweird.f32 %v2515_v4  ;;  %vm2024_vm8 = vmor %vm2022_vm13, %vm2023_vm11 }
0x1540   :  { %v2018_v10 = vmul.f32 %v2513_v8, %v2017_v9  ;;  %vm1959_vm1 = vmor %vm1957_vm9, %vm1958_vm12 }
0x1541   :  { %v1953_v11 = vmul.f32 %v2515_v4, %v1952_v12 }
0x1542   :  { %v2019_v13 = vmul.f32 0.5, %v2018_v10 }
0x1543   :  { %v1954_v14 = vmul.f32 0.5, %v1953_v11 }
0x1544   :  { %v2020_v16 = vsub.f32 1.5, %v2019_v13 }
0x1545   :  { %v1955_v17 = vsub.f32 1.5, %v1954_v14 }
0x1546   :  { %v2021_v18 = vmul.f32 %v2513_v8, %v2020_v16 }
0x1547   :  { %v1956_v21 = vmul.f32 %v2515_v4, %v1955_v17 }
0x1548   :  { %v2025_v22 = vsel %vm2024_vm8, %v2513_v8, %v2021_v18 }
0x1549   :  { %v2026_v24 = vmul.f32 %v2025_v22, %v2009_v54  ;;  %v1960_v25 = vsel %vm1959_vm1, %v2515_v4, %v1956_v21 }
0x154a   :  { %v1961_v26 = vmul.f32 %v1960_v25, %v1944_v55 }
0x154b   :  { %v2029_v29 = vmul.f32 %v2027_v20, %v2026_v24 }
0x154c   :  { %v1965_v32 = vmul.f32 %v1963_v23, %v1961_v26 }
0x154d   :  { %v2032_v33 = vadd.f32 %v2030_v31, %v2029_v29 }
0x154e   :  { %v1968_v34 = vadd.f32 %v1966_v28, %v1965_v32 }
0x154f   :  { %v2033_v60 = vpack.c.bf16 %v2032_v33, %v2032_v33 }
0x1550   :  { %v1969_v35 = vpack.c.bf16 %v1968_v34, %v1968_v34 }
0x1551   :  { %v2039_v37 = vshrl.u32 %v2033_v60, 16 }
0x1552   :  { %2331 = vmatmul.msk.bf16.vlgmr.msrb.gmra.mxu2 %vm197_vm4, %v1969_v35 }
0x1553   :  { %v2041_v38 = vrot.slane %v2039_v37, 2 }
0x1555   :  { %2340 = vmatmul.msk.bf16.vlgmr.msrb.gmra.mxu3 %vm197_vm4, %v2041_v38 }
0x15d5   :  { %v1998_v39 = vpop.f32.mrf.mxu2 }
0x15d6   :  { %2003 = vst.msk [vmem:[#allocation4] sm:$0x1] %vm2002_vm14, %v1998_v39 }
0x15d8   :  { %v2066_v27 = vpop.f32.mrf.mxu3 }
0x15d9   :  { %2070 = vst.msk [vmem:[#allocation4 + $0x1] sm:$0x1] %vm2002_vm14, %v2066_v27 }
0x15da   :  { %2081 = dma.vmem_to_hbm [thread:$0]  %s2077_s17, 32, %s2079_s15, [#allocation5]  }
0x15dd   :  { %v2000_v61 = vpop.f32.mrf.mxu2 }
0x15e0   :  { %v2068_v40 = vpop.f32.mrf.mxu3 }
0x15e1   :  { %2541 = dma.done.wait [#allocation5], 32  }
0x15e2   :  { %2542 = vsyncadd [#allocation5], 4294967264 }
0x15e3   :  { %2086 = vsyncpa [#allocation5], 1 }

</bundles_post_ra>
